<compile_context>
chip_gen: v6e
topology: v6e:2x2x1
jax: 0.10.0
libtpu: 0.0.40
codegen_flags: <defaults>
</compile_context>

<pallas_src>
import jax
import jax.numpy as jnp
from jax.experimental import pallas as pl
from jax.experimental.pallas import tpu as pltpu


FEAT = 20160          # flattened efficientnet feature size (nn.Linear(20160, 128))
FEAT_PAD = 20480      # 160 * 128 : K padded to a lane multiple for tiling
TK = 10240            # K tile -> 2 grid steps; double-buffered W1 ~5.2 MiB
HID = 128
OUT = 4
OUT_PAD = 128         # lane-padded output; wrapper slices [:, :OUT]


def _net_head_kernel(x_ref, w1_ref, wpack_ref, bpack_ref, alpha_ref,
                     o_ref, acc_ref):
    k = pl.program_id(0)

    @pl.when(k == 0)
    def _():
        acc_ref[...] = jnp.zeros_like(acc_ref)

    # Streamed K-tile of the big Linear(20160 -> 128): bf16 operands, f32 acc.
    acc_ref[...] += jnp.dot(x_ref[...], w1_ref[...],
                            preferred_element_type=jnp.float32)

    @pl.when(k == pl.num_programs(0) - 1)
    def _():
        def prelu(h, a):
            # nn.PReLU() default: single learnable scalar per layer
            return jnp.where(h > 0, h, a * h)

        # Packed residents: wpack = [w2, w3, folded_tail_W],
        #                    bpack = [b1, b2, b3, folded_tail_b]
        b1 = bpack_ref[0:1, :]
        b2 = bpack_ref[1:2, :]
        b3 = bpack_ref[2:3, :]
        bt = bpack_ref[3:4, :]

        h = acc_ref[...] + b1
        h = prelu(h, alpha_ref[0])
        h = jnp.dot(h, wpack_ref[0], preferred_element_type=jnp.float32) + b2
        h = prelu(h, alpha_ref[1])
        h = jnp.dot(h, wpack_ref[1], preferred_element_type=jnp.float32) + b3
        h = prelu(h, alpha_ref[2])
        # Folded activation-free tail (128->64->16->4), pre-composed in the
        # wrapper and lane-padded to 128 outputs (no masked stores).
        o_ref[...] = jnp.dot(h, wpack_ref[2],
                             preferred_element_type=jnp.float32) + bt


def prepare_kernel_params(params):
    """One-time parameter preparation: tail folding, K padding, bf16 cast,
    and packing of the small resident operands (fewer prologue DMAs)."""
    (w1, b1, w2, b2, w3, b3, w4, b4, w5, b5, w6, b6, alphas) = params
    hp = jax.lax.Precision.HIGHEST

    # Fold the activation-free tail Linear(128,64)->(64,16)->(16,4) into a
    # single [128,4] affine map (exact up to f32 reassociation).
    w_tail = jnp.dot(jnp.dot(w4, w5, precision=hp), w6, precision=hp)            # [128, 4]
    b_tail = jnp.dot(jnp.dot(b4, w5, precision=hp) + b5, w6, precision=hp) + b6  # [1, 4]
    w_tail_p = jnp.zeros((HID, OUT_PAD), jnp.float32).at[:, :OUT].set(w_tail)
    b_tail_p = jnp.zeros((1, OUT_PAD), jnp.float32).at[:, :OUT].set(b_tail)

    # Pad K to 20480 and store W1 in bf16 (halves the HBM-bound W1 stream);
    # the matmul still accumulates in f32.
    w1_p = jnp.zeros((FEAT_PAD, HID), jnp.bfloat16).at[:FEAT, :].set(
        w1.astype(jnp.bfloat16))

    # Pack the small resident operands into two arrays (2 prologue DMAs).
    w_pack = jnp.stack([w2, w3, w_tail_p], axis=0)             # (3, 128, 128)
    b_pack = jnp.concatenate([b1, b2, b3, b_tail_p], axis=0)   # (4, 128)

    return (w1_p, w_pack, b_pack, alphas)


def prepare_features(feats):
    """Backbone-side prep: emit bf16, K-padded features.

    Kept OUTSIDE the jitted head forward — in production this cast/pad should
    be fused into the backbone's final op so no extra XLA op sits in front of
    the few-microsecond head kernel.
    """
    B = feats.shape[0]
    return jnp.zeros((B, FEAT_PAD), jnp.bfloat16).at[:, :FEAT].set(
        feats.astype(jnp.bfloat16))


@jax.jit
def net_head_forward(feats_p, kparams):
    """feats_p: [B, FEAT_PAD] bf16 (padded flattened backbone output) -> [B, 4]."""
    B = feats_p.shape[0]
    (w1_p, w_pack, b_pack, alphas) = kparams

    nk = FEAT_PAD // TK  # 2 grid steps

    cost = pl.CostEstimate(
        flops=2 * B * FEAT_PAD * HID + 2 * 2 * B * HID * HID + 2 * B * HID * OUT_PAD,
        transcendentals=0,
        bytes_accessed=(FEAT_PAD * HID * 2        # W1 (bf16) — dominant
                        + B * FEAT_PAD * 2        # feats (bf16)
                        + 3 * HID * HID * 4       # packed w2/w3/folded tail
                        + 4 * HID * 4             # packed biases
                        + B * OUT_PAD * 4),       # output
    )

    out = pl.pallas_call(
        _net_head_kernel,
        out_shape=jax.ShapeDtypeStruct((B, OUT_PAD), jnp.float32),
        grid_spec=pltpu.PrefetchScalarGridSpec(
            num_scalar_prefetch=0,
            grid=(nk,),
            in_specs=[
                pl.BlockSpec((B, TK), lambda k: (0, k)),         # feats (bf16) K-stream
                pl.BlockSpec((TK, HID), lambda k: (k, 0)),       # W1    (bf16) K-stream
                pl.BlockSpec((3, HID, HID), lambda k: (0, 0, 0)),  # packed w2/w3/tail
                pl.BlockSpec((4, HID), lambda k: (0, 0)),          # packed biases
                pl.BlockSpec(memory_space=pltpu.MemorySpace.SMEM),  # PReLU alphas (3,)
            ],
            out_specs=pl.BlockSpec((B, OUT_PAD), lambda k: (0, 0)),
            scratch_shapes=[pltpu.VMEM((B, HID), jnp.float32)],
        ),
        compiler_params=pltpu.CompilerParams(
            dimension_semantics=("arbitrary",),   # K is a reduction axis
            vmem_limit_bytes=16 << 20,            # ~5.6 MiB actual; fits v5e/v6e/v7x
        ),
        cost_estimate=cost,
    )(feats_p, w1_p, w_pack, b_pack, alphas)

    return out[:, :OUT]


def init_params(key):
    """Deterministic init matching the PyTorch layer shapes.

    Linear(in,out): weight stored transposed as (in,out) so the kernel computes
    x @ W (== PyTorch x @ W.T); bias as (1,out).  PReLU: one scalar per layer,
    init 0.25 (PyTorch default).
    """
    dims = [(FEAT, 128), (128, 128), (128, 128), (128, 64), (64, 16), (16, 4)]
    params = []
    keys = jax.random.split(key, 2 * len(dims))
    for i, (fan_in, fan_out) in enumerate(dims):
        bound = 1.0 / jnp.sqrt(jnp.float32(fan_in))
        w = jax.random.uniform(keys[2 * i], (fan_in, fan_out),
                               minval=-bound, maxval=bound, dtype=jnp.float32)
        b = jax.random.uniform(keys[2 * i + 1], (1, fan_out),
                               minval=-bound, maxval=bound, dtype=jnp.float32)
        params.extend([w, b])
    alphas = jnp.full((3,), 0.25, dtype=jnp.float32)
    params.append(alphas)
    return tuple(params)


def reference_forward(feats, params, mirror_kernel_bf16=False):
    """Pure-JAX reference of the fc + fc2 chain (un-fused tail).

    mirror_kernel_bf16=False reproduces the unmodified f32 PyTorch numerics;
    True mirrors the kernel's bf16 storage of the first-layer operands.
    """
    (w1, b1, w2, b2, w3, b3, w4, b4, w5, b5, w6, b6, alphas) = params
    prelu = lambda h, a: jnp.where(h > 0, h, a * h)
    if mirror_kernel_bf16:
        x = feats.astype(jnp.bfloat16).astype(jnp.float32)
        w1 = w1.astype(jnp.bfloat16).astype(jnp.float32)
    else:
        x = feats
    h = x @ w1 + b1
    h = prelu(h, alphas[0])
    h = h @ w2 + b2
    h = prelu(h, alphas[1])
    h = h @ w3 + b3
    h = prelu(h, alphas[2])
    h = h @ w4 + b4
    h = h @ w5 + b5
    h = h @ w6 + b6
    return h


if __name__ == "__main__":
    key = jax.random.PRNGKey(0)
    k_feat, k_param = jax.random.split(key)

    B = 2
    # Stand-in for the flattened efficientnet output (see TODO(synk) above).
    feats = jax.random.normal(k_feat, (B, FEAT), dtype=jnp.float32)
    params = init_params(k_param)
    kparams = prepare_kernel_params(params)
    feats_p = prepare_features(feats)   # backbone-side bf16 cast + K-pad

    out = net_head_forward(feats_p, kparams)
    out = jax.block_until_ready(out)
    assert out.shape == (B, OUT), out.shape

    # Tight check vs a reference that mirrors the kernel's intentional bf16
    # storage of the first-layer operands (tail-fold / K-tile reassociation
    # only).
    ref_bf16 = reference_forward(feats, params, mirror_kernel_bf16=True)
    assert jnp.allclose(out, ref_bf16, atol=1e-3, rtol=1e-3), (out, ref_bf16)

    # Loose sanity check against the unmodified f32 reference (per review):
    # quantifies the bf16-storage error over the 20160-deep reduction.
    ref_f32 = reference_forward(feats, params, mirror_kernel_bf16=False)
    assert jnp.allclose(out, ref_f32, atol=5e-2, rtol=5e-2), (out, ref_f32)

    print("KERNEL_OK")
</pallas_src>

<mosaic_0001>
module attributes {stable_mosaic.version = 11 : i64} {
  func.func @_net_head_kernel(%arg0: i32, %arg1: memref<2x10240xbf16, #tpu.memory_space<vmem>>, %arg2: memref<10240x128xbf16, #tpu.memory_space<vmem>>, %arg3: memref<3x128x128xf32, #tpu.memory_space<vmem>>, %arg4: memref<4x128xf32, #tpu.memory_space<vmem>>, %arg5: memref<3xf32, #tpu.memory_space<smem>>, %arg6: memref<2x128xf32, #tpu.memory_space<vmem>>, %arg7: memref<2x128xf32, #tpu.memory_space<vmem>>) attributes {dimension_semantics = [#tpu.dimension_semantics<arbitrary>], iteration_bounds = array<i64: 2>, scalar_prefetch = 0 : i64, scratch_operands = 1 : i64, tpu.core_type = #tpu.core_type<tc>, window_params = [{transform_indices = @transform_0, window_bounds = array<i64: 2, 10240>}, {transform_indices = @transform_1, window_bounds = array<i64: 10240, 128>}, {pipeline_mode = #tpu.pipeline_mode<synchronous>, transform_indices = @transform_2, window_bounds = array<i64: 3, 128, 128>}, {pipeline_mode = #tpu.pipeline_mode<synchronous>, transform_indices = @transform_3, window_bounds = array<i64: 4, 128>}, {transform_indices = @transform_4, window_bounds = array<i64: 3>}, {pipeline_mode = #tpu.pipeline_mode<synchronous>, transform_indices = @transform_5, window_bounds = array<i64: 2, 128>}]} {
    %c0_i32 = arith.constant 0 : i32
    %0 = arith.cmpi eq, %arg0, %c0_i32 : i32
    %1 = arith.extui %0 : i1 to i32
    %c0_i32_0 = arith.constant 0 : i32
    %2 = arith.cmpi ne, %1, %c0_i32_0 : i32
    scf.if %2 {
      %cst_9 = arith.constant 0.000000e+00 : f32
      %12 = vector.broadcast %cst_9 : f32 to vector<2x128xf32>
      %c0_10 = arith.constant 0 : index
      %c0_11 = arith.constant 0 : index
      %13 = vector.load %arg7[%c0_10, %c0_11] : memref<2x128xf32, #tpu.memory_space<vmem>>, vector<2x128xf32>
      tpu.vector_store %arg7[%c0_10, %c0_11], %12 {strides = array<i32>} : memref<2x128xf32, #tpu.memory_space<vmem>>, vector<2x128xf32>,
    } else {
    }
    %c0 = arith.constant 0 : index
    %c0_1 = arith.constant 0 : index
    %3 = vector.load %arg7[%c0, %c0_1] : memref<2x128xf32, #tpu.memory_space<vmem>>, vector<2x128xf32>
    %c0_2 = arith.constant 0 : index
    %c0_3 = arith.constant 0 : index
    %4 = vector.load %arg1[%c0_2, %c0_3] : memref<2x10240xbf16, #tpu.memory_space<vmem>>, vector<2x10240xbf16>
    %c0_4 = arith.constant 0 : index
    %c0_5 = arith.constant 0 : index
    %5 = vector.load %arg2[%c0_4, %c0_5] : memref<10240x128xbf16, #tpu.memory_space<vmem>>, vector<10240x128xbf16>
    %cst = arith.constant dense<0.000000e+00> : vector<2x128xf32>
    %6 = tpu.matmul %4, %5, %cst {dimension_numbers = #tpu.dot_dimension_numbers<[1], [0], [0], [1], [0, 0, 1, 1], [], []>} : vector<2x10240xbf16>, vector<10240x128xbf16>, vector<2x128xf32> -> vector<2x128xf32>
    %7 = arith.addf %3, %6 : vector<2x128xf32>
    %c0_6 = arith.constant 0 : index
    %c0_7 = arith.constant 0 : index
    %8 = vector.load %arg7[%c0_6, %c0_7] : memref<2x128xf32, #tpu.memory_space<vmem>>, vector<2x128xf32>
    tpu.vector_store %arg7[%c0_6, %c0_7], %7 {strides = array<i32>} : memref<2x128xf32, #tpu.memory_space<vmem>>, vector<2x128xf32>,
    %c1_i32 = arith.constant 1 : i32
    %9 = arith.cmpi eq, %arg0, %c1_i32 : i32
    %10 = arith.extui %9 : i1 to i32
    %c0_i32_8 = arith.constant 0 : i32
    %11 = arith.cmpi ne, %10, %c0_i32_8 : i32
    scf.if %11 {
      %c0_9 = arith.constant 0 : index
      %c0_10 = arith.constant 0 : index
      %12 = vector.load %arg4[%c0_9, %c0_10] : memref<4x128xf32, #tpu.memory_space<vmem>>, vector<1x128xf32>
      %c1 = arith.constant 1 : index
      %c0_11 = arith.constant 0 : index
      %13 = vector.load %arg4[%c1, %c0_11] : memref<4x128xf32, #tpu.memory_space<vmem>>, vector<1x128xf32>
      %c2 = arith.constant 2 : index
      %c0_12 = arith.constant 0 : index
      %14 = vector.load %arg4[%c2, %c0_12] : memref<4x128xf32, #tpu.memory_space<vmem>>, vector<1x128xf32>
      %c3 = arith.constant 3 : index
      %c0_13 = arith.constant 0 : index
      %15 = vector.load %arg4[%c3, %c0_13] : memref<4x128xf32, #tpu.memory_space<vmem>>, vector<1x128xf32>
      %c0_14 = arith.constant 0 : index
      %c0_15 = arith.constant 0 : index
      %16 = vector.load %arg7[%c0_14, %c0_15] : memref<2x128xf32, #tpu.memory_space<vmem>>, vector<2x128xf32>
      %17 = vector.broadcast %12 : vector<1x128xf32> to vector<2x128xf32>
      %18 = arith.addf %16, %17 : vector<2x128xf32>
      %c0_16 = arith.constant 0 : index
      %19 = memref.load %arg5[%c0_16] : memref<3xf32, #tpu.memory_space<smem>>
      %cst_17 = arith.constant 0.000000e+00 : f32
      %20 = vector.broadcast %cst_17 : f32 to vector<2x128xf32>
      %21 = arith.cmpf ogt, %18, %20 : vector<2x128xf32>
      %22 = vector.broadcast %19 : f32 to vector<2x128xf32>
      %23 = arith.mulf %22, %18 : vector<2x128xf32>
      %24 = arith.select %21, %18, %23 : vector<2x128xi1>, vector<2x128xf32>
      %c0_18 = arith.constant 0 : index
      %c0_19 = arith.constant 0 : index
      %c0_20 = arith.constant 0 : index
      %25 = vector.load %arg3[%c0_18, %c0_19, %c0_20] : memref<3x128x128xf32, #tpu.memory_space<vmem>>, vector<1x128x128xf32>
      %26 = vector.shape_cast %25 : vector<1x128x128xf32> to vector<128x128xf32>
      %cst_21 = arith.constant dense<0.000000e+00> : vector<2x128xf32>
      %27 = tpu.matmul %24, %26, %cst_21 {dimension_numbers = #tpu.dot_dimension_numbers<[1], [0], [0], [1], [0, 0, 1, 1], [], []>} : vector<2x128xf32>, vector<128x128xf32>, vector<2x128xf32> -> vector<2x128xf32>
      %28 = vector.broadcast %13 : vector<1x128xf32> to vector<2x128xf32>
      %29 = arith.addf %27, %28 : vector<2x128xf32>
      %c1_22 = arith.constant 1 : index
      %30 = memref.load %arg5[%c1_22] : memref<3xf32, #tpu.memory_space<smem>>
      %cst_23 = arith.constant 0.000000e+00 : f32
      %31 = vector.broadcast %cst_23 : f32 to vector<2x128xf32>
      %32 = arith.cmpf ogt, %29, %31 : vector<2x128xf32>
      %33 = vector.broadcast %30 : f32 to vector<2x128xf32>
      %34 = arith.mulf %33, %29 : vector<2x128xf32>
      %35 = arith.select %32, %29, %34 : vector<2x128xi1>, vector<2x128xf32>
      %c1_24 = arith.constant 1 : index
      %c0_25 = arith.constant 0 : index
      %c0_26 = arith.constant 0 : index
      %36 = vector.load %arg3[%c1_24, %c0_25, %c0_26] : memref<3x128x128xf32, #tpu.memory_space<vmem>>, vector<1x128x128xf32>
      %37 = vector.shape_cast %36 : vector<1x128x128xf32> to vector<128x128xf32>
      %cst_27 = arith.constant dense<0.000000e+00> : vector<2x128xf32>
      %38 = tpu.matmul %35, %37, %cst_27 {dimension_numbers = #tpu.dot_dimension_numbers<[1], [0], [0], [1], [0, 0, 1, 1], [], []>} : vector<2x128xf32>, vector<128x128xf32>, vector<2x128xf32> -> vector<2x128xf32>
      %39 = vector.broadcast %14 : vector<1x128xf32> to vector<2x128xf32>
      %40 = arith.addf %38, %39 : vector<2x128xf32>
      %c2_28 = arith.constant 2 : index
      %41 = memref.load %arg5[%c2_28] : memref<3xf32, #tpu.memory_space<smem>>
      %cst_29 = arith.constant 0.000000e+00 : f32
      %42 = vector.broadcast %cst_29 : f32 to vector<2x128xf32>
      %43 = arith.cmpf ogt, %40, %42 : vector<2x128xf32>
      %44 = vector.broadcast %41 : f32 to vector<2x128xf32>
      %45 = arith.mulf %44, %40 : vector<2x128xf32>
      %46 = arith.select %43, %40, %45 : vector<2x128xi1>, vector<2x128xf32>
      %c2_30 = arith.constant 2 : index
      %c0_31 = arith.constant 0 : index
      %c0_32 = arith.constant 0 : index
      %47 = vector.load %arg3[%c2_30, %c0_31, %c0_32] : memref<3x128x128xf32, #tpu.memory_space<vmem>>, vector<1x128x128xf32>
      %48 = vector.shape_cast %47 : vector<1x128x128xf32> to vector<128x128xf32>
      %cst_33 = arith.constant dense<0.000000e+00> : vector<2x128xf32>
      %49 = tpu.matmul %46, %48, %cst_33 {dimension_numbers = #tpu.dot_dimension_numbers<[1], [0], [0], [1], [0, 0, 1, 1], [], []>} : vector<2x128xf32>, vector<128x128xf32>, vector<2x128xf32> -> vector<2x128xf32>
      %50 = vector.broadcast %15 : vector<1x128xf32> to vector<2x128xf32>
      %51 = arith.addf %49, %50 : vector<2x128xf32>
      %c0_34 = arith.constant 0 : index
      %c0_35 = arith.constant 0 : index
      %52 = vector.load %arg6[%c0_34, %c0_35] : memref<2x128xf32, #tpu.memory_space<vmem>>, vector<2x128xf32>
      tpu.vector_store %arg6[%c0_34, %c0_35], %51 {strides = array<i32>} : memref<2x128xf32, #tpu.memory_space<vmem>>, vector<2x128xf32>,
    } else {
    }
    return
  }
  func.func @transform_0(%arg0: i32) -> (i32, i32) {
    %c0_i32 = arith.constant 0 : i32
    %c0_i32_0 = arith.constant 0 : i32
    return %c0_i32, %arg0 : i32, i32
  }
  func.func @transform_1(%arg0: i32) -> (i32, i32) {
    %c0_i32 = arith.constant 0 : i32
    %c0_i32_0 = arith.constant 0 : i32
    return %arg0, %c0_i32 : i32, i32
  }
  func.func @transform_2(%arg0: i32) -> (i32, i32, i32) {
    %c0_i32 = arith.constant 0 : i32
    %c0_i32_0 = arith.constant 0 : i32
    %c0_i32_1 = arith.constant 0 : i32
    %c0_i32_2 = arith.constant 0 : i32
    return %c0_i32, %c0_i32_0, %c0_i32_1 : i32, i32, i32
  }
  func.func @transform_3(%arg0: i32) -> (i32, i32) {
    %c0_i32 = arith.constant 0 : i32
    %c0_i32_0 = arith.constant 0 : i32
    %c0_i32_1 = arith.constant 0 : i32
    return %c0_i32, %c0_i32_0 : i32, i32
  }
  func.func @transform_4(%arg0: i32) -> i32 {
    %c0_i32 = arith.constant 0 : i32
    %c0_i32_0 = arith.constant 0 : i32
    return %c0_i32 : i32
  }
  func.func @transform_5(%arg0: i32) -> (i32, i32) {
    %c0_i32 = arith.constant 0 : i32
    %c0_i32_0 = arith.constant 0 : i32
    %c0_i32_1 = arith.constant 0 : i32
    return %c0_i32, %c0_i32_0 : i32, i32
  }
}

</mosaic_0001>

<bundles_post_ra>
// kernel: net_head_forward.1
= control target key start
LH: loop header
LB: loop body
LE: loop exit
PB: predicated region body
PF: predicated region fallthrough
CT: control target
= control target key end

     0   :  { %10 = vsyncpa [#allocation4], 0  ;;  %s11794_s0 = inlined_call_operand.hbm [shape: bf16[2,20480], index: 0, kind: input, shape index: {}]   ;;  %s11795_s1 = inlined_call_operand.hbm [shape: bf16[20480,128], index: 1, kind: input, shape index: {}]   ;;  %s11796_s2 = inlined_call_operand.hbm [shape: f32[3,128,128], index: 2, kind: input, shape index: {}]   ;;  %s11797_s3 = inlined_call_operand.hbm [shape: f32[4,128], index: 3, kind: input, shape index: {}]   ;;  %s11798_s4 = inlined_call_operand.hbm [shape: f32[3], index: 4, kind: input, shape index: {}]   ;;  %s11799_s5 = inlined_call_operand.hbm [shape: f32[2,128], index: 5, kind: output, shape index: {}]  }
   0x1   :  { %12 = vsyncpa [#allocation4 + $0x1], 0 }
   0x2   :  { %13 = vsyncpa [#allocation8], 0 }
   0x3   :  { %15 = vsyncpa [#allocation8 + $0x1], 0 }
   0x4   :  { %16 = vsyncpa [#allocation11], 0 }
   0x5   :  { %17 = vsyncpa [#allocation6], 0 }
   0x6   :  { %18 = vsyncpa [#allocation5], 0  ;;  %s10731_s18 = smov 0   ;;  %s10733_s19 = smov 0  }
   0x7   :  { %s10735_s20 = smov 0   ;;  %s10737_s21 = smov 0  }
   0x8 LB: > { %s10750_s22 = sadd.s32 4294967295, %s10685_s21   ;;  %p44_p0 = scmp.ne.s32.totalorder %s10677_s19, %s10673_s18  ;;  %s10685_s21 = sphi %s10737_s21, %s11819_s21   ;;  %s10681_s20 = sphi %s10735_s20, %s11818_s20   ;;  %s10677_s19 = sphi %s10733_s19, %s11817_s19   ;;  %s10673_s18 = sphi %s10731_s18, %s11816_s18  }
   0x9   : > { %p11800_p1 = scmp.eq.s32.totalorder %s10750_s22, 0  ;;  %p8043_p2 = scmp.ge.s32.totalorder %s10685_s21, 1 }
   0xa   : > { %p165_p3 = scmp.lt.s32.totalorder %s10685_s21, 3  ;;  %s10687_s25 = smov [#allocation9]  }
   0xb   : > { %p10759_p5 = por %p11800_p1, %p44_p0  ;;  %s177_s26 = sshll.u32 %s10687_s25, 4  ;;  %s178_s26 = int_to_ptr.vmem [resolvable:$true] %s177_s26 }
   0xc   : > { %p10763_p6 = pnand %p8043_p2, %p165_p3  ;;  %s10688_s28 = smov [#allocation10]  }
   0xd   : > { %s11803_s23 = scalar_select %p10759_p5, 1, 0 }
   0xe   : > { %s11804_s24 = scalar_select %p10763_p6, 1, 0 }
   0xf   : > { %p9768_p7 = pneg %p10763_p6  ;;  %s191_s29 = sshll.u32 %s10688_s28, 4  ;;  %s192_s29 = int_to_ptr.vmem [resolvable:$true] %s191_s29 }
  0x10   : > { %s10499_s30 = scalar_lea.vmem %s178_s26, 6144  ;;  %p10507_p13 = scmp.lt.s32.totalorder %s178_s26, %s178_s26 }
  0x11   : > { %p10771_p8 = pnand %p9768_p7, %p11800_p1  ;;  %p10500_p10 = scmp.ne.s32.totalorder %s178_s26, %s10499_s30 }
  0x12   : > { %p10508_p0 = scmp.lt.s32.totalorder %s10499_s30, %s10499_s30 }
  0x13   : > { %p10490_p9 = pneg %p10771_p8 }
  0x14   : > { %p10509_p2 = por %p10508_p0, %p10507_p13 }
  0x15   : > { %p10502_p11 = pnand %p10500_p10, %p10490_p9 }
  0x17   : > { %p10503_p12 = pneg %p10502_p11 }
  0x19   : > { %p10510_p3 = pnand %p10509_p2, %p10503_p12 }
  0x1b   : > { %10513 = shalt.err (!%p10510_p3)
}
  0x1c   : > { %s10689_s6 = smov 128   ;;  %s10690_s7 = smov 8  }
  0x1d   : > { %9771 = dma.hbm_to_vmem [thread:$0]  (!%p10771_p8), %s11796_s2, 6144, %s178_s26, [#allocation8], %s10689_s6, %s10689_s6, %s10690_s7  }
  0x1e   : > { %s10525_s10 = scalar_lea.vmem %s192_s29, 64  ;;  %p10533_p4 = scmp.lt.s32.totalorder %s192_s29, %s192_s29 }
  0x1f   : > { %p10526_p7 = scmp.ne.s32.totalorder %s192_s29, %s10525_s10  ;;  %p10534_p1 = scmp.lt.s32.totalorder %s10525_s10, %s10525_s10 }
  0x21   : > { %p10528_p10 = pnand %p10526_p7, %p10490_p9  ;;  %p10535_p13 = por %p10534_p1, %p10533_p4 }
  0x23   : > { %p10529_p11 = pneg %p10528_p10 }
  0x25   : > { %p10536_p12 = pnand %p10535_p13, %p10529_p11 }
  0x27   : > { %10539 = shalt.err (!%p10536_p12)
}
  0x28   : > { %9774 = dma.hbm_to_vmem [thread:$0]  (!%p10771_p8), %s11797_s3, 64, %s192_s29, [#allocation11]  }
  0x29   : > { %s10691_s13 = smov [#allocation12]   ;;  %s10799_s16 = sadd.s32 1, %s10685_s21  }
  0x2a   : > { %9777 = dma.hbm_to_smem (!%p10771_p8), %s11798_s4, 16, %s10691_s13, [#allocation6]  }
  0x2b   : > { %s28_s17 = ssub.s32 %s10685_s21, %s10799_s16  ;;  %s31_s18 = sadd.s32 1, %s10681_s20 }
  0x2c   : > { %p29_p1 = scmp.eq.s32.totalorder %s28_s17, 0  ;;  %p38_p4 = scmp.ne.s32.totalorder %s10681_s20, %s10677_s19 }
  0x2d   : > { %p39_p9 = scmp.eq.s32.totalorder %s10685_s21, 0  ;;  %p9788_p0 = scmp.lt.s32.totalorder %s10685_s21, 2 }
  0x2e   : > { %s10809_s25 = scalar_select %p29_p1, %s10681_s20, %s31_s18  }
  0x2f   : > { %p40_p2 = por %p39_p9, %p38_p4  ;;  %s10812_s26 = sand.u32 1, %s10681_s20  }
  0x30   : > { %s9744_s27 = smul.u32 80, %s10812_s26  ;;  %s212_s11 = scalar_lea.sflag [#allocation4], %s10812_s26 }
  0x31   : > { %s8706_s28 = smul.u32 1280, %s10685_s21  ;;  %p10816_p8 = pnand %p9788_p0, %p40_p2 }
  0x32   : > { %s9745_s30 = smul.u32 5120, %s10812_s26  ;;  %s215_s9 = scalar_lea.vmem [#allocation3], %s9744_s27 }
  0x33   : > { %s10824_s8 = scalar_lea.hbm %s11794_s0, %s8706_s28  ;;  %s223_s10 = sshll.u32 %s215_s9, 4  ;;  %s224_s10 = int_to_ptr.vmem [resolvable:$true] %s223_s10 }
  0x34   : > { %s10551_s12 = scalar_lea.hbm %s10824_s8, 1280  ;;  %p10553_p7 = pneg %p10816_p8 }
  0x35   : > { %p10552_p3 = scmp.ne.s32.totalorder %s10824_s8, %s10551_s12  ;;  %s10556_s15 = scalar_lea.hbm %s11794_s0, 2560 }
  0x36   : > { %p10557_p13 = scmp.lt.s32.totalorder %s10824_s8, %s11794_s0  ;;  %p10558_p12 = scmp.lt.s32.totalorder %s10556_s15, %s10551_s12 }
  0x37   : > { %p10554_p10 = pnand %p10553_p7, %p10552_p3 }
  0x38   : > { %p10559_p1 = por %p10558_p12, %p10557_p13 }
  0x39   : > { %p10555_p11 = pneg %p10554_p10 }
  0x3b   : > { %p10560_p4 = pnand %p10559_p1, %p10555_p11 }
  0x3d   : > { %10563 = shalt.err (!%p10560_p4)
}
  0x3e   : > { %s10564_s27 = scalar_lea.vmem %s224_s10, 1280  ;;  %s10692_s28 = smov [#allocation3]  }
  0x3f   : > { %p10565_p9 = scmp.ne.s32.totalorder %s224_s10, %s10564_s27  ;;  %s10569_s6 = sshll.u32 %s10692_s28, 4  ;;  %s10570_s6 = int_to_ptr.vmem [resolvable:$false] %s10569_s6 }
  0x40   : > { %s10571_s7 = scalar_lea.vmem %s10570_s6, 2560  ;;  %p10572_p3 = scmp.lt.s32.totalorder %s224_s10, %s10570_s6 }
  0x41   : > { %p10567_p0 = pnand %p10565_p9, %p10553_p7  ;;  %p10573_p10 = scmp.lt.s32.totalorder %s10571_s7, %s10564_s27 }
  0x43   : > { %p10568_p2 = pneg %p10567_p0  ;;  %p10574_p5 = por %p10573_p10, %p10572_p3 }
  0x45   : > { %p10575_p6 = pnand %p10574_p5, %p10568_p2 }
  0x47   : > { %10578 = shalt.err (!%p10575_p6)
}
  0x48   : > { %9781 = dma.hbm_to_vmem [thread:$0]  (!%p10816_p8), %s10824_s8, 1280, %s224_s10, %s212_s11  }
  0x49   : > { %s230_s9 = sand.u32 1, %s10685_s21   ;;  %s234_s12 = scalar_lea.vmem [#allocation7], %s9745_s30 }
  0x4a   : > { %s241_s13 = sshll.u32 %s234_s12, 4  ;;  %s8707_s14 = smul.u32 81920, %s10685_s21  ;;  %s10850_s13 = int_to_ptr.vmem [resolvable:$true] %s241_s13 }
  0x4b   : > { %s10858_s27 = scalar_lea.sflag [#allocation8], %s230_s9  ;;  %s10584_s21 = scalar_lea.hbm %s11795_s1, 163840 }
  0x4c   : > { %s10856_s18 = scalar_lea.hbm %s11795_s1, %s8707_s14 }
  0x4d   : > { %s10579_s28 = scalar_lea.hbm %s10856_s18, 81920  ;;  %p10585_p13 = scmp.lt.s32.totalorder %s10856_s18, %s11795_s1 }
  0x4e   : > { %p10580_p5 = scmp.ne.s32.totalorder %s10856_s18, %s10579_s28  ;;  %p10586_p12 = scmp.lt.s32.totalorder %s10584_s21, %s10579_s28 }
  0x50   : > { %p10582_p6 = pnand %p10580_p5, %p10553_p7  ;;  %p10587_p1 = por %p10586_p12, %p10585_p13 }
  0x52   : > { %p10583_p11 = pneg %p10582_p6 }
  0x54   : > { %p10588_p4 = pnand %p10587_p1, %p10583_p11 }
  0x56   : > { %10591 = shalt.err (!%p10588_p4)
}
  0x57   : > { %s10592_s11 = scalar_lea.vmem %s10850_s13, 81920  ;;  %s10693_s6 = smov [#allocation7]  }
  0x58   : > { %p10593_p9 = scmp.ne.s32.totalorder %s10850_s13, %s10592_s11  ;;  %s10597_s7 = sshll.u32 %s10693_s6, 4  ;;  %s10598_s7 = int_to_ptr.vmem [resolvable:$false] %s10597_s7 }
  0x59   : > { %s10599_s9 = scalar_lea.vmem %s10598_s7, 163840  ;;  %p10600_p3 = scmp.lt.s32.totalorder %s10850_s13, %s10598_s7 }
  0x5a   : > { %p10595_p0 = pnand %p10593_p9, %p10553_p7  ;;  %p10601_p10 = scmp.lt.s32.totalorder %s10599_s9, %s10592_s11 }
  0x5c   : > { %p10596_p2 = pneg %p10595_p0  ;;  %p10602_p5 = por %p10601_p10, %p10600_p3 }
  0x5e   : > { %p10603_p6 = pnand %p10602_p5, %p10596_p2 }
  0x60   : > { %10606 = shalt.err (!%p10603_p6)
}
  0x61   : > { %s10694_s12 = smov 64   ;;  %s10695_s14 = smov 4  }
  0x62   : > { %9784 = dma.hbm_to_vmem [thread:$0]  (!%p10816_p8), %s10856_s18, 81920, %s10850_s13, %s10858_s27, %s10694_s12, %s10694_s12, %s10695_s14  }
  0x63   : > { %p11807_p7 = scmp.ne.s32.totalorder %s11804_s24, 0 }
  0x64   : > { %s255_s15 = sand.u32 (!%p11807_p7), 1, %s10677_s19   ;;  %p11808_p11 = scmp.ne.s32.totalorder (!%p11807_p7), %s11803_s23, 0 }
  0x65   : > { %253 = sbr.rel (%p11807_p7) target bundleno = 1618 (0x652), region = 40  ;;  %s256_s28 = scalar_lea.sflag (!%p11807_p7), [#allocation4], %s255_s15 }
  0x66   : > { %s9746_s17 = smul.u32 (!%p11807_p7), 80, %s255_s15 }
  0x68   : > { %s10886_s26 = scalar_lea.vmem (!%p11807_p7), [#allocation3], %s9746_s17 }
  0x6a   : > { %10648 = dma.done.wait (%p11808_p11), %s256_s28, 1280  }
  0x6b   : > { %10650 = vsyncadd (%p11808_p11), %s256_s28, 4294966016  ;;  %s264_s30 = sand.u32 1, %s10750_s22   ;;  %s9747_s29 = smul.u32 5120, %s255_s15 }
  0x6c   : > { %s265_s13 = scalar_lea.sflag [#allocation8], %s264_s30 }
  0x6d   : > { %s10893_s18 = scalar_lea.vmem [#allocation7], %s9747_s29 }
  0x6e   : > { %10652 = dma.done.wait (%p11808_p11), %s265_s13, 81920  }
  0x6f   : > { %10654 = vsyncadd (%p11808_p11), %s265_s13, 4294885376  ;;  %p11809_p8 = scmp.eq.s32.totalorder %s10750_s22, 0 }
  0x71   : > { %10656 = dma.done.wait (%p11809_p8), [#allocation8], 6144   ;;  %p11810_p13 = pmov %p11809_p8 }
  0x72   : > { %p11811_p12 = pmov %p11809_p8 }
  0x73   : > { %10658 = vsyncadd (%p11810_p13), [#allocation8], 4294961152 }
  0x74   : > { %10660 = dma.done.wait (%p11811_p12), [#allocation11], 64   ;;  %p11812_p1 = pmov %p11809_p8 }
  0x76   : > { %10662 = vsyncadd (%p11812_p1), [#allocation11], 4294967232  ;;  %p11813_p4 = pmov %p11812_p1 }
  0x77   : > { %p11814_p9 = pmov %p11812_p1 }
  0x78   : > { %10664 = dma.done.wait (%p11813_p4), [#allocation6], 16  }
  0x79   : > { %10666 = vsyncadd (%p11814_p9), [#allocation6], 4294967280 }
  0x7a   : > { %285 = sfence }
  0x7b   : > { %p11815_p0 = scmp.ne.s32.totalorder %s10750_s22, 0 }
  0x7d   : > { %314 = sbr.rel (%p11815_p0) target bundleno = 132 (0x84), region = 64 }
  0x82   : > { %v10696_v0 = vmov 0.0  }
  0x83   : > { %315 = vst [vmem:[#allocation2] sm:$0x3] %v10696_v0 }
  0x84 PF: > { %v9838_v1 = vld [vmem:[%s10893_s18 + $0x78] sm:$0xff]   ;;  %v9842_v5 = vld [vmem:[%s10893_s18 + $0x70] sm:$0xff]   ;;  %v9846_v9 = vld [vmem:[%s10893_s18 + $0x68] sm:$0xff]   ;;  %v1621_v29 = vlaneseq  ;;  %v10697_v37 = vmov 1966171168   ;;  %p8695_p2 = scmp.ne.s32.totalorder %s10750_s22, 1 }
  0x85   : > { %v9839_v2 = vld [vmem:[%s10893_s18 + $0xf8] sm:$0xff]   ;;  %8708 = vmatprep.subr.bf16.mxu0 %v9838_v1  ;;  %v9843_v6 = vld [vmem:[%s10893_s18 + $0xf0] sm:$0xff]   ;;  %v9847_v10 = vld [vmem:[%s10893_s18 + $0xe8] sm:$0xff]   ;;  %v1619_v38 = vunpack.c.l.s4 %v10697_v37  ;;  %s11729_s23 = sld [smem:[#allocation12]] (!%p8695_p2) }
  0x86   : > { %v9840_v3 = vld [vmem:[%s10893_s18 + $0x38] sm:$0xff]   ;;  %8730 = vmatprep.subr.bf16.mxu1 %v9839_v2  ;;  %v9844_v7 = vld [vmem:[%s10893_s18 + $0x30] sm:$0xff]   ;;  %v9848_v11 = vld [vmem:[%s10893_s18 + $0x28] sm:$0xff]   ;;  %v1622_v34 = vshrl.u32 %v1621_v29, 7  ;;  %s8698_s24 = sld [smem:[#allocation12 + $0x1]] (!%p8695_p2) }
  0x87   : > { %v9841_v4 = vld [vmem:[%s10893_s18 + $0xb8] sm:$0xff]   ;;  %8709 = vmatpush3.bf16.msra.mxu0 %v9840_v3  ;;  %v9845_v8 = vld [vmem:[%s10893_s18 + $0xb0] sm:$0xff]   ;;  %v9849_v12 = vld [vmem:[%s10893_s18 + $0xa8] sm:$0xff]   ;;  %v1620_v41 = vunpack.c.0.s8 %v1619_v38  ;;  %s8700_s27 = sld [smem:[#allocation12 + $0x2]] (!%p8695_p2) }
  0x88   : > { %8731 = vmatpush3.bf16.msra.mxu1 %v9841_v4  ;;  %8710 = vmatprep.subr.bf16.mxu0 %v9842_v5  ;;  %v9850_v13 = vld [vmem:[%s10893_s18 + $0x60] sm:$0xff]   ;;  %v9854_v17 = vld [vmem:[%s10893_s18 + $0x58] sm:$0xff]   ;;  %v9858_v21 = vld [vmem:[%s10893_s18 + $0x50] sm:$0xff]  }
  0x89   : > { %8732 = vmatprep.subr.bf16.mxu1 %v9843_v6  ;;  %v9851_v14 = vld [vmem:[%s10893_s18 + $0xe0] sm:$0xff]   ;;  %v9855_v18 = vld [vmem:[%s10893_s18 + $0xd8] sm:$0xff]   ;;  %v9859_v22 = vld [vmem:[%s10893_s18 + $0xd0] sm:$0xff]   ;;  %v10948_v42 = vsub.s32 %v1620_v41, %v1622_v34 }
  0x8a   : > { %v9852_v15 = vld [vmem:[%s10893_s18 + $0x20] sm:$0xff]   ;;  %v9856_v19 = vld [vmem:[%s10893_s18 + $0x18] sm:$0xff]   ;;  %v9860_v23 = vld [vmem:[%s10893_s18 + $0x10] sm:$0xff]  }
  0x8b   : > { %8711 = vmatpush3.bf16.msra.mxu0 %v9844_v7  ;;  %v9853_v16 = vld [vmem:[%s10893_s18 + $0xa0] sm:$0xff]   ;;  %v9857_v20 = vld [vmem:[%s10893_s18 + $0x98] sm:$0xff]   ;;  %v9861_v24 = vld [vmem:[%s10893_s18 + $0x90] sm:$0xff]  }
  0x8c   : > { %8733 = vmatpush3.bf16.msra.mxu1 %v9845_v8  ;;  %8712 = vmatprep.subr.bf16.mxu0 %v9846_v9  ;;  %v9862_v25 = vld [vmem:[%s10893_s18 + $0x48] sm:$0xff]   ;;  %v9866_v30 = vld [vmem:[%s10893_s18 + $0x40] sm:$0xff]   ;;  %v9871_v36 = vld [vmem:[%s10893_s18 + $0x178] sm:$0xff]  }
  0x8d   : > { %8734 = vmatprep.subr.bf16.mxu1 %v9847_v10  ;;  %v9863_v26 = vld [vmem:[%s10893_s18 + $0xc8] sm:$0xff]   ;;  %v9867_v31 = vld [vmem:[%s10893_s18 + $0xc0] sm:$0xff]   ;;  %v9872_v39 = vld [vmem:[%s10893_s18 + $0x1f8] sm:$0xff]  }
  0x8e   : > { %v9864_v27 = vld [vmem:[%s10893_s18 + $0x8] sm:$0xff]   ;;  %v9868_v32 = vld [vmem:[%s10893_s18] sm:$0xff]   ;;  %v9873_v48 = vld [vmem:[%s10893_s18 + $0x138] sm:$0xff]  }
  0x8f   : > { %8713 = vmatpush3.bf16.msra.mxu0 %v9848_v11  ;;  %v9865_v28 = vld [vmem:[%s10893_s18 + $0x88] sm:$0xff]   ;;  %v9869_v33 = vld [vmem:[%s10893_s18 + $0x80] sm:$0xff]   ;;  %v9874_v50 = vld [vmem:[%s10893_s18 + $0x1b8] sm:$0xff]  }
  0x90   : > { %8735 = vmatpush3.bf16.msra.mxu1 %v9849_v12  ;;  %8714 = vmatprep.subr.bf16.mxu0 %v9850_v13  ;;  %v317_v35 = vld [vmem:[%s10886_s26] sm:$0xff]  ;;  %v9879_v59 = vld [vmem:[%s10893_s18 + $0x168] sm:$0xff]   ;;  %v9887_v3 = vld [vmem:[%s10893_s18 + $0x158] sm:$0xff]  }
  0x91   : > { %8736 = vmatprep.subr.bf16.mxu1 %v9851_v14  ;;  %v1617_v40 = vcombine.high %v317_v35, %v317_v35  ;;  %v1624_v43 = vrot.slane %v317_v35, %v10948_v42  ;;  %v9875_v53 = vld [vmem:[%s10893_s18 + $0x170] sm:$0xff]   ;;  %v9880_v60 = vld [vmem:[%s10893_s18 + $0x1e8] sm:$0xff]   ;;  %v9883_v63 = vld [vmem:[%s10893_s18 + $0x160] sm:$0xff]  }
  0x92   : > { %v9876_v55 = vld [vmem:[%s10893_s18 + $0x1f0] sm:$0xff]   ;;  %v9881_v61 = vld [vmem:[%s10893_s18 + $0x128] sm:$0xff]   ;;  %v9884_v0 = vld [vmem:[%s10893_s18 + $0x1e0] sm:$0xff]  }
  0x93   : > { %8715 = vmatpush3.bf16.msra.mxu0 %v9852_v15  ;;  %v10952_v44 = vrot.slane %v1617_v40, %v10948_v42  ;;  %v1632_v45 = vcombine.high %v1624_v43, %v1624_v43  ;;  %v1640_v46 = vrot.slane %v1624_v43, %v10948_v42  ;;  %v9877_v56 = vld [vmem:[%s10893_s18 + $0x130] sm:$0xff]   ;;  %v9882_v62 = vld [vmem:[%s10893_s18 + $0x1a8] sm:$0xff]   ;;  %v9885_v1 = vld [vmem:[%s10893_s18 + $0x120] sm:$0xff]  }
  0x94   : > { %8737 = vmatpush3.bf16.msra.mxu1 %v9853_v16  ;;  %8716 = vmatprep.subr.bf16.mxu0 %v9854_v17  ;;  %v9878_v58 = vld [vmem:[%s10893_s18 + $0x1b0] sm:$0xff]   ;;  %v9886_v2 = vld [vmem:[%s10893_s18 + $0x1a0] sm:$0xff]   ;;  %v9888_v4 = vld [vmem:[%s10893_s18 + $0x1d8] sm:$0xff]  }
  0x95   : > { %8738 = vmatprep.subr.bf16.mxu1 %v9855_v18  ;;  %v1633_v47 = vcombine.high %v10952_v44, %v10952_v44  ;;  %v1654_v49 = vrot.slane %v1632_v45, %v10948_v42  ;;  %v1662_v52 = vcombine.high %v1640_v46, %v1640_v46  ;;  %v9889_v5 = vld [vmem:[%s10893_s18 + $0x118] sm:$0xff]   ;;  %v9891_v7 = vld [vmem:[%s10893_s18 + $0x150] sm:$0xff]   ;;  %v9895_v11 = vld [vmem:[%s10893_s18 + $0x148] sm:$0xff]  }
  0x96   : > { %v9890_v6 = vld [vmem:[%s10893_s18 + $0x198] sm:$0xff]   ;;  %v9892_v8 = vld [vmem:[%s10893_s18 + $0x1d0] sm:$0xff]   ;;  %v9896_v12 = vld [vmem:[%s10893_s18 + $0x1c8] sm:$0xff]  }
  0x97   : > { %8717 = vmatpush3.bf16.msra.mxu0 %v9856_v19  ;;  %v1661_v51 = vrot.slane %v1633_v47, %v10948_v42  ;;  %6059 = vmatprep.mubr.bf16.mxu0 %v1654_v49  ;;  %v1664_v54 = vcombine.high %v1654_v49, %v1654_v49  ;;  %v9893_v9 = vld [vmem:[%s10893_s18 + $0x110] sm:$0xff]   ;;  %v9897_v13 = vld [vmem:[%s10893_s18 + $0x108] sm:$0xff]   ;;  %v9899_v15 = vld [vmem:[%s10893_s18 + $0x140] sm:$0xff]   ;;  %v1647_v19 = vrot.slane %v10952_v44, %v10948_v42 }
  0x98   : > { %8739 = vmatpush3.bf16.msra.mxu1 %v9857_v20  ;;  %8718 = vmatprep.subr.bf16.mxu0 %v9858_v21  ;;  %v9894_v10 = vld [vmem:[%s10893_s18 + $0x190] sm:$0xff]   ;;  %v9898_v14 = vld [vmem:[%s10893_s18 + $0x188] sm:$0xff]   ;;  %v9900_v16 = vld [vmem:[%s10893_s18 + $0x1c0] sm:$0xff]  }
  0x99   : > { %8740 = vmatprep.subr.bf16.mxu1 %v9859_v22  ;;  %v1665_v57 = vcombine.high %v1661_v51, %v1661_v51  ;;  %6099 = vmatprep.mubr.bf16.mxu1 %v1664_v54  ;;  %v9901_v17 = vld [vmem:[%s10893_s18 + $0x100] sm:$0xff]   ;;  %v9903_v20 = vld [vmem:[%s10893_s18 + $0x278] sm:$0xff]   ;;  %v9911_v29 = vld [vmem:[%s10893_s18 + $0x268] sm:$0xff]  }
  0x9a   : > { %v9902_v18 = vld [vmem:[%s10893_s18 + $0x180] sm:$0xff]   ;;  %v9904_v21 = vld [vmem:[%s10893_s18 + $0x2f8] sm:$0xff]   ;;  %v9923_v41 = vld [vmem:[%s10893_s18 + $0x250] sm:$0xff]  }
  0x9b   : > { %8719 = vmatpush3.bf16.msra.mxu0 %v9860_v23  ;;  %v9905_v22 = vld [vmem:[%s10893_s18 + $0x238] sm:$0xff]   ;;  %v9916_v34 = vld [vmem:[%s10893_s18 + $0x2e0] sm:$0xff]   ;;  %v9924_v43 = vld [vmem:[%s10893_s18 + $0x2d0] sm:$0xff]  }
  0x9c   : > { %8741 = vmatpush3.bf16.msra.mxu1 %v9861_v24  ;;  %8720 = vmatprep.subr.bf16.mxu0 %v9862_v25  ;;  %v9906_v23 = vld [vmem:[%s10893_s18 + $0x2b8] sm:$0xff]   ;;  %v1663_v24 = vcombine.high %v1647_v19, %v1647_v19  ;;  %v9907_v25 = vld [vmem:[%s10893_s18 + $0x270] sm:$0xff]   ;;  %v9917_v35 = vld [vmem:[%s10893_s18 + $0x220] sm:$0xff]  }
  0x9d   : > { %8742 = vmatprep.subr.bf16.mxu1 %v9863_v26  ;;  %v9908_v26 = vld [vmem:[%s10893_s18 + $0x2f0] sm:$0xff]   ;;  %v9919_v37 = vld [vmem:[%s10893_s18 + $0x258] sm:$0xff]  }
  0x9e   : > { %v9920_v38 = vld [vmem:[%s10893_s18 + $0x2d8] sm:$0xff]   ;;  %v9925_v44 = vld [vmem:[%s10893_s18 + $0x210] sm:$0xff]  }
  0x9f   : > { %8721 = vmatpush3.bf16.msra.mxu0 %v9864_v27  ;;  %v9909_v27 = vld [vmem:[%s10893_s18 + $0x230] sm:$0xff]   ;;  %v9922_v40 = vld [vmem:[%s10893_s18 + $0x298] sm:$0xff]  }
  0xa0   : > { %8743 = vmatpush3.bf16.msra.mxu1 %v9865_v28  ;;  %8722 = vmatprep.subr.bf16.mxu0 %v9866_v30  ;;  %v9910_v28 = vld [vmem:[%s10893_s18 + $0x2b0] sm:$0xff]   ;;  %v9912_v30 = vld [vmem:[%s10893_s18 + $0x2e8] sm:$0xff]  }
  0xa1   : > { %8744 = vmatprep.subr.bf16.mxu1 %v9867_v31  ;;  %v9913_v31 = vld [vmem:[%s10893_s18 + $0x228] sm:$0xff]   ;;  %v9926_v45 = vld [vmem:[%s10893_s18 + $0x290] sm:$0xff]  }
  0xa2   : > { %v318_v47 = vld [vmem:[%s10886_s26 + $0x8] sm:$0xff] }
  0xa3   : > { %8723 = vmatpush3.bf16.msra.mxu0 %v9868_v32  ;;  %v9914_v32 = vld [vmem:[%s10893_s18 + $0x2a8] sm:$0xff]   ;;  %v1673_v49 = vrot.slane %v318_v47, %v10948_v42 }
  0xa4   : > { %8745 = vmatpush3.bf16.msra.mxu1 %v9869_v33  ;;  %8752 = vmatprep.subr.bf16.mxu0 %v9871_v36  ;;  %v9915_v33 = vld [vmem:[%s10893_s18 + $0x260] sm:$0xff]  }
  0xa5   : > { %8774 = vmatprep.subr.bf16.mxu1 %v9872_v39  ;;  %v9918_v36 = vld [vmem:[%s10893_s18 + $0x2a0] sm:$0xff]   ;;  %v9921_v39 = vld [vmem:[%s10893_s18 + $0x218] sm:$0xff]  }
  0xa6   : > { %6060 = vmatmul.mubr.bf16.vlgmr.msra.gmra.mxu0 %v1640_v46  ;;  %v9927_v46 = vld [vmem:[%s10893_s18 + $0x248] sm:$0xff]  }
  0xa7   : > { %8753 = vmatpush3.bf16.msra.mxu0 %v9873_v48  ;;  %6100 = vmatmul.mubr.bf16.vlgmr.msra.gmra.mxu1 %v1662_v52  ;;  %v9928_v48 = vld [vmem:[%s10893_s18 + $0x2c8] sm:$0xff]  }
  0xa8   : > { %8754 = vmatprep.subr.bf16.mxu0 %v9875_v53  ;;  %8775 = vmatpush3.bf16.msra.mxu1 %v9874_v50  ;;  %v1666_v50 = vcombine.high %v318_v47, %v318_v47  ;;  %v9930_v52 = vld [vmem:[%s10893_s18 + $0x288] sm:$0xff]   ;;  %v1681_v53 = vcombine.high %v1673_v49, %v1673_v49 }
  0xa9   : > { %6139 = vmatprep.mubr.bf16.mxu0 %v1661_v51  ;;  %8776 = vmatprep.subr.bf16.mxu1 %v9876_v55  ;;  %v9929_v51 = vld [vmem:[%s10893_s18 + $0x208] sm:$0xff]   ;;  %v9931_v55 = vld [vmem:[%s10893_s18 + $0x240] sm:$0xff]  }
  0xaa   : > { %6179 = vmatprep.mubr.bf16.mxu1 %v1665_v57  ;;  %v11022_v54 = vrot.slane %v1666_v50, %v10948_v42  ;;  %v1703_v57 = vrot.slane %v1681_v53, %v10948_v42  ;;  %v9978_v47 = vld [vmem:[%s10893_s18 + $0x428] sm:$0xff]   ;;  %v9981_v50 = vld [vmem:[%s10893_s18 + $0x4e0] sm:$0xff]   ;;  %v9984_v53 = vld [vmem:[%s10893_s18 + $0x458] sm:$0xff]  }
  0xab   : > { %8755 = vmatpush3.bf16.msra.mxu0 %v9877_v56  ;;  %v9932_v56 = vld [vmem:[%s10893_s18 + $0x2c0] sm:$0xff]  }
  0xac   : > { %8756 = vmatprep.subr.bf16.mxu0 %v9879_v59  ;;  %8777 = vmatpush3.bf16.msra.mxu1 %v9878_v58  ;;  %v1682_v58 = vcombine.high %v11022_v54, %v11022_v54  ;;  %v9933_v59 = vld [vmem:[%s10893_s18 + $0x200] sm:$0xff]  }
  0xad   : > { %8778 = vmatprep.subr.bf16.mxu1 %v9880_v60  ;;  %v9934_v60 = vld [vmem:[%s10893_s18 + $0x280] sm:$0xff]  }
  0xaf   : > { %8757 = vmatpush3.bf16.msra.mxu0 %v9881_v61  ;;  %v1713_v61 = vcombine.high %v1703_v57, %v1703_v57 }
  0xb0   : > { %8758 = vmatprep.subr.bf16.mxu0 %v9883_v63  ;;  %8779 = vmatpush3.bf16.msra.mxu1 %v9882_v62  ;;  %v1689_v62 = vrot.slane %v1673_v49, %v10948_v42  ;;  %v9935_v63 = vld [vmem:[%s10893_s18 + $0x378] sm:$0xff]   ;;  %v9980_v49 = vld [vmem:[%s10893_s18 + $0x460] sm:$0xff]  }
  0xb1   : > { %8780 = vmatprep.subr.bf16.mxu1 %v9884_v0  ;;  %v9936_v0 = vld [vmem:[%s10893_s18 + $0x3f8] sm:$0xff]  }
  0xb3   : > { %8759 = vmatpush3.bf16.msra.mxu0 %v9885_v1  ;;  %v1710_v1 = vrot.slane %v1682_v58, %v10948_v42  ;;  %v9989_v58 = vld [vmem:[%s10893_s18 + $0x4d0] sm:$0xff]  }
  0xb4   : > { %8760 = vmatprep.subr.bf16.mxu0 %v9887_v3  ;;  %8781 = vmatpush3.bf16.msra.mxu1 %v9886_v2  ;;  %v9937_v2 = vld [vmem:[%s10893_s18 + $0x338] sm:$0xff]  }
  0xb5   : > { %8782 = vmatprep.subr.bf16.mxu1 %v9888_v4  ;;  %v9938_v3 = vld [vmem:[%s10893_s18 + $0x3b8] sm:$0xff]   ;;  %v1711_v4 = vcombine.high %v1689_v62, %v1689_v62 }
  0xb7   : > { %8761 = vmatpush3.bf16.msra.mxu0 %v9889_v5  ;;  %v9939_v5 = vld [vmem:[%s10893_s18 + $0x370] sm:$0xff]  }
  0xb8   : > { %8762 = vmatprep.subr.bf16.mxu0 %v9891_v7  ;;  %8783 = vmatpush3.bf16.msra.mxu1 %v9890_v6  ;;  %v9940_v6 = vld [vmem:[%s10893_s18 + $0x3f0] sm:$0xff]   ;;  %v1714_v7 = vcombine.high %v1710_v1, %v1710_v1 }
  0xb9   : > { %8784 = vmatprep.subr.bf16.mxu1 %v9892_v8  ;;  %v9941_v8 = vld [vmem:[%s10893_s18 + $0x330] sm:$0xff]  }
  0xbb   : > { %8763 = vmatpush3.bf16.msra.mxu0 %v9893_v9  ;;  %v9942_v9 = vld [vmem:[%s10893_s18 + $0x3b0] sm:$0xff]  }
  0xbc   : > { %8764 = vmatprep.subr.bf16.mxu0 %v9895_v11  ;;  %8785 = vmatpush3.bf16.msra.mxu1 %v9894_v10  ;;  %v9943_v10 = vld [vmem:[%s10893_s18 + $0x368] sm:$0xff]  }
  0xbd   : > { %8786 = vmatprep.subr.bf16.mxu1 %v9896_v12  ;;  %v9944_v11 = vld [vmem:[%s10893_s18 + $0x3e8] sm:$0xff]  }
  0xbe   : > { %v9945_v12 = vld [vmem:[%s10893_s18 + $0x328] sm:$0xff]  }
  0xbf   : > { %8765 = vmatpush3.bf16.msra.mxu0 %v9897_v13  ;;  %v9946_v13 = vld [vmem:[%s10893_s18 + $0x3a8] sm:$0xff]  }
  0xc0   : > { %8766 = vmatprep.subr.bf16.mxu0 %v9899_v15  ;;  %8787 = vmatpush3.bf16.msra.mxu1 %v9898_v14  ;;  %v9947_v14 = vld [vmem:[%s10893_s18 + $0x360] sm:$0xff]  }
  0xc1   : > { %8788 = vmatprep.subr.bf16.mxu1 %v9900_v16  ;;  %v9948_v15 = vld [vmem:[%s10893_s18 + $0x3e0] sm:$0xff]  }
  0xc2   : > { %v9949_v16 = vld [vmem:[%s10893_s18 + $0x320] sm:$0xff]  }
  0xc3   : > { %8767 = vmatpush3.bf16.msra.mxu0 %v9901_v17  ;;  %v9950_v17 = vld [vmem:[%s10893_s18 + $0x3a0] sm:$0xff]  }
  0xc4   : > { %8796 = vmatprep.subr.bf16.mxu0 %v9903_v20  ;;  %8789 = vmatpush3.bf16.msra.mxu1 %v9902_v18  ;;  %v9951_v18 = vld [vmem:[%s10893_s18 + $0x358] sm:$0xff]  }
  0xc5   : > { %8818 = vmatprep.subr.bf16.mxu1 %v9904_v21  ;;  %v9953_v20 = vld [vmem:[%s10893_s18 + $0x318] sm:$0xff]  }
  0xc6   : > { %6140 = vmatmul.mubr.bf16.vlgmr.msra.gmra.mxu0 %v1647_v19  ;;  %v9952_v19 = vld [vmem:[%s10893_s18 + $0x3d8] sm:$0xff]  }
  0xc7   : > { %8797 = vmatpush3.bf16.msra.mxu0 %v9905_v22  ;;  %6180 = vmatmul.mubr.bf16.vlgmr.msra.gmra.mxu1 %v1663_v24  ;;  %v9954_v21 = vld [vmem:[%s10893_s18 + $0x398] sm:$0xff]   ;;  %v9955_v22 = vld [vmem:[%s10893_s18 + $0x350] sm:$0xff]  }
  0xc8   : > { %8798 = vmatprep.subr.bf16.mxu0 %v9907_v25  ;;  %8819 = vmatpush3.bf16.msra.mxu1 %v9906_v23  ;;  %v9956_v23 = vld [vmem:[%s10893_s18 + $0x3d0] sm:$0xff]  }
  0xc9   : > { %8820 = vmatprep.subr.bf16.mxu1 %v9908_v26  ;;  %6219 = vmatprep.mubr.bf16.mxu0 %v1703_v57  ;;  %v9957_v24 = vld [vmem:[%s10893_s18 + $0x310] sm:$0xff]   ;;  %v9959_v26 = vld [vmem:[%s10893_s18 + $0x348] sm:$0xff]  }
  0xca   : > { %6259 = vmatprep.mubr.bf16.mxu1 %v1713_v61  ;;  %v9958_v25 = vld [vmem:[%s10893_s18 + $0x390] sm:$0xff]   ;;  %v9992_v61 = vld [vmem:[%s10893_s18 + $0x448] sm:$0xff]  }
  0xcb   : > { %8799 = vmatpush3.bf16.msra.mxu0 %v9909_v27  ;;  %v9960_v27 = vld [vmem:[%s10893_s18 + $0x3c8] sm:$0xff]   ;;  %v9988_v57 = vld [vmem:[%s10893_s18 + $0x450] sm:$0xff]  }
  0xcc   : > { %8800 = vmatprep.subr.bf16.mxu0 %v9911_v29  ;;  %8821 = vmatpush3.bf16.msra.mxu1 %v9910_v28  ;;  %v9961_v28 = vld [vmem:[%s10893_s18 + $0x308] sm:$0xff]  }
  0xcd   : > { %8822 = vmatprep.subr.bf16.mxu1 %v9912_v30  ;;  %v9962_v29 = vld [vmem:[%s10893_s18 + $0x388] sm:$0xff]   ;;  %v9963_v30 = vld [vmem:[%s10893_s18 + $0x340] sm:$0xff]  }
  0xcf   : > { %8801 = vmatpush3.bf16.msra.mxu0 %v9913_v31  ;;  %v9964_v31 = vld [vmem:[%s10893_s18 + $0x3c0] sm:$0xff]  }
  0xd0   : > { %8802 = vmatprep.subr.bf16.mxu0 %v9915_v33  ;;  %8823 = vmatpush3.bf16.msra.mxu1 %v9914_v32  ;;  %v9965_v32 = vld [vmem:[%s10893_s18 + $0x300] sm:$0xff]  }
  0xd1   : > { %8824 = vmatprep.subr.bf16.mxu1 %v9916_v34  ;;  %v9966_v33 = vld [vmem:[%s10893_s18 + $0x380] sm:$0xff]   ;;  %v1696_v34 = vrot.slane %v11022_v54, %v10948_v42  ;;  %v9985_v54 = vld [vmem:[%s10893_s18 + $0x4d8] sm:$0xff]  }
  0xd3   : > { %8803 = vmatpush3.bf16.msra.mxu0 %v9917_v35  ;;  %v9968_v35 = vld [vmem:[%s10893_s18 + $0x478] sm:$0xff]  }
  0xd4   : > { %8804 = vmatprep.subr.bf16.mxu0 %v9919_v37  ;;  %8825 = vmatpush3.bf16.msra.mxu1 %v9918_v36  ;;  %v9969_v36 = vld [vmem:[%s10893_s18 + $0x4f8] sm:$0xff]  }
  0xd5   : > { %8826 = vmatprep.subr.bf16.mxu1 %v9920_v38  ;;  %v9970_v37 = vld [vmem:[%s10893_s18 + $0x438] sm:$0xff]  }
  0xd6   : > { %v9971_v38 = vld [vmem:[%s10893_s18 + $0x4b8] sm:$0xff]  }
  0xd7   : > { %8805 = vmatpush3.bf16.msra.mxu0 %v9921_v39  ;;  %v1712_v39 = vcombine.high %v1696_v34, %v1696_v34 }
  0xd8   : > { %8806 = vmatprep.subr.bf16.mxu0 %v9923_v41  ;;  %8827 = vmatpush3.bf16.msra.mxu1 %v9922_v40  ;;  %v9972_v40 = vld [vmem:[%s10893_s18 + $0x470] sm:$0xff]  }
  0xd9   : > { %8828 = vmatprep.subr.bf16.mxu1 %v9924_v43  ;;  %v9973_v41 = vld [vmem:[%s10893_s18 + $0x4f0] sm:$0xff]  }
  0xda   : > { %v9974_v43 = vld [vmem:[%s10893_s18 + $0x430] sm:$0xff]  }
  0xdb   : > { %8807 = vmatpush3.bf16.msra.mxu0 %v9925_v44  ;;  %v9975_v44 = vld [vmem:[%s10893_s18 + $0x4b0] sm:$0xff]  }
  0xdc   : > { %8808 = vmatprep.subr.bf16.mxu0 %v9927_v46  ;;  %8829 = vmatpush3.bf16.msra.mxu1 %v9926_v45  ;;  %v9976_v45 = vld [vmem:[%s10893_s18 + $0x468] sm:$0xff]  }
  0xdd   : > { %8830 = vmatprep.subr.bf16.mxu1 %v9928_v48  ;;  %v9977_v46 = vld [vmem:[%s10893_s18 + $0x4e8] sm:$0xff]  }
  0xde   : > { %v9979_v48 = vld [vmem:[%s10893_s18 + $0x4a8] sm:$0xff]  }
  0xdf   : > { %8809 = vmatpush3.bf16.msra.mxu0 %v9929_v51  ;;  %v9982_v51 = vld [vmem:[%s10893_s18 + $0x420] sm:$0xff]  }
  0xe0   : > { %8810 = vmatprep.subr.bf16.mxu0 %v9931_v55  ;;  %8831 = vmatpush3.bf16.msra.mxu1 %v9930_v52  ;;  %v9983_v52 = vld [vmem:[%s10893_s18 + $0x4a0] sm:$0xff]   ;;  %v9986_v55 = vld [vmem:[%s10893_s18 + $0x418] sm:$0xff]  }
  0xe1   : > { %8832 = vmatprep.subr.bf16.mxu1 %v9932_v56  ;;  %v9987_v56 = vld [vmem:[%s10893_s18 + $0x498] sm:$0xff]  }
  0xe3   : > { %8811 = vmatpush3.bf16.msra.mxu0 %v9933_v59  ;;  %v9990_v59 = vld [vmem:[%s10893_s18 + $0x410] sm:$0xff]  }
  0xe4   : > { %8840 = vmatprep.subr.bf16.mxu0 %v9935_v63  ;;  %8833 = vmatpush3.bf16.msra.mxu1 %v9934_v60  ;;  %v9991_v60 = vld [vmem:[%s10893_s18 + $0x490] sm:$0xff]   ;;  %v9993_v63 = vld [vmem:[%s10893_s18 + $0x4c8] sm:$0xff]  }
  0xe5   : > { %8862 = vmatprep.subr.bf16.mxu1 %v9936_v0 }
  0xe6   : > { %6220 = vmatmul.mubr.bf16.vlgmr.msra.gmra.mxu0 %v1689_v62  ;;  %v319_v62 = vld [vmem:[%s10886_s26 + $0x10] sm:$0xff] }
  0xe7   : > { %8841 = vmatpush3.bf16.msra.mxu0 %v9937_v2  ;;  %6299 = vmatprep.mubr.bf16.mxu0 %v1710_v1  ;;  %v1722_v0 = vrot.slane %v319_v62, %v10948_v42  ;;  %v1715_v1 = vcombine.high %v319_v62, %v319_v62  ;;  %v9994_v2 = vld [vmem:[%s10893_s18 + $0x408] sm:$0xff]  }
  0xe8   : > { %6260 = vmatmul.mubr.bf16.vlgmr.msra.gmra.mxu1 %v1711_v4  ;;  %8842 = vmatprep.subr.bf16.mxu0 %v9939_v5  ;;  %v10043_v62 = vld [vmem:[%s10893_s18 + $0x628] sm:$0xff]  }
  0xe9   : > { %8863 = vmatpush3.bf16.msra.mxu1 %v9938_v3  ;;  %6339 = vmatprep.mubr.bf16.mxu1 %v1714_v7  ;;  %v9995_v3 = vld [vmem:[%s10893_s18 + $0x488] sm:$0xff]   ;;  %v1730_v4 = vcombine.high %v1722_v0, %v1722_v0  ;;  %v11098_v5 = vrot.slane %v1715_v1, %v10948_v42  ;;  %v9997_v7 = vld [vmem:[%s10893_s18 + $0x4c0] sm:$0xff]  }
  0xea   : > { %8864 = vmatprep.subr.bf16.mxu1 %v9940_v6  ;;  %v9996_v6 = vld [vmem:[%s10893_s18 + $0x440] sm:$0xff]  }
  0xeb   : > { %8843 = vmatpush3.bf16.msra.mxu0 %v9941_v8  ;;  %v1752_v8 = vrot.slane %v1730_v4, %v10948_v42  ;;  %v10046_v1 = vld [vmem:[%s10893_s18 + $0x6e0] sm:$0xff]   ;;  %v10049_v4 = vld [vmem:[%s10893_s18 + $0x658] sm:$0xff]  }
  0xec   : > { %8844 = vmatprep.subr.bf16.mxu0 %v9943_v10  ;;  %v9998_v10 = vld [vmem:[%s10893_s18 + $0x400] sm:$0xff]  }
  0xed   : > { %8865 = vmatpush3.bf16.msra.mxu1 %v9942_v9  ;;  %v1731_v9 = vcombine.high %v11098_v5, %v11098_v5 }
  0xee   : > { %8866 = vmatprep.subr.bf16.mxu1 %v9944_v11  ;;  %v9999_v11 = vld [vmem:[%s10893_s18 + $0x480] sm:$0xff]  }
  0xef   : > { %8845 = vmatpush3.bf16.msra.mxu0 %v9945_v12  ;;  %v1762_v12 = vcombine.high %v1752_v8, %v1752_v8 }
  0xf0   : > { %8846 = vmatprep.subr.bf16.mxu0 %v9947_v14  ;;  %v10000_v14 = vld [vmem:[%s10893_s18 + $0x578] sm:$0xff]  }
  0xf1   : > { %8867 = vmatpush3.bf16.msra.mxu1 %v9946_v13  ;;  %v1738_v13 = vrot.slane %v1722_v0, %v10948_v42  ;;  %v10045_v0 = vld [vmem:[%s10893_s18 + $0x660] sm:$0xff]  }
  0xf2   : > { %8868 = vmatprep.subr.bf16.mxu1 %v9948_v15  ;;  %v10001_v15 = vld [vmem:[%s10893_s18 + $0x5f8] sm:$0xff]  }
  0xf3   : > { %8847 = vmatpush3.bf16.msra.mxu0 %v9949_v16  ;;  %v1759_v16 = vrot.slane %v1731_v9, %v10948_v42  ;;  %v10054_v9 = vld [vmem:[%s10893_s18 + $0x6d0] sm:$0xff]  }
  0xf4   : > { %8848 = vmatprep.subr.bf16.mxu0 %v9951_v18  ;;  %v10003_v18 = vld [vmem:[%s10893_s18 + $0x5b8] sm:$0xff]  }
  0xf5   : > { %8869 = vmatpush3.bf16.msra.mxu1 %v9950_v17  ;;  %v10002_v17 = vld [vmem:[%s10893_s18 + $0x538] sm:$0xff]  }
  0xf6   : > { %8870 = vmatprep.subr.bf16.mxu1 %v9952_v19  ;;  %v1760_v19 = vcombine.high %v1738_v13, %v1738_v13 }
  0xf7   : > { %8849 = vmatpush3.bf16.msra.mxu0 %v9953_v20  ;;  %v10004_v20 = vld [vmem:[%s10893_s18 + $0x570] sm:$0xff]  }
  0xf8   : > { %8850 = vmatprep.subr.bf16.mxu0 %v9955_v22  ;;  %v1763_v22 = vcombine.high %v1759_v16, %v1759_v16 }
  0xf9   : > { %8871 = vmatpush3.bf16.msra.mxu1 %v9954_v21  ;;  %v10005_v21 = vld [vmem:[%s10893_s18 + $0x5f0] sm:$0xff]  }
  0xfa   : > { %8872 = vmatprep.subr.bf16.mxu1 %v9956_v23  ;;  %v10006_v23 = vld [vmem:[%s10893_s18 + $0x530] sm:$0xff]  }
  0xfb   : > { %8851 = vmatpush3.bf16.msra.mxu0 %v9957_v24  ;;  %v10007_v24 = vld [vmem:[%s10893_s18 + $0x5b0] sm:$0xff]  }
  0xfc   : > { %8852 = vmatprep.subr.bf16.mxu0 %v9959_v26  ;;  %v10009_v26 = vld [vmem:[%s10893_s18 + $0x5e8] sm:$0xff]  }
  0xfd   : > { %8873 = vmatpush3.bf16.msra.mxu1 %v9958_v25  ;;  %v10008_v25 = vld [vmem:[%s10893_s18 + $0x568] sm:$0xff]  }
  0xfe   : > { %8874 = vmatprep.subr.bf16.mxu1 %v9960_v27  ;;  %v10010_v27 = vld [vmem:[%s10893_s18 + $0x528] sm:$0xff]  }
  0xff   : > { %8853 = vmatpush3.bf16.msra.mxu0 %v9961_v28  ;;  %v10011_v28 = vld [vmem:[%s10893_s18 + $0x5a8] sm:$0xff]  }
 0x100   : > { %8854 = vmatprep.subr.bf16.mxu0 %v9963_v30  ;;  %v10013_v30 = vld [vmem:[%s10893_s18 + $0x5e0] sm:$0xff]  }
 0x101   : > { %8875 = vmatpush3.bf16.msra.mxu1 %v9962_v29  ;;  %v10012_v29 = vld [vmem:[%s10893_s18 + $0x560] sm:$0xff]  }
 0x102   : > { %8876 = vmatprep.subr.bf16.mxu1 %v9964_v31  ;;  %v10014_v31 = vld [vmem:[%s10893_s18 + $0x520] sm:$0xff]  }
 0x103   : > { %8855 = vmatpush3.bf16.msra.mxu0 %v9965_v32  ;;  %v10015_v32 = vld [vmem:[%s10893_s18 + $0x5a0] sm:$0xff]  }
 0x104   : > { %8884 = vmatprep.subr.bf16.mxu0 %v9968_v35  ;;  %v10018_v35 = vld [vmem:[%s10893_s18 + $0x518] sm:$0xff]  }
 0x105   : > { %8877 = vmatpush3.bf16.msra.mxu1 %v9966_v33  ;;  %v10016_v33 = vld [vmem:[%s10893_s18 + $0x558] sm:$0xff]  }
 0x106   : > { %6300 = vmatmul.mubr.bf16.vlgmr.msra.gmra.mxu0 %v1696_v34  ;;  %8906 = vmatprep.subr.bf16.mxu1 %v9969_v36  ;;  %v10017_v34 = vld [vmem:[%s10893_s18 + $0x5d8] sm:$0xff]  }
 0x107   : > { %8885 = vmatpush3.bf16.msra.mxu0 %v9970_v37  ;;  %6379 = vmatprep.mubr.bf16.mxu0 %v1752_v8  ;;  %v10019_v36 = vld [vmem:[%s10893_s18 + $0x598] sm:$0xff]   ;;  %v10020_v37 = vld [vmem:[%s10893_s18 + $0x550] sm:$0xff]  }
 0x108   : > { %6340 = vmatmul.mubr.bf16.vlgmr.msra.gmra.mxu1 %v1712_v39  ;;  %8886 = vmatprep.subr.bf16.mxu0 %v9972_v40  ;;  %v10022_v39 = vld [vmem:[%s10893_s18 + $0x510] sm:$0xff]  }
 0x109   : > { %8907 = vmatpush3.bf16.msra.mxu1 %v9971_v38  ;;  %6419 = vmatprep.mubr.bf16.mxu1 %v1762_v12  ;;  %v10021_v38 = vld [vmem:[%s10893_s18 + $0x5d0] sm:$0xff]   ;;  %v10057_v12 = vld [vmem:[%s10893_s18 + $0x648] sm:$0xff]  }
 0x10a   : > { %8908 = vmatprep.subr.bf16.mxu1 %v9973_v41  ;;  %v10023_v40 = vld [vmem:[%s10893_s18 + $0x590] sm:$0xff]   ;;  %v10024_v41 = vld [vmem:[%s10893_s18 + $0x548] sm:$0xff]  }
 0x10b   : > { %8887 = vmatpush3.bf16.msra.mxu0 %v9974_v43  ;;  %v10025_v43 = vld [vmem:[%s10893_s18 + $0x5c8] sm:$0xff]   ;;  %v10053_v8 = vld [vmem:[%s10893_s18 + $0x650] sm:$0xff]  }
 0x10c   : > { %8888 = vmatprep.subr.bf16.mxu0 %v9976_v45  ;;  %v10027_v45 = vld [vmem:[%s10893_s18 + $0x588] sm:$0xff]  }
 0x10d   : > { %8909 = vmatpush3.bf16.msra.mxu1 %v9975_v44  ;;  %v10026_v44 = vld [vmem:[%s10893_s18 + $0x508] sm:$0xff]  }
 0x10e   : > { %8910 = vmatprep.subr.bf16.mxu1 %v9977_v46  ;;  %v10028_v46 = vld [vmem:[%s10893_s18 + $0x540] sm:$0xff]  }
 0x10f   : > { %8889 = vmatpush3.bf16.msra.mxu0 %v9978_v47  ;;  %v10029_v47 = vld [vmem:[%s10893_s18 + $0x5c0] sm:$0xff]  }
 0x110   : > { %8890 = vmatprep.subr.bf16.mxu0 %v9980_v49  ;;  %v10031_v49 = vld [vmem:[%s10893_s18 + $0x580] sm:$0xff]  }
 0x111   : > { %8911 = vmatpush3.bf16.msra.mxu1 %v9979_v48  ;;  %v10030_v48 = vld [vmem:[%s10893_s18 + $0x500] sm:$0xff]  }
 0x112   : > { %8912 = vmatprep.subr.bf16.mxu1 %v9981_v50  ;;  %v1745_v50 = vrot.slane %v11098_v5, %v10948_v42  ;;  %v10050_v5 = vld [vmem:[%s10893_s18 + $0x6d8] sm:$0xff]  }
 0x113   : > { %8891 = vmatpush3.bf16.msra.mxu0 %v9982_v51  ;;  %v10033_v51 = vld [vmem:[%s10893_s18 + $0x678] sm:$0xff]  }
 0x114   : > { %8892 = vmatprep.subr.bf16.mxu0 %v9984_v53  ;;  %v10035_v53 = vld [vmem:[%s10893_s18 + $0x638] sm:$0xff]  }
 0x115   : > { %8913 = vmatpush3.bf16.msra.mxu1 %v9983_v52  ;;  %v10034_v52 = vld [vmem:[%s10893_s18 + $0x6f8] sm:$0xff]  }
 0x116   : > { %8914 = vmatprep.subr.bf16.mxu1 %v9985_v54  ;;  %v10036_v54 = vld [vmem:[%s10893_s18 + $0x6b8] sm:$0xff]  }
 0x117   : > { %8893 = vmatpush3.bf16.msra.mxu0 %v9986_v55  ;;  %v1761_v55 = vcombine.high %v1745_v50, %v1745_v50 }
 0x118   : > { %8894 = vmatprep.subr.bf16.mxu0 %v9988_v57  ;;  %v10038_v57 = vld [vmem:[%s10893_s18 + $0x6f0] sm:$0xff]  }
 0x119   : > { %8915 = vmatpush3.bf16.msra.mxu1 %v9987_v56  ;;  %v10037_v56 = vld [vmem:[%s10893_s18 + $0x670] sm:$0xff]  }
 0x11a   : > { %8916 = vmatprep.subr.bf16.mxu1 %v9989_v58  ;;  %v10039_v58 = vld [vmem:[%s10893_s18 + $0x630] sm:$0xff]  }
 0x11b   : > { %8895 = vmatpush3.bf16.msra.mxu0 %v9990_v59  ;;  %v10040_v59 = vld [vmem:[%s10893_s18 + $0x6b0] sm:$0xff]  }
 0x11c   : > { %8896 = vmatprep.subr.bf16.mxu0 %v9992_v61  ;;  %v10042_v61 = vld [vmem:[%s10893_s18 + $0x6e8] sm:$0xff]  }
 0x11d   : > { %8917 = vmatpush3.bf16.msra.mxu1 %v9991_v60  ;;  %v10041_v60 = vld [vmem:[%s10893_s18 + $0x668] sm:$0xff]  }
 0x11e   : > { %8918 = vmatprep.subr.bf16.mxu1 %v9993_v63  ;;  %v10044_v63 = vld [vmem:[%s10893_s18 + $0x6a8] sm:$0xff]  }
 0x11f   : > { %8897 = vmatpush3.bf16.msra.mxu0 %v9994_v2  ;;  %v10047_v2 = vld [vmem:[%s10893_s18 + $0x620] sm:$0xff]  }
 0x120   : > { %8898 = vmatprep.subr.bf16.mxu0 %v9996_v6  ;;  %v10051_v6 = vld [vmem:[%s10893_s18 + $0x618] sm:$0xff]  }
 0x121   : > { %8919 = vmatpush3.bf16.msra.mxu1 %v9995_v3  ;;  %v10048_v3 = vld [vmem:[%s10893_s18 + $0x6a0] sm:$0xff]  }
 0x122   : > { %8920 = vmatprep.subr.bf16.mxu1 %v9997_v7  ;;  %v10052_v7 = vld [vmem:[%s10893_s18 + $0x698] sm:$0xff]  }
 0x123   : > { %8899 = vmatpush3.bf16.msra.mxu0 %v9998_v10  ;;  %v10055_v10 = vld [vmem:[%s10893_s18 + $0x610] sm:$0xff]  }
 0x124   : > { %8928 = vmatprep.subr.bf16.mxu0 %v10000_v14  ;;  %v320_v14 = vld [vmem:[%s10886_s26 + $0x18] sm:$0xff] }
 0x125   : > { %8921 = vmatpush3.bf16.msra.mxu1 %v9999_v11  ;;  %v10056_v11 = vld [vmem:[%s10893_s18 + $0x690] sm:$0xff]  }
 0x126   : > { %6380 = vmatmul.mubr.bf16.vlgmr.msra.gmra.mxu0 %v1738_v13  ;;  %8950 = vmatprep.subr.bf16.mxu1 %v10001_v15  ;;  %v10058_v13 = vld [vmem:[%s10893_s18 + $0x6c8] sm:$0xff]  }
 0x127   : > { %8929 = vmatpush3.bf16.msra.mxu0 %v10002_v17  ;;  %6459 = vmatprep.mubr.bf16.mxu0 %v1759_v16  ;;  %v10059_v15 = vld [vmem:[%s10893_s18 + $0x608] sm:$0xff]   ;;  %v1771_v16 = vrot.slane %v320_v14, %v10948_v42  ;;  %v1764_v17 = vcombine.high %v320_v14, %v320_v14  ;;  %v10099_v14 = vld [vmem:[%s10893_s18 + $0x8f8] sm:$0xff]  }
 0x128   : > { %6420 = vmatmul.mubr.bf16.vlgmr.msra.gmra.mxu1 %v1760_v19  ;;  %8930 = vmatprep.subr.bf16.mxu0 %v10004_v20  ;;  %v10061_v19 = vld [vmem:[%s10893_s18 + $0x640] sm:$0xff]  }
 0x129   : > { %8951 = vmatpush3.bf16.msra.mxu1 %v10003_v18  ;;  %6499 = vmatprep.mubr.bf16.mxu1 %v1763_v22  ;;  %v10060_v18 = vld [vmem:[%s10893_s18 + $0x688] sm:$0xff]   ;;  %v1779_v20 = vcombine.high %v1771_v16, %v1771_v16  ;;  %v10062_v22 = vld [vmem:[%s10893_s18 + $0x6c0] sm:$0xff]  }
 0x12a   : > { %8952 = vmatprep.subr.bf16.mxu1 %v10005_v21  ;;  %v11175_v21 = vrot.slane %v1764_v17, %v10948_v42 }
 0x12b   : > { %8931 = vmatpush3.bf16.msra.mxu0 %v10006_v23  ;;  %v10063_v23 = vld [vmem:[%s10893_s18 + $0x600] sm:$0xff]  }
 0x12c   : > { %8932 = vmatprep.subr.bf16.mxu0 %v10008_v25  ;;  %v1780_v25 = vcombine.high %v11175_v21, %v11175_v21 }
 0x12d   : > { %8953 = vmatpush3.bf16.msra.mxu1 %v10007_v24  ;;  %v1801_v24 = vrot.slane %v1779_v20, %v10948_v42 }
 0x12e   : > { %8954 = vmatprep.subr.bf16.mxu1 %v10009_v26  ;;  %v10064_v26 = vld [vmem:[%s10893_s18 + $0x680] sm:$0xff]  }
 0x12f   : > { %8933 = vmatpush3.bf16.msra.mxu0 %v10010_v27  ;;  %v1811_v27 = vcombine.high %v1801_v24, %v1801_v24 }
 0x130   : > { %8934 = vmatprep.subr.bf16.mxu0 %v10012_v29  ;;  %v10065_v29 = vld [vmem:[%s10893_s18 + $0x778] sm:$0xff]  }
 0x131   : > { %8955 = vmatpush3.bf16.msra.mxu1 %v10011_v28  ;;  %v1787_v28 = vrot.slane %v1771_v16, %v10948_v42  ;;  %v10101_v16 = vld [vmem:[%s10893_s18 + $0x8b8] sm:$0xff]  }
 0x132   : > { %8956 = vmatprep.subr.bf16.mxu1 %v10013_v30  ;;  %v10066_v30 = vld [vmem:[%s10893_s18 + $0x7f8] sm:$0xff]  }
 0x133   : > { %8935 = vmatpush3.bf16.msra.mxu0 %v10014_v31  ;;  %v1808_v31 = vrot.slane %v1780_v25, %v10948_v42  ;;  %v10106_v25 = vld [vmem:[%s10893_s18 + $0x868] sm:$0xff]  }
 0x134   : > { %8936 = vmatprep.subr.bf16.mxu0 %v10016_v33  ;;  %v10068_v33 = vld [vmem:[%s10893_s18 + $0x7b8] sm:$0xff]  }
 0x135   : > { %8957 = vmatpush3.bf16.msra.mxu1 %v10015_v32  ;;  %v10067_v32 = vld [vmem:[%s10893_s18 + $0x738] sm:$0xff]  }
 0x136   : > { %8958 = vmatprep.subr.bf16.mxu1 %v10017_v34  ;;  %v1809_v34 = vcombine.high %v1787_v28, %v1787_v28 }
 0x137   : > { %8937 = vmatpush3.bf16.msra.mxu0 %v10018_v35  ;;  %v10069_v35 = vld [vmem:[%s10893_s18 + $0x770] sm:$0xff]  }
 0x138   : > { %8938 = vmatprep.subr.bf16.mxu0 %v10020_v37  ;;  %v1812_v37 = vcombine.high %v1808_v31, %v1808_v31 }
 0x139   : > { %8959 = vmatpush3.bf16.msra.mxu1 %v10019_v36  ;;  %v10070_v36 = vld [vmem:[%s10893_s18 + $0x7f0] sm:$0xff]  }
 0x13a   : > { %8960 = vmatprep.subr.bf16.mxu1 %v10021_v38 }
 0x13b   : > { %8939 = vmatpush3.bf16.msra.mxu0 %v10022_v39  ;;  %v10071_v39 = vld [vmem:[%s10893_s18 + $0x730] sm:$0xff]  }
 0x13c   : > { %8940 = vmatprep.subr.bf16.mxu0 %v10024_v41 }
 0x13d   : > { %8961 = vmatpush3.bf16.msra.mxu1 %v10023_v40  ;;  %v10072_v40 = vld [vmem:[%s10893_s18 + $0x7b0] sm:$0xff]  }
 0x13e   : > { %8962 = vmatprep.subr.bf16.mxu1 %v10025_v43 }
 0x13f   : > { %8941 = vmatpush3.bf16.msra.mxu0 %v10026_v44  ;;  %v10073_v44 = vld [vmem:[%s10893_s18 + $0x768] sm:$0xff]  }
 0x140   : > { %8942 = vmatprep.subr.bf16.mxu0 %v10028_v46  ;;  %v10074_v46 = vld [vmem:[%s10893_s18 + $0x7e8] sm:$0xff]  }
 0x141   : > { %8963 = vmatpush3.bf16.msra.mxu1 %v10027_v45 }
 0x142   : > { %8964 = vmatprep.subr.bf16.mxu1 %v10029_v47 }
 0x143   : > { %8943 = vmatpush3.bf16.msra.mxu0 %v10030_v48 }
 0x144   : > { %8972 = vmatprep.subr.bf16.mxu0 %v10033_v51  ;;  %v10076_v51 = vld [vmem:[%s10893_s18 + $0x7a8] sm:$0xff]  }
 0x145   : > { %8965 = vmatpush3.bf16.msra.mxu1 %v10031_v49  ;;  %v10075_v49 = vld [vmem:[%s10893_s18 + $0x728] sm:$0xff]  }
 0x146   : > { %6460 = vmatmul.mubr.bf16.vlgmr.msra.gmra.mxu0 %v1745_v50  ;;  %8994 = vmatprep.subr.bf16.mxu1 %v10034_v52 }
 0x147   : > { %8973 = vmatpush3.bf16.msra.mxu0 %v10035_v53  ;;  %6539 = vmatprep.mubr.bf16.mxu0 %v1801_v24 }
 0x148   : > { %6500 = vmatmul.mubr.bf16.vlgmr.msra.gmra.mxu1 %v1761_v55  ;;  %8974 = vmatprep.subr.bf16.mxu0 %v10037_v56  ;;  %v10078_v56 = vld [vmem:[%s10893_s18 + $0x7e0] sm:$0xff]  }
 0x149   : > { %8995 = vmatpush3.bf16.msra.mxu1 %v10036_v54  ;;  %6579 = vmatprep.mubr.bf16.mxu1 %v1811_v27  ;;  %v10077_v54 = vld [vmem:[%s10893_s18 + $0x760] sm:$0xff]   ;;  %v10107_v27 = vld [vmem:[%s10893_s18 + $0x8e8] sm:$0xff]  }
 0x14a   : > { %8996 = vmatprep.subr.bf16.mxu1 %v10038_v57 }
 0x14b   : > { %8975 = vmatpush3.bf16.msra.mxu0 %v10039_v58  ;;  %v10079_v58 = vld [vmem:[%s10893_s18 + $0x720] sm:$0xff]  }
 0x14c   : > { %8976 = vmatprep.subr.bf16.mxu0 %v10041_v60  ;;  %v10081_v60 = vld [vmem:[%s10893_s18 + $0x758] sm:$0xff]  }
 0x14d   : > { %8997 = vmatpush3.bf16.msra.mxu1 %v10040_v59  ;;  %v10080_v59 = vld [vmem:[%s10893_s18 + $0x7a0] sm:$0xff]  }
 0x14e   : > { %8998 = vmatprep.subr.bf16.mxu1 %v10042_v61  ;;  %v10082_v61 = vld [vmem:[%s10893_s18 + $0x7d8] sm:$0xff]  }
 0x14f   : > { %8977 = vmatpush3.bf16.msra.mxu0 %v10043_v62  ;;  %v10083_v62 = vld [vmem:[%s10893_s18 + $0x718] sm:$0xff]  }
 0x150   : > { %8978 = vmatprep.subr.bf16.mxu0 %v10045_v0  ;;  %v10085_v0 = vld [vmem:[%s10893_s18 + $0x750] sm:$0xff]  }
 0x151   : > { %8999 = vmatpush3.bf16.msra.mxu1 %v10044_v63  ;;  %v10084_v63 = vld [vmem:[%s10893_s18 + $0x798] sm:$0xff]  }
 0x152   : > { %9000 = vmatprep.subr.bf16.mxu1 %v10046_v1  ;;  %v10086_v1 = vld [vmem:[%s10893_s18 + $0x7d0] sm:$0xff]  }
 0x153   : > { %8979 = vmatpush3.bf16.msra.mxu0 %v10047_v2  ;;  %v10087_v2 = vld [vmem:[%s10893_s18 + $0x710] sm:$0xff]  }
 0x154   : > { %8980 = vmatprep.subr.bf16.mxu0 %v10049_v4  ;;  %v10089_v4 = vld [vmem:[%s10893_s18 + $0x748] sm:$0xff]  }
 0x155   : > { %9001 = vmatpush3.bf16.msra.mxu1 %v10048_v3  ;;  %v10088_v3 = vld [vmem:[%s10893_s18 + $0x790] sm:$0xff]  }
 0x156   : > { %9002 = vmatprep.subr.bf16.mxu1 %v10050_v5  ;;  %v10090_v5 = vld [vmem:[%s10893_s18 + $0x7c8] sm:$0xff]  }
 0x157   : > { %8981 = vmatpush3.bf16.msra.mxu0 %v10051_v6  ;;  %v10091_v6 = vld [vmem:[%s10893_s18 + $0x708] sm:$0xff]  }
 0x158   : > { %8982 = vmatprep.subr.bf16.mxu0 %v10053_v8  ;;  %v10093_v8 = vld [vmem:[%s10893_s18 + $0x740] sm:$0xff]  }
 0x159   : > { %9003 = vmatpush3.bf16.msra.mxu1 %v10052_v7  ;;  %v10092_v7 = vld [vmem:[%s10893_s18 + $0x788] sm:$0xff]  }
 0x15a   : > { %9004 = vmatprep.subr.bf16.mxu1 %v10054_v9  ;;  %v10094_v9 = vld [vmem:[%s10893_s18 + $0x7c0] sm:$0xff]  }
 0x15b   : > { %8983 = vmatpush3.bf16.msra.mxu0 %v10055_v10  ;;  %v10095_v10 = vld [vmem:[%s10893_s18 + $0x700] sm:$0xff]  }
 0x15c   : > { %8984 = vmatprep.subr.bf16.mxu0 %v10057_v12  ;;  %v1794_v12 = vrot.slane %v11175_v21, %v10948_v42  ;;  %v10104_v21 = vld [vmem:[%s10893_s18 + $0x830] sm:$0xff]  }
 0x15d   : > { %9005 = vmatpush3.bf16.msra.mxu1 %v10056_v11  ;;  %v10096_v11 = vld [vmem:[%s10893_s18 + $0x780] sm:$0xff]  }
 0x15e   : > { %9006 = vmatprep.subr.bf16.mxu1 %v10058_v13  ;;  %v10098_v13 = vld [vmem:[%s10893_s18 + $0x878] sm:$0xff]   ;;  %v1810_v17 = vcombine.high %v1794_v12, %v1794_v12 }
 0x15f   : > { %8985 = vmatpush3.bf16.msra.mxu0 %v10059_v15  ;;  %v10100_v15 = vld [vmem:[%s10893_s18 + $0x838] sm:$0xff]  }
 0x160   : > { %8986 = vmatprep.subr.bf16.mxu0 %v10061_v19  ;;  %v10103_v19 = vld [vmem:[%s10893_s18 + $0x8f0] sm:$0xff]  }
 0x161   : > { %9007 = vmatpush3.bf16.msra.mxu1 %v10060_v18  ;;  %v10102_v18 = vld [vmem:[%s10893_s18 + $0x870] sm:$0xff]  }
 0x162   : > { %9008 = vmatprep.subr.bf16.mxu1 %v10062_v22  ;;  %v10105_v22 = vld [vmem:[%s10893_s18 + $0x8b0] sm:$0xff]  }
 0x163   : > { %8987 = vmatpush3.bf16.msra.mxu0 %v10063_v23 }
 0x164   : > { %9016 = vmatprep.subr.bf16.mxu0 %v10065_v29 }
 0x165   : > { %9009 = vmatpush3.bf16.msra.mxu1 %v10064_v26 }
 0x166   : > { %v8724_v38 = vpop.f32.mrf.mxu0  ;;  %6540 = vmatmul.mubr.bf16.vlgmr.msra.gmra.mxu0 %v1787_v28  ;;  %9038 = vmatprep.subr.bf16.mxu1 %v10066_v30  ;;  %v10108_v30 = vld [vmem:[%s10893_s18 + $0x828] sm:$0xff]  }
 0x167   : > { %9017 = vmatpush3.bf16.msra.mxu0 %v10067_v32  ;;  %6619 = vmatprep.mubr.bf16.mxu0 %v1808_v31  ;;  %v8746_v41 = vpop.f32.mrf.mxu1 }
 0x168   : > { %6580 = vmatmul.mubr.bf16.vlgmr.msra.gmra.mxu1 %v1809_v34  ;;  %v8725_v43 = vpop.f32.mrf.mxu0  ;;  %9018 = vmatprep.subr.bf16.mxu0 %v10069_v35 }
 0x169   : > { %9039 = vmatpush3.bf16.msra.mxu1 %v10068_v33  ;;  %v8726_v45 = vadd.f32 %v8725_v43, %v8724_v38  ;;  %6659 = vmatprep.mubr.bf16.mxu1 %v1812_v37  ;;  %v8747_v47 = vpop.f32.mrf.mxu1  ;;  %v10109_v33 = vld [vmem:[%s10893_s18 + $0x8a8] sm:$0xff]   ;;  %v10111_v38 = vld [vmem:[%s10893_s18 + $0x8e0] sm:$0xff]   ;;  %v10114_v43 = vld [vmem:[%s10893_s18 + $0x858] sm:$0xff]  }
 0x16a   : > { %v8727_v48 = vpop.f32.mrf.mxu0  ;;  %9040 = vmatprep.subr.bf16.mxu1 %v10070_v36  ;;  %v8748_v50 = vadd.f32 %v8747_v47, %v8746_v41  ;;  %v10110_v36 = vld [vmem:[%s10893_s18 + $0x860] sm:$0xff]   ;;  %v10118_v47 = vld [vmem:[%s10893_s18 + $0x850] sm:$0xff]  }
 0x16b   : > { %9019 = vmatpush3.bf16.msra.mxu0 %v10071_v39  ;;  %v8749_v52 = vpop.f32.mrf.mxu1  ;;  %v10113_v41 = vld [vmem:[%s10893_s18 + $0x8a0] sm:$0xff]   ;;  %v10119_v48 = vld [vmem:[%s10893_s18 + $0x8d0] sm:$0xff]  }
 0x16c   : > { %v8728_v53 = vpop.f32.mrf.mxu0  ;;  %9020 = vmatprep.subr.bf16.mxu0 %v10073_v44  ;;  %v11198_v55 = vadd.f32 %v8748_v50, %v8726_v45  ;;  %v10115_v44 = vld [vmem:[%s10893_s18 + $0x8d8] sm:$0xff]   ;;  %v10121_v50 = vld [vmem:[%s10893_s18 + $0x890] sm:$0xff]   ;;  %v10123_v52 = vld [vmem:[%s10893_s18 + $0x8c8] sm:$0xff]  }
 0x16d   : > { %9041 = vmatpush3.bf16.msra.mxu1 %v10072_v40  ;;  %v8750_v57 = vpop.f32.mrf.mxu1  ;;  %v10112_v40 = vld [vmem:[%s10893_s18 + $0x820] sm:$0xff]   ;;  %v10116_v45 = vld [vmem:[%s10893_s18 + $0x818] sm:$0xff]  }
 0x16e   : > { %9042 = vmatprep.subr.bf16.mxu1 %v10074_v46  ;;  %v10117_v46 = vld [vmem:[%s10893_s18 + $0x898] sm:$0xff]   ;;  %v321_v53 = vld [vmem:[%s10886_s26 + $0x20] sm:$0xff]  ;;  %v10125_v57 = vld [vmem:[%s10893_s18 + $0x888] sm:$0xff]  }
 0x16f   : > { %9021 = vmatpush3.bf16.msra.mxu0 %v10075_v49  ;;  %v10120_v49 = vld [vmem:[%s10893_s18 + $0x810] sm:$0xff]  }
 0x170   : > { %9022 = vmatprep.subr.bf16.mxu0 %v10077_v54  ;;  %v10124_v54 = vld [vmem:[%s10893_s18 + $0x808] sm:$0xff]  }
 0x171   : > { %9043 = vmatpush3.bf16.msra.mxu1 %v10076_v51  ;;  %v10122_v51 = vld [vmem:[%s10893_s18 + $0x848] sm:$0xff]  }
 0x172   : > { %9044 = vmatprep.subr.bf16.mxu1 %v10078_v56  ;;  %v1813_v56 = vcombine.high %v321_v53, %v321_v53 }
 0x173   : > { %9023 = vmatpush3.bf16.msra.mxu0 %v10079_v58  ;;  %v10126_v58 = vld [vmem:[%s10893_s18 + $0x840] sm:$0xff]  }
 0x174   : > { %9024 = vmatprep.subr.bf16.mxu0 %v10081_v60  ;;  %v11256_v60 = vrot.slane %v1813_v56, %v10948_v42  ;;  %v10166_v56 = vld [vmem:[%s10893_s18 + $0xab8] sm:$0xff]  }
 0x175   : > { %9045 = vmatpush3.bf16.msra.mxu1 %v10080_v59 }
 0x176   : > { %9046 = vmatprep.subr.bf16.mxu1 %v10082_v61  ;;  %v10127_v61 = vld [vmem:[%s10893_s18 + $0x8c0] sm:$0xff]  }
 0x177   : > { %9025 = vmatpush3.bf16.msra.mxu0 %v10083_v62  ;;  %v10128_v62 = vld [vmem:[%s10893_s18 + $0x800] sm:$0xff]  }
 0x178   : > { %9026 = vmatprep.subr.bf16.mxu0 %v10085_v0  ;;  %v1829_v0 = vcombine.high %v11256_v60, %v11256_v60 }
 0x179   : > { %9047 = vmatpush3.bf16.msra.mxu1 %v10084_v63 }
 0x17a   : > { %9048 = vmatprep.subr.bf16.mxu1 %v10086_v1  ;;  %v10129_v1 = vld [vmem:[%s10893_s18 + $0x880] sm:$0xff]  }
 0x17b   : > { %9027 = vmatpush3.bf16.msra.mxu0 %v10087_v2 }
 0x17c   : > { %9028 = vmatprep.subr.bf16.mxu0 %v10089_v4  ;;  %v10130_v4 = vld [vmem:[%s10893_s18 + $0x978] sm:$0xff]  }
 0x17d   : > { %9049 = vmatpush3.bf16.msra.mxu1 %v10088_v3 }
 0x17e   : > { %9050 = vmatprep.subr.bf16.mxu1 %v10090_v5  ;;  %v10131_v5 = vld [vmem:[%s10893_s18 + $0x9f8] sm:$0xff]  }
 0x17f   : > { %9029 = vmatpush3.bf16.msra.mxu0 %v10091_v6  ;;  %v1857_v6 = vrot.slane %v1829_v0, %v10948_v42 }
 0x180   : > { %9030 = vmatprep.subr.bf16.mxu0 %v10093_v8  ;;  %v10133_v8 = vld [vmem:[%s10893_s18 + $0x9b8] sm:$0xff]  }
 0x181   : > { %9051 = vmatpush3.bf16.msra.mxu1 %v10092_v7  ;;  %v10132_v7 = vld [vmem:[%s10893_s18 + $0x938] sm:$0xff]  }
 0x182   : > { %9052 = vmatprep.subr.bf16.mxu1 %v10094_v9 }
 0x183   : > { %9031 = vmatpush3.bf16.msra.mxu0 %v10095_v10  ;;  %v10134_v10 = vld [vmem:[%s10893_s18 + $0x970] sm:$0xff]  }
 0x184   : > { %9060 = vmatprep.subr.bf16.mxu0 %v10098_v13 }
 0x185   : > { %9053 = vmatpush3.bf16.msra.mxu1 %v10096_v11  ;;  %v10135_v11 = vld [vmem:[%s10893_s18 + $0x9f0] sm:$0xff]  }
 0x186   : > { %v8768_v20 = vpop.f32.mrf.mxu0  ;;  %6620 = vmatmul.mubr.bf16.vlgmr.msra.gmra.mxu0 %v1794_v12  ;;  %9082 = vmatprep.subr.bf16.mxu1 %v10099_v14  ;;  %v1861_v12 = vcombine.high %v1857_v6, %v1857_v6  ;;  %v10136_v14 = vld [vmem:[%s10893_s18 + $0x930] sm:$0xff]  }
 0x187   : > { %9061 = vmatpush3.bf16.msra.mxu0 %v10100_v15  ;;  %v8790_v23 = vpop.f32.mrf.mxu1  ;;  %v10137_v15 = vld [vmem:[%s10893_s18 + $0x9b0] sm:$0xff]  }
 0x188   : > { %6660 = vmatmul.mubr.bf16.vlgmr.msra.gmra.mxu1 %v1810_v17  ;;  %v8769_v24 = vpop.f32.mrf.mxu0  ;;  %9062 = vmatprep.subr.bf16.mxu0 %v10102_v18  ;;  %v10138_v18 = vld [vmem:[%s10893_s18 + $0x968] sm:$0xff]  }
 0x189   : > { %9083 = vmatpush3.bf16.msra.mxu1 %v10101_v16  ;;  %v8770_v26 = vadd.f32 %v8769_v24, %v8768_v20  ;;  %v8791_v28 = vpop.f32.mrf.mxu1  ;;  %v10139_v20 = vld [vmem:[%s10893_s18 + $0x9e8] sm:$0xff]  }
 0x18a   : > { %v8771_v29 = vpop.f32.mrf.mxu0  ;;  %9084 = vmatprep.subr.bf16.mxu1 %v10103_v19  ;;  %v8792_v32 = vadd.f32 %v8791_v28, %v8790_v23  ;;  %v10140_v23 = vld [vmem:[%s10893_s18 + $0x928] sm:$0xff]  }
 0x18b   : > { %v6142_v31 = vadd.f32 %v8770_v26, %v11198_v55  ;;  %9063 = vmatpush3.bf16.msra.mxu0 %v10104_v21  ;;  %v8793_v34 = vpop.f32.mrf.mxu1  ;;  %v1820_v55 = vrot.slane %v321_v53, %v10948_v42  ;;  %v10141_v26 = vld [vmem:[%s10893_s18 + $0x9a8] sm:$0xff]   ;;  %v10142_v29 = vld [vmem:[%s10893_s18 + $0x960] sm:$0xff]   ;;  %v10163_v53 = vld [vmem:[%s10893_s18 + $0xa78] sm:$0xff]  }
 0x18c   : > { %v8772_v35 = vpop.f32.mrf.mxu0  ;;  %9064 = vmatprep.subr.bf16.mxu0 %v10106_v25  ;;  %v10145_v34 = vld [vmem:[%s10893_s18 + $0x9a0] sm:$0xff]  }
 0x18d   : > { %v11235_v37 = vadd.f32 %v8792_v32, %v6142_v31  ;;  %9085 = vmatpush3.bf16.msra.mxu1 %v10105_v22  ;;  %v8794_v39 = vpop.f32.mrf.mxu1  ;;  %v1828_v59 = vcombine.high %v1820_v55, %v1820_v55  ;;  %v1836_v3 = vrot.slane %v1820_v55, %v10948_v42  ;;  %v10143_v31 = vld [vmem:[%s10893_s18 + $0x9e0] sm:$0xff]   ;;  %v10146_v35 = vld [vmem:[%s10893_s18 + $0x958] sm:$0xff]  }
 0x18e   : > { %9086 = vmatprep.subr.bf16.mxu1 %v10107_v27  ;;  %v10150_v39 = vld [vmem:[%s10893_s18 + $0x950] sm:$0xff]   ;;  %v10165_v55 = vld [vmem:[%s10893_s18 + $0xa38] sm:$0xff]  }
 0x18f   : > { %9065 = vmatpush3.bf16.msra.mxu0 %v10108_v30  ;;  %v1850_v63 = vrot.slane %v1828_v59, %v10948_v42  ;;  %v1858_v9 = vcombine.high %v1836_v3, %v1836_v3  ;;  %v10168_v59 = vld [vmem:[%s10893_s18 + $0xaf0] sm:$0xff]  }
 0x190   : > { %9066 = vmatprep.subr.bf16.mxu0 %v10110_v36  ;;  %v10147_v36 = vld [vmem:[%s10893_s18 + $0x9d8] sm:$0xff]  }
 0x191   : > { %9087 = vmatpush3.bf16.msra.mxu1 %v10109_v33  ;;  %6699 = vmatprep.mubr.bf16.mxu0 %v1850_v63  ;;  %v1860_v2 = vcombine.high %v1850_v63, %v1850_v63  ;;  %v10144_v33 = vld [vmem:[%s10893_s18 + $0x920] sm:$0xff]  }
 0x192   : > { %9088 = vmatprep.subr.bf16.mxu1 %v10111_v38  ;;  %v10149_v38 = vld [vmem:[%s10893_s18 + $0x998] sm:$0xff]  }
 0x193   : > { %9067 = vmatpush3.bf16.msra.mxu0 %v10112_v40  ;;  %6739 = vmatprep.mubr.bf16.mxu1 %v1860_v2  ;;  %v10151_v40 = vld [vmem:[%s10893_s18 + $0x9d0] sm:$0xff]  }
 0x194   : > { %9068 = vmatprep.subr.bf16.mxu0 %v10114_v43  ;;  %v10153_v43 = vld [vmem:[%s10893_s18 + $0x990] sm:$0xff]  }
 0x195   : > { %9089 = vmatpush3.bf16.msra.mxu1 %v10113_v41  ;;  %v10152_v41 = vld [vmem:[%s10893_s18 + $0x910] sm:$0xff]  }
 0x196   : > { %9090 = vmatprep.subr.bf16.mxu1 %v10115_v44  ;;  %v10154_v44 = vld [vmem:[%s10893_s18 + $0x948] sm:$0xff]  }
 0x197   : > { %9069 = vmatpush3.bf16.msra.mxu0 %v10116_v45  ;;  %v10155_v45 = vld [vmem:[%s10893_s18 + $0x9c8] sm:$0xff]  }
 0x198   : > { %9070 = vmatprep.subr.bf16.mxu0 %v10118_v47  ;;  %v10157_v47 = vld [vmem:[%s10893_s18 + $0x988] sm:$0xff]  }
 0x199   : > { %9091 = vmatpush3.bf16.msra.mxu1 %v10117_v46  ;;  %v10156_v46 = vld [vmem:[%s10893_s18 + $0x908] sm:$0xff]  }
 0x19a   : > { %9092 = vmatprep.subr.bf16.mxu1 %v10119_v48  ;;  %v10158_v48 = vld [vmem:[%s10893_s18 + $0x940] sm:$0xff]  }
 0x19b   : > { %9071 = vmatpush3.bf16.msra.mxu0 %v10120_v49  ;;  %v10159_v49 = vld [vmem:[%s10893_s18 + $0x9c0] sm:$0xff]  }
 0x19c   : > { %9072 = vmatprep.subr.bf16.mxu0 %v10122_v51  ;;  %v10161_v51 = vld [vmem:[%s10893_s18 + $0x980] sm:$0xff]  }
 0x19d   : > { %9093 = vmatpush3.bf16.msra.mxu1 %v10121_v50  ;;  %v10160_v50 = vld [vmem:[%s10893_s18 + $0x900] sm:$0xff]  }
 0x19e   : > { %9094 = vmatprep.subr.bf16.mxu1 %v10123_v52  ;;  %v1843_v52 = vrot.slane %v11256_v60, %v10948_v42  ;;  %v10169_v60 = vld [vmem:[%s10893_s18 + $0xa30] sm:$0xff]  }
 0x19f   : > { %9073 = vmatpush3.bf16.msra.mxu0 %v10124_v54  ;;  %v10164_v54 = vld [vmem:[%s10893_s18 + $0xaf8] sm:$0xff]  }
 0x1a0   : > { %9074 = vmatprep.subr.bf16.mxu0 %v10126_v58  ;;  %v10167_v58 = vld [vmem:[%s10893_s18 + $0xa70] sm:$0xff]  }
 0x1a1   : > { %9095 = vmatpush3.bf16.msra.mxu1 %v10125_v57  ;;  %v1859_v57 = vcombine.high %v1843_v52, %v1843_v52 }
 0x1a2   : > { %9096 = vmatprep.subr.bf16.mxu1 %v10127_v61 }
 0x1a3   : > { %9075 = vmatpush3.bf16.msra.mxu0 %v10128_v62  ;;  %v10170_v62 = vld [vmem:[%s10893_s18 + $0xab0] sm:$0xff]  }
 0x1a4   : > { %9104 = vmatprep.subr.bf16.mxu0 %v10130_v4 }
 0x1a5   : > { %9097 = vmatpush3.bf16.msra.mxu1 %v10129_v1  ;;  %v10171_v1 = vld [vmem:[%s10893_s18 + $0xa68] sm:$0xff]  }
 0x1a6   : > { %v8812_v13 = vpop.f32.mrf.mxu0  ;;  %6700 = vmatmul.mubr.bf16.vlgmr.msra.gmra.mxu0 %v1836_v3  ;;  %9126 = vmatprep.subr.bf16.mxu1 %v10131_v5  ;;  %v10172_v3 = vld [vmem:[%s10893_s18 + $0xae8] sm:$0xff]  }
 0x1a7   : > { %9105 = vmatpush3.bf16.msra.mxu0 %v10132_v7  ;;  %6779 = vmatprep.mubr.bf16.mxu0 %v1857_v6  ;;  %v10173_v6 = vld [vmem:[%s10893_s18 + $0xa28] sm:$0xff]  }
 0x1a8   : > { %v8834_v16 = vpop.f32.mrf.mxu1  ;;  %6740 = vmatmul.mubr.bf16.vlgmr.msra.gmra.mxu1 %v1858_v9  ;;  %v8813_v17 = vpop.f32.mrf.mxu0  ;;  %9106 = vmatprep.subr.bf16.mxu0 %v10134_v10  ;;  %v10174_v9 = vld [vmem:[%s10893_s18 + $0xaa8] sm:$0xff]  }
 0x1a9   : > { %9127 = vmatpush3.bf16.msra.mxu1 %v10133_v8  ;;  %v8814_v19 = vadd.f32 %v8813_v17, %v8812_v13  ;;  %6819 = vmatprep.mubr.bf16.mxu1 %v1861_v12  ;;  %v10175_v12 = vld [vmem:[%s10893_s18 + $0xa60] sm:$0xff]  }
 0x1aa   : > { %v8835_v21 = vpop.f32.mrf.mxu1  ;;  %v8815_v22 = vpop.f32.mrf.mxu0  ;;  %9128 = vmatprep.subr.bf16.mxu1 %v10135_v11  ;;  %v10178_v17 = vld [vmem:[%s10893_s18 + $0xaa0] sm:$0xff]  }
 0x1ab   : > { %v6222_v24 = vadd.f32 %v8814_v19, %v11235_v37  ;;  %v8836_v25 = vadd.f32 %v8835_v21, %v8834_v16  ;;  %9107 = vmatpush3.bf16.msra.mxu0 %v10136_v14  ;;  %v10148_v37 = vld [vmem:[%s10893_s18 + $0x918] sm:$0xff]   ;;  %v10176_v14 = vld [vmem:[%s10893_s18 + $0xae0] sm:$0xff]   ;;  %v10183_v22 = vld [vmem:[%s10893_s18 + $0xa50] sm:$0xff]  }
 0x1ac   : > { %v8837_v27 = vpop.f32.mrf.mxu1  ;;  %v8816_v28 = vpop.f32.mrf.mxu0  ;;  %9108 = vmatprep.subr.bf16.mxu0 %v10138_v18  ;;  %v10177_v16 = vld [vmem:[%s10893_s18 + $0xa20] sm:$0xff]   ;;  %v10179_v18 = vld [vmem:[%s10893_s18 + $0xa58] sm:$0xff]  }
 0x1ad   : > { %v11280_v30 = vadd.f32 %v8836_v25, %v6222_v24  ;;  %9129 = vmatpush3.bf16.msra.mxu1 %v10137_v15  ;;  %v10180_v19 = vld [vmem:[%s10893_s18 + $0xad8] sm:$0xff]   ;;  %v10185_v24 = vld [vmem:[%s10893_s18 + $0xa10] sm:$0xff]   ;;  %v10188_v27 = vld [vmem:[%s10893_s18 + $0xac8] sm:$0xff]  }
 0x1ae   : > { %v8838_v32 = vpop.f32.mrf.mxu1  ;;  %9130 = vmatprep.subr.bf16.mxu1 %v10139_v20  ;;  %v10181_v20 = vld [vmem:[%s10893_s18 + $0xa18] sm:$0xff]   ;;  %v10186_v25 = vld [vmem:[%s10893_s18 + $0xa90] sm:$0xff]  }
 0x1af   : > { %9109 = vmatpush3.bf16.msra.mxu0 %v10140_v23  ;;  %v10182_v21 = vld [vmem:[%s10893_s18 + $0xa98] sm:$0xff]   ;;  %v10184_v23 = vld [vmem:[%s10893_s18 + $0xad0] sm:$0xff]   ;;  %v10190_v32 = vld [vmem:[%s10893_s18 + $0xa88] sm:$0xff]  }
 0x1b0   : > { %9110 = vmatprep.subr.bf16.mxu0 %v10142_v29  ;;  %v322_v28 = vld [vmem:[%s10886_s26 + $0x28] sm:$0xff] }
 0x1b1   : > { %9131 = vmatpush3.bf16.msra.mxu1 %v10141_v26  ;;  %v10187_v26 = vld [vmem:[%s10893_s18 + $0xa48] sm:$0xff]  }
 0x1b2   : > { %9132 = vmatprep.subr.bf16.mxu1 %v10143_v31  ;;  %v10189_v29 = vld [vmem:[%s10893_s18 + $0xa08] sm:$0xff]   ;;  %v1862_v31 = vcombine.high %v322_v28, %v322_v28 }
 0x1b3   : > { %9111 = vmatpush3.bf16.msra.mxu0 %v10144_v33  ;;  %v10191_v33 = vld [vmem:[%s10893_s18 + $0xa40] sm:$0xff]  }
 0x1b4   : > { %9112 = vmatprep.subr.bf16.mxu0 %v10146_v35  ;;  %v11338_v35 = vrot.slane %v1862_v31, %v10948_v42  ;;  %v10231_v31 = vld [vmem:[%s10893_s18 + $0xcb8] sm:$0xff]  }
 0x1b5   : > { %9133 = vmatpush3.bf16.msra.mxu1 %v10145_v34 }
 0x1b6   : > { %9134 = vmatprep.subr.bf16.mxu1 %v10147_v36  ;;  %v10192_v36 = vld [vmem:[%s10893_s18 + $0xac0] sm:$0xff]  }
 0x1b7   : > { %9113 = vmatpush3.bf16.msra.mxu0 %v10148_v37  ;;  %v10193_v37 = vld [vmem:[%s10893_s18 + $0xa00] sm:$0xff]  }
 0x1b8   : > { %9114 = vmatprep.subr.bf16.mxu0 %v10150_v39  ;;  %v1878_v39 = vcombine.high %v11338_v35, %v11338_v35 }
 0x1b9   : > { %9135 = vmatpush3.bf16.msra.mxu1 %v10149_v38 }
 0x1ba   : > { %9136 = vmatprep.subr.bf16.mxu1 %v10151_v40  ;;  %v10194_v40 = vld [vmem:[%s10893_s18 + $0xa80] sm:$0xff]  }
 0x1bb   : > { %9115 = vmatpush3.bf16.msra.mxu0 %v10152_v41 }
 0x1bc   : > { %9116 = vmatprep.subr.bf16.mxu0 %v10154_v44  ;;  %v10195_v44 = vld [vmem:[%s10893_s18 + $0xb78] sm:$0xff]  }
 0x1bd   : > { %9137 = vmatpush3.bf16.msra.mxu1 %v10153_v43 }
 0x1be   : > { %9138 = vmatprep.subr.bf16.mxu1 %v10155_v45  ;;  %v10196_v45 = vld [vmem:[%s10893_s18 + $0xbf8] sm:$0xff]  }
 0x1bf   : > { %9117 = vmatpush3.bf16.msra.mxu0 %v10156_v46  ;;  %v1906_v46 = vrot.slane %v1878_v39, %v10948_v42 }
 0x1c0   : > { %9118 = vmatprep.subr.bf16.mxu0 %v10158_v48  ;;  %v10198_v48 = vld [vmem:[%s10893_s18 + $0xbb8] sm:$0xff]  }
 0x1c1   : > { %9139 = vmatpush3.bf16.msra.mxu1 %v10157_v47  ;;  %v10197_v47 = vld [vmem:[%s10893_s18 + $0xb38] sm:$0xff]  }
 0x1c2   : > { %9140 = vmatprep.subr.bf16.mxu1 %v10159_v49 }
 0x1c3   : > { %9119 = vmatpush3.bf16.msra.mxu0 %v10160_v50  ;;  %v10199_v50 = vld [vmem:[%s10893_s18 + $0xb70] sm:$0xff]  }
 0x1c4   : > { %9148 = vmatprep.subr.bf16.mxu0 %v10163_v53 }
 0x1c5   : > { %9141 = vmatpush3.bf16.msra.mxu1 %v10161_v51  ;;  %v10200_v51 = vld [vmem:[%s10893_s18 + $0xbf0] sm:$0xff]  }
 0x1c6   : > { %v8856_v61 = vpop.f32.mrf.mxu0  ;;  %6780 = vmatmul.mubr.bf16.vlgmr.msra.gmra.mxu0 %v1843_v52  ;;  %9170 = vmatprep.subr.bf16.mxu1 %v10164_v54  ;;  %v1910_v52 = vcombine.high %v1906_v46, %v1906_v46  ;;  %v10201_v54 = vld [vmem:[%s10893_s18 + $0xb30] sm:$0xff]  }
 0x1c7   : > { %9149 = vmatpush3.bf16.msra.mxu0 %v10165_v55  ;;  %v10202_v55 = vld [vmem:[%s10893_s18 + $0xbb0] sm:$0xff]  }
 0x1c8   : > { %v8878_v63 = vpop.f32.mrf.mxu1  ;;  %6820 = vmatmul.mubr.bf16.vlgmr.msra.gmra.mxu1 %v1859_v57  ;;  %v8857_v0 = vpop.f32.mrf.mxu0  ;;  %9150 = vmatprep.subr.bf16.mxu0 %v10167_v58  ;;  %v10203_v58 = vld [vmem:[%s10893_s18 + $0xb68] sm:$0xff]  }
 0x1c9   : > { %9171 = vmatpush3.bf16.msra.mxu1 %v10166_v56  ;;  %v8858_v2 = vadd.f32 %v8857_v0, %v8856_v61  ;;  %v10204_v61 = vld [vmem:[%s10893_s18 + $0xbe8] sm:$0xff]  }
 0x1ca   : > { %v8879_v4 = vpop.f32.mrf.mxu1  ;;  %v8859_v5 = vpop.f32.mrf.mxu0  ;;  %9172 = vmatprep.subr.bf16.mxu1 %v10168_v59 }
 0x1cb   : > { %v6302_v7 = vadd.f32 %v8858_v2, %v11280_v30  ;;  %v8880_v8 = vadd.f32 %v8879_v4, %v8878_v63  ;;  %9151 = vmatpush3.bf16.msra.mxu0 %v10169_v60  ;;  %v1869_v30 = vrot.slane %v322_v28, %v10948_v42  ;;  %v10205_v63 = vld [vmem:[%s10893_s18 + $0xb28] sm:$0xff]   ;;  %v10207_v5 = vld [vmem:[%s10893_s18 + $0xb60] sm:$0xff]   ;;  %v10228_v28 = vld [vmem:[%s10893_s18 + $0xc78] sm:$0xff]  }
 0x1cc   : > { %v8881_v10 = vpop.f32.mrf.mxu1  ;;  %v8860_v11 = vpop.f32.mrf.mxu0  ;;  %9152 = vmatprep.subr.bf16.mxu0 %v10171_v1  ;;  %v10206_v2 = vld [vmem:[%s10893_s18 + $0xba8] sm:$0xff]  }
 0x1cd   : > { %v11317_v13 = vadd.f32 %v8880_v8, %v6302_v7  ;;  %9173 = vmatpush3.bf16.msra.mxu1 %v10170_v62  ;;  %v1877_v34 = vcombine.high %v1869_v30, %v1869_v30  ;;  %v1885_v43 = vrot.slane %v1869_v30, %v10948_v42  ;;  %v10208_v7 = vld [vmem:[%s10893_s18 + $0xbe0] sm:$0xff]   ;;  %v10211_v11 = vld [vmem:[%s10893_s18 + $0xb58] sm:$0xff]  }
 0x1ce   : > { %v8882_v15 = vpop.f32.mrf.mxu1  ;;  %9174 = vmatprep.subr.bf16.mxu1 %v10172_v3  ;;  %v10210_v10 = vld [vmem:[%s10893_s18 + $0xba0] sm:$0xff]   ;;  %v10230_v30 = vld [vmem:[%s10893_s18 + $0xc38] sm:$0xff]  }
 0x1cf   : > { %9153 = vmatpush3.bf16.msra.mxu0 %v10173_v6  ;;  %v1899_v38 = vrot.slane %v1877_v34, %v10948_v42  ;;  %v1907_v49 = vcombine.high %v1885_v43, %v1885_v43  ;;  %v10215_v15 = vld [vmem:[%s10893_s18 + $0xb50] sm:$0xff]  }
 0x1d0   : > { %9154 = vmatprep.subr.bf16.mxu0 %v10175_v12  ;;  %v10212_v12 = vld [vmem:[%s10893_s18 + $0xbd8] sm:$0xff]   ;;  %v10233_v34 = vld [vmem:[%s10893_s18 + $0xcf0] sm:$0xff]  }
 0x1d1   : > { %9175 = vmatpush3.bf16.msra.mxu1 %v10174_v9  ;;  %6859 = vmatprep.mubr.bf16.mxu0 %v1899_v38  ;;  %v1909_v41 = vcombine.high %v1899_v38, %v1899_v38  ;;  %v10209_v9 = vld [vmem:[%s10893_s18 + $0xb20] sm:$0xff]  }
 0x1d2   : > { %9176 = vmatprep.subr.bf16.mxu1 %v10176_v14  ;;  %v10214_v14 = vld [vmem:[%s10893_s18 + $0xb98] sm:$0xff]  }
 0x1d3   : > { %9155 = vmatpush3.bf16.msra.mxu0 %v10177_v16  ;;  %6899 = vmatprep.mubr.bf16.mxu1 %v1909_v41  ;;  %v10216_v16 = vld [vmem:[%s10893_s18 + $0xbd0] sm:$0xff]  }
 0x1d4   : > { %9156 = vmatprep.subr.bf16.mxu0 %v10179_v18  ;;  %v10218_v18 = vld [vmem:[%s10893_s18 + $0xb90] sm:$0xff]  }
 0x1d5   : > { %9177 = vmatpush3.bf16.msra.mxu1 %v10178_v17  ;;  %v10217_v17 = vld [vmem:[%s10893_s18 + $0xb10] sm:$0xff]  }
 0x1d6   : > { %9178 = vmatprep.subr.bf16.mxu1 %v10180_v19  ;;  %v10219_v19 = vld [vmem:[%s10893_s18 + $0xb48] sm:$0xff]  }
 0x1d7   : > { %9157 = vmatpush3.bf16.msra.mxu0 %v10181_v20  ;;  %v10220_v20 = vld [vmem:[%s10893_s18 + $0xbc8] sm:$0xff]  }
 0x1d8   : > { %9158 = vmatprep.subr.bf16.mxu0 %v10183_v22  ;;  %v10222_v22 = vld [vmem:[%s10893_s18 + $0xb88] sm:$0xff]  }
 0x1d9   : > { %9179 = vmatpush3.bf16.msra.mxu1 %v10182_v21  ;;  %v10221_v21 = vld [vmem:[%s10893_s18 + $0xb08] sm:$0xff]  }
 0x1da   : > { %9180 = vmatprep.subr.bf16.mxu1 %v10184_v23  ;;  %v10223_v23 = vld [vmem:[%s10893_s18 + $0xb40] sm:$0xff]  }
 0x1db   : > { %9159 = vmatpush3.bf16.msra.mxu0 %v10185_v24  ;;  %v10224_v24 = vld [vmem:[%s10893_s18 + $0xbc0] sm:$0xff]  }
 0x1dc   : > { %9160 = vmatprep.subr.bf16.mxu0 %v10187_v26  ;;  %v10226_v26 = vld [vmem:[%s10893_s18 + $0xb80] sm:$0xff]  }
 0x1dd   : > { %9181 = vmatpush3.bf16.msra.mxu1 %v10186_v25  ;;  %v10225_v25 = vld [vmem:[%s10893_s18 + $0xb00] sm:$0xff]  }
 0x1de   : > { %9182 = vmatprep.subr.bf16.mxu1 %v10188_v27  ;;  %v1892_v27 = vrot.slane %v11338_v35, %v10948_v42  ;;  %v10234_v35 = vld [vmem:[%s10893_s18 + $0xc30] sm:$0xff]  }
 0x1df   : > { %9161 = vmatpush3.bf16.msra.mxu0 %v10189_v29  ;;  %v10229_v29 = vld [vmem:[%s10893_s18 + $0xcf8] sm:$0xff]  }
 0x1e0   : > { %9162 = vmatprep.subr.bf16.mxu0 %v10191_v33  ;;  %v10232_v33 = vld [vmem:[%s10893_s18 + $0xc70] sm:$0xff]  }
 0x1e1   : > { %9183 = vmatpush3.bf16.msra.mxu1 %v10190_v32  ;;  %v1908_v32 = vcombine.high %v1892_v27, %v1892_v27 }
 0x1e2   : > { %9184 = vmatprep.subr.bf16.mxu1 %v10192_v36 }
 0x1e3   : > { %9163 = vmatpush3.bf16.msra.mxu0 %v10193_v37  ;;  %v10235_v37 = vld [vmem:[%s10893_s18 + $0xcb0] sm:$0xff]  }
 0x1e4   : > { %9192 = vmatprep.subr.bf16.mxu0 %v10195_v44 }
 0x1e5   : > { %9185 = vmatpush3.bf16.msra.mxu1 %v10194_v40  ;;  %v10236_v40 = vld [vmem:[%s10893_s18 + $0xc68] sm:$0xff]  }
 0x1e6   : > { %v8900_v53 = vpop.f32.mrf.mxu0  ;;  %6860 = vmatmul.mubr.bf16.vlgmr.msra.gmra.mxu0 %v1885_v43  ;;  %9214 = vmatprep.subr.bf16.mxu1 %v10196_v45  ;;  %v10237_v43 = vld [vmem:[%s10893_s18 + $0xce8] sm:$0xff]  }
 0x1e7   : > { %9193 = vmatpush3.bf16.msra.mxu0 %v10197_v47  ;;  %6939 = vmatprep.mubr.bf16.mxu0 %v1906_v46  ;;  %v10238_v46 = vld [vmem:[%s10893_s18 + $0xc28] sm:$0xff]  }
 0x1e8   : > { %v8922_v56 = vpop.f32.mrf.mxu1  ;;  %6900 = vmatmul.mubr.bf16.vlgmr.msra.gmra.mxu1 %v1907_v49  ;;  %v8901_v57 = vpop.f32.mrf.mxu0  ;;  %9194 = vmatprep.subr.bf16.mxu0 %v10199_v50  ;;  %v10239_v49 = vld [vmem:[%s10893_s18 + $0xca8] sm:$0xff]  }
 0x1e9   : > { %9215 = vmatpush3.bf16.msra.mxu1 %v10198_v48  ;;  %v8902_v59 = vadd.f32 %v8901_v57, %v8900_v53  ;;  %6979 = vmatprep.mubr.bf16.mxu1 %v1910_v52  ;;  %v10240_v52 = vld [vmem:[%s10893_s18 + $0xc60] sm:$0xff]  }
 0x1ea   : > { %v8923_v60 = vpop.f32.mrf.mxu1  ;;  %v8903_v62 = vpop.f32.mrf.mxu0  ;;  %9216 = vmatprep.subr.bf16.mxu1 %v10200_v51  ;;  %v10243_v57 = vld [vmem:[%s10893_s18 + $0xca0] sm:$0xff]  }
 0x1eb   : > { %v6382_v0 = vadd.f32 %v8902_v59, %v11317_v13  ;;  %v8924_v1 = vadd.f32 %v8923_v60, %v8922_v56  ;;  %9195 = vmatpush3.bf16.msra.mxu0 %v10201_v54  ;;  %v10213_v13 = vld [vmem:[%s10893_s18 + $0xb18] sm:$0xff]   ;;  %v10241_v54 = vld [vmem:[%s10893_s18 + $0xce0] sm:$0xff]   ;;  %v10248_v62 = vld [vmem:[%s10893_s18 + $0xc50] sm:$0xff]  }
 0x1ec   : > { %v8925_v3 = vpop.f32.mrf.mxu1  ;;  %v8904_v4 = vpop.f32.mrf.mxu0  ;;  %9196 = vmatprep.subr.bf16.mxu0 %v10203_v58  ;;  %v10242_v56 = vld [vmem:[%s10893_s18 + $0xc20] sm:$0xff]   ;;  %v10244_v58 = vld [vmem:[%s10893_s18 + $0xc58] sm:$0xff]  }
 0x1ed   : > { %v11362_v6 = vadd.f32 %v8924_v1, %v6382_v0  ;;  %9217 = vmatpush3.bf16.msra.mxu1 %v10202_v55  ;;  %v10245_v59 = vld [vmem:[%s10893_s18 + $0xcd8] sm:$0xff]   ;;  %v10250_v0 = vld [vmem:[%s10893_s18 + $0xc10] sm:$0xff]   ;;  %v10253_v3 = vld [vmem:[%s10893_s18 + $0xcc8] sm:$0xff]  }
 0x1ee   : > { %v8926_v8 = vpop.f32.mrf.mxu1  ;;  %9218 = vmatprep.subr.bf16.mxu1 %v10204_v61  ;;  %v10246_v61 = vld [vmem:[%s10893_s18 + $0xc18] sm:$0xff]   ;;  %v10251_v1 = vld [vmem:[%s10893_s18 + $0xc90] sm:$0xff]   ;;  %v10254_v4 = vld [vmem:[%s10893_s18 + $0xc08] sm:$0xff]  }
 0x1ef   : > { %9197 = vmatpush3.bf16.msra.mxu0 %v10205_v63  ;;  %v10247_v60 = vld [vmem:[%s10893_s18 + $0xc98] sm:$0xff]   ;;  %v10249_v63 = vld [vmem:[%s10893_s18 + $0xcd0] sm:$0xff]  }
 0x1f0   : > { %9198 = vmatprep.subr.bf16.mxu0 %v10207_v5  ;;  %v323_v5 = vld [vmem:[%s10886_s26 + $0x30] sm:$0xff] }
 0x1f1   : > { %9219 = vmatpush3.bf16.msra.mxu1 %v10206_v2  ;;  %v10252_v2 = vld [vmem:[%s10893_s18 + $0xc48] sm:$0xff]   ;;  %v1911_v8 = vcombine.high %v323_v5, %v323_v5 }
 0x1f2   : > { %9220 = vmatprep.subr.bf16.mxu1 %v10208_v7  ;;  %v1918_v7 = vrot.slane %v323_v5, %v10948_v42  ;;  %v10294_v5 = vld [vmem:[%s10893_s18 + $0xef8] sm:$0xff]  }
 0x1f3   : > { %9199 = vmatpush3.bf16.msra.mxu0 %v10209_v9  ;;  %v10256_v9 = vld [vmem:[%s10893_s18 + $0xc40] sm:$0xff]  }
 0x1f4   : > { %9200 = vmatprep.subr.bf16.mxu0 %v10211_v11  ;;  %v1926_v11 = vcombine.high %v1918_v7, %v1918_v7 }
 0x1f5   : > { %9221 = vmatpush3.bf16.msra.mxu1 %v10210_v10  ;;  %v10257_v10 = vld [vmem:[%s10893_s18 + $0xcc0] sm:$0xff]  }
 0x1f6   : > { %9222 = vmatprep.subr.bf16.mxu1 %v10212_v12  ;;  %v11421_v12 = vrot.slane %v1911_v8, %v10948_v42 }
 0x1f7   : > { %9201 = vmatpush3.bf16.msra.mxu0 %v10213_v13  ;;  %v10258_v13 = vld [vmem:[%s10893_s18 + $0xc00] sm:$0xff]  }
 0x1f8   : > { %9202 = vmatprep.subr.bf16.mxu0 %v10215_v15  ;;  %v1948_v15 = vrot.slane %v1926_v11, %v10948_v42 }
 0x1f9   : > { %9223 = vmatpush3.bf16.msra.mxu1 %v10214_v14  ;;  %v10259_v14 = vld [vmem:[%s10893_s18 + $0xc80] sm:$0xff]  }
 0x1fa   : > { %9224 = vmatprep.subr.bf16.mxu1 %v10216_v16  ;;  %v1927_v16 = vcombine.high %v11421_v12, %v11421_v12 }
 0x1fb   : > { %9203 = vmatpush3.bf16.msra.mxu0 %v10217_v17  ;;  %v1934_v17 = vrot.slane %v1918_v7, %v10948_v42  ;;  %v10296_v7 = vld [vmem:[%s10893_s18 + $0xeb8] sm:$0xff]  }
 0x1fc   : > { %9204 = vmatprep.subr.bf16.mxu0 %v10219_v19  ;;  %v1958_v19 = vcombine.high %v1948_v15, %v1948_v15 }
 0x1fd   : > { %9225 = vmatpush3.bf16.msra.mxu1 %v10218_v18  ;;  %v10260_v18 = vld [vmem:[%s10893_s18 + $0xd78] sm:$0xff]  }
 0x1fe   : > { %9226 = vmatprep.subr.bf16.mxu1 %v10220_v20  ;;  %v10261_v20 = vld [vmem:[%s10893_s18 + $0xdf8] sm:$0xff]  }
 0x1ff   : > { %9205 = vmatpush3.bf16.msra.mxu0 %v10221_v21  ;;  %v1955_v21 = vrot.slane %v1927_v16, %v10948_v42  ;;  %v10301_v16 = vld [vmem:[%s10893_s18 + $0xe68] sm:$0xff]  }
 0x200   : > { %9206 = vmatprep.subr.bf16.mxu0 %v10223_v23  ;;  %v10263_v23 = vld [vmem:[%s10893_s18 + $0xdb8] sm:$0xff]  }
 0x201   : > { %9227 = vmatpush3.bf16.msra.mxu1 %v10222_v22  ;;  %v10262_v22 = vld [vmem:[%s10893_s18 + $0xd38] sm:$0xff]  }
 0x202   : > { %9228 = vmatprep.subr.bf16.mxu1 %v10224_v24  ;;  %v1956_v24 = vcombine.high %v1934_v17, %v1934_v17 }
 0x203   : > { %9207 = vmatpush3.bf16.msra.mxu0 %v10225_v25  ;;  %v10264_v25 = vld [vmem:[%s10893_s18 + $0xd70] sm:$0xff]  }
 0x204   : > { %9236 = vmatprep.subr.bf16.mxu0 %v10228_v28 }
 0x205   : > { %9229 = vmatpush3.bf16.msra.mxu1 %v10226_v26  ;;  %v10265_v26 = vld [vmem:[%s10893_s18 + $0xdf0] sm:$0xff]  }
 0x206   : > { %v8944_v36 = vpop.f32.mrf.mxu0  ;;  %6940 = vmatmul.mubr.bf16.vlgmr.msra.gmra.mxu0 %v1892_v27  ;;  %9258 = vmatprep.subr.bf16.mxu1 %v10229_v29  ;;  %v1959_v27 = vcombine.high %v1955_v21, %v1955_v21  ;;  %v10266_v29 = vld [vmem:[%s10893_s18 + $0xd30] sm:$0xff]  }
 0x207   : > { %9237 = vmatpush3.bf16.msra.mxu0 %v10230_v30  ;;  %7019 = vmatprep.mubr.bf16.mxu0 %v1948_v15  ;;  %v10267_v30 = vld [vmem:[%s10893_s18 + $0xdb0] sm:$0xff]  }
 0x208   : > { %v8966_v38 = vpop.f32.mrf.mxu1  ;;  %6980 = vmatmul.mubr.bf16.vlgmr.msra.gmra.mxu1 %v1908_v32  ;;  %v8945_v39 = vpop.f32.mrf.mxu0  ;;  %9238 = vmatprep.subr.bf16.mxu0 %v10232_v33  ;;  %v10268_v33 = vld [vmem:[%s10893_s18 + $0xd68] sm:$0xff]  }
 0x209   : > { %9259 = vmatpush3.bf16.msra.mxu1 %v10231_v31  ;;  %v8946_v41 = vadd.f32 %v8945_v39, %v8944_v36  ;;  %7059 = vmatprep.mubr.bf16.mxu1 %v1958_v19  ;;  %v10269_v36 = vld [vmem:[%s10893_s18 + $0xde8] sm:$0xff]  }
 0x20a   : > { %v8967_v44 = vpop.f32.mrf.mxu1  ;;  %v8947_v45 = vpop.f32.mrf.mxu0  ;;  %9260 = vmatprep.subr.bf16.mxu1 %v10233_v34 }
 0x20b   : > { %v6462_v47 = vadd.f32 %v8946_v41, %v11362_v6  ;;  %v8968_v48 = vadd.f32 %v8967_v44, %v8966_v38  ;;  %9239 = vmatpush3.bf16.msra.mxu0 %v10234_v35  ;;  %v10255_v6 = vld [vmem:[%s10893_s18 + $0xc88] sm:$0xff]   ;;  %v10272_v45 = vld [vmem:[%s10893_s18 + $0xd60] sm:$0xff]  }
 0x20c   : > { %v8969_v50 = vpop.f32.mrf.mxu1  ;;  %v8948_v51 = vpop.f32.mrf.mxu0  ;;  %9240 = vmatprep.subr.bf16.mxu0 %v10236_v40  ;;  %v10270_v38 = vld [vmem:[%s10893_s18 + $0xd28] sm:$0xff]  }
 0x20d   : > { %v11399_v53 = vadd.f32 %v8968_v48, %v6462_v47  ;;  %9261 = vmatpush3.bf16.msra.mxu1 %v10235_v37  ;;  %v10271_v41 = vld [vmem:[%s10893_s18 + $0xda8] sm:$0xff]   ;;  %v10273_v47 = vld [vmem:[%s10893_s18 + $0xde0] sm:$0xff]   ;;  %v10276_v51 = vld [vmem:[%s10893_s18 + $0xd58] sm:$0xff]  }
 0x20e   : > { %v8970_v55 = vpop.f32.mrf.mxu1  ;;  %9262 = vmatprep.subr.bf16.mxu1 %v10237_v43  ;;  %v10275_v50 = vld [vmem:[%s10893_s18 + $0xda0] sm:$0xff]  }
 0x20f   : > { %9241 = vmatpush3.bf16.msra.mxu0 %v10238_v46  ;;  %v10280_v55 = vld [vmem:[%s10893_s18 + $0xd50] sm:$0xff]  }
 0x210   : > { %9242 = vmatprep.subr.bf16.mxu0 %v10240_v52  ;;  %v10277_v52 = vld [vmem:[%s10893_s18 + $0xdd8] sm:$0xff]  }
 0x211   : > { %9263 = vmatpush3.bf16.msra.mxu1 %v10239_v49  ;;  %v10274_v49 = vld [vmem:[%s10893_s18 + $0xd20] sm:$0xff]  }
 0x212   : > { %9264 = vmatprep.subr.bf16.mxu1 %v10241_v54  ;;  %v10279_v54 = vld [vmem:[%s10893_s18 + $0xd98] sm:$0xff]  }
 0x213   : > { %9243 = vmatpush3.bf16.msra.mxu0 %v10242_v56  ;;  %v10281_v56 = vld [vmem:[%s10893_s18 + $0xdd0] sm:$0xff]  }
 0x214   : > { %9244 = vmatprep.subr.bf16.mxu0 %v10244_v58  ;;  %v10283_v58 = vld [vmem:[%s10893_s18 + $0xd90] sm:$0xff]  }
 0x215   : > { %9265 = vmatpush3.bf16.msra.mxu1 %v10243_v57  ;;  %v10282_v57 = vld [vmem:[%s10893_s18 + $0xd10] sm:$0xff]  }
 0x216   : > { %9266 = vmatprep.subr.bf16.mxu1 %v10245_v59  ;;  %v10284_v59 = vld [vmem:[%s10893_s18 + $0xd48] sm:$0xff]  }
 0x217   : > { %9245 = vmatpush3.bf16.msra.mxu0 %v10246_v61  ;;  %v10285_v61 = vld [vmem:[%s10893_s18 + $0xdc8] sm:$0xff]  }
 0x218   : > { %9246 = vmatprep.subr.bf16.mxu0 %v10248_v62  ;;  %v10287_v62 = vld [vmem:[%s10893_s18 + $0xd88] sm:$0xff]  }
 0x219   : > { %9267 = vmatpush3.bf16.msra.mxu1 %v10247_v60  ;;  %v10286_v60 = vld [vmem:[%s10893_s18 + $0xd08] sm:$0xff]  }
 0x21a   : > { %9268 = vmatprep.subr.bf16.mxu1 %v10249_v63  ;;  %v10288_v63 = vld [vmem:[%s10893_s18 + $0xd40] sm:$0xff]  }
 0x21b   : > { %9247 = vmatpush3.bf16.msra.mxu0 %v10250_v0  ;;  %v10289_v0 = vld [vmem:[%s10893_s18 + $0xdc0] sm:$0xff]  }
 0x21c   : > { %9248 = vmatprep.subr.bf16.mxu0 %v10252_v2  ;;  %v10291_v2 = vld [vmem:[%s10893_s18 + $0xd80] sm:$0xff]  }
 0x21d   : > { %9269 = vmatpush3.bf16.msra.mxu1 %v10251_v1  ;;  %v10290_v1 = vld [vmem:[%s10893_s18 + $0xd00] sm:$0xff]  }
 0x21e   : > { %9270 = vmatprep.subr.bf16.mxu1 %v10253_v3  ;;  %v1941_v3 = vrot.slane %v11421_v12, %v10948_v42  ;;  %v10299_v12 = vld [vmem:[%s10893_s18 + $0xe30] sm:$0xff]  }
 0x21f   : > { %9249 = vmatpush3.bf16.msra.mxu0 %v10254_v4  ;;  %v10293_v4 = vld [vmem:[%s10893_s18 + $0xe78] sm:$0xff]  }
 0x220   : > { %9250 = vmatprep.subr.bf16.mxu0 %v10256_v9  ;;  %v1957_v8 = vcombine.high %v1941_v3, %v1941_v3  ;;  %v10297_v9 = vld [vmem:[%s10893_s18 + $0xe70] sm:$0xff]  }
 0x221   : > { %9271 = vmatpush3.bf16.msra.mxu1 %v10255_v6  ;;  %v10295_v6 = vld [vmem:[%s10893_s18 + $0xe38] sm:$0xff]  }
 0x222   : > { %9272 = vmatprep.subr.bf16.mxu1 %v10257_v10  ;;  %v10298_v10 = vld [vmem:[%s10893_s18 + $0xef0] sm:$0xff]  }
 0x223   : > { %9251 = vmatpush3.bf16.msra.mxu0 %v10258_v13  ;;  %v10300_v13 = vld [vmem:[%s10893_s18 + $0xeb0] sm:$0xff]  }
 0x224   : > { %9280 = vmatprep.subr.bf16.mxu0 %v10260_v18  ;;  %v10302_v18 = vld [vmem:[%s10893_s18 + $0xee8] sm:$0xff]  }
 0x225   : > { %9273 = vmatpush3.bf16.msra.mxu1 %v10259_v14 }
 0x226   : > { %v8988_v28 = vpop.f32.mrf.mxu0  ;;  %7020 = vmatmul.mubr.bf16.vlgmr.msra.gmra.mxu0 %v1934_v17  ;;  %9302 = vmatprep.subr.bf16.mxu1 %v10261_v20 }
 0x227   : > { %9281 = vmatpush3.bf16.msra.mxu0 %v10262_v22  ;;  %7099 = vmatprep.mubr.bf16.mxu0 %v1955_v21  ;;  %v10303_v21 = vld [vmem:[%s10893_s18 + $0xe28] sm:$0xff]  }
 0x228   : > { %v9010_v31 = vpop.f32.mrf.mxu1  ;;  %7060 = vmatmul.mubr.bf16.vlgmr.msra.gmra.mxu1 %v1956_v24  ;;  %v8989_v32 = vpop.f32.mrf.mxu0  ;;  %9282 = vmatprep.subr.bf16.mxu0 %v10264_v25  ;;  %v10304_v24 = vld [vmem:[%s10893_s18 + $0xea8] sm:$0xff]  }
 0x229   : > { %9303 = vmatpush3.bf16.msra.mxu1 %v10263_v23  ;;  %v8990_v34 = vadd.f32 %v8989_v32, %v8988_v28  ;;  %7139 = vmatprep.mubr.bf16.mxu1 %v1959_v27  ;;  %v10305_v27 = vld [vmem:[%s10893_s18 + $0xe60] sm:$0xff]  }
 0x22a   : > { %v9011_v35 = vpop.f32.mrf.mxu1  ;;  %v8991_v37 = vpop.f32.mrf.mxu0  ;;  %9304 = vmatprep.subr.bf16.mxu1 %v10265_v26  ;;  %v10308_v32 = vld [vmem:[%s10893_s18 + $0xea0] sm:$0xff]  }
 0x22b   : > { %v6542_v39 = vadd.f32 %v8990_v34, %v11399_v53  ;;  %v9012_v40 = vadd.f32 %v9011_v35, %v9010_v31  ;;  %9283 = vmatpush3.bf16.msra.mxu0 %v10266_v29  ;;  %v10278_v53 = vld [vmem:[%s10893_s18 + $0xd18] sm:$0xff]   ;;  %v10306_v29 = vld [vmem:[%s10893_s18 + $0xee0] sm:$0xff]   ;;  %v10313_v37 = vld [vmem:[%s10893_s18 + $0xe50] sm:$0xff]  }
 0x22c   : > { %v9013_v43 = vpop.f32.mrf.mxu1  ;;  %v8992_v44 = vpop.f32.mrf.mxu0  ;;  %9284 = vmatprep.subr.bf16.mxu0 %v10268_v33  ;;  %v10307_v31 = vld [vmem:[%s10893_s18 + $0xe20] sm:$0xff]   ;;  %v10309_v33 = vld [vmem:[%s10893_s18 + $0xe58] sm:$0xff]  }
 0x22d   : > { %v11444_v46 = vadd.f32 %v9012_v40, %v6542_v39  ;;  %9305 = vmatpush3.bf16.msra.mxu1 %v10267_v30  ;;  %v10310_v34 = vld [vmem:[%s10893_s18 + $0xed8] sm:$0xff]   ;;  %v10315_v39 = vld [vmem:[%s10893_s18 + $0xe10] sm:$0xff]   ;;  %v10318_v43 = vld [vmem:[%s10893_s18 + $0xec8] sm:$0xff]  }
 0x22e   : > { %v9014_v48 = vpop.f32.mrf.mxu1  ;;  %9306 = vmatprep.subr.bf16.mxu1 %v10269_v36  ;;  %v10311_v36 = vld [vmem:[%s10893_s18 + $0xe18] sm:$0xff]   ;;  %v10316_v40 = vld [vmem:[%s10893_s18 + $0xe90] sm:$0xff]   ;;  %v10319_v44 = vld [vmem:[%s10893_s18 + $0xe08] sm:$0xff]  }
 0x22f   : > { %9285 = vmatpush3.bf16.msra.mxu0 %v10270_v38  ;;  %v10312_v35 = vld [vmem:[%s10893_s18 + $0xe98] sm:$0xff]   ;;  %v10314_v38 = vld [vmem:[%s10893_s18 + $0xed0] sm:$0xff]  }
 0x230   : > { %9286 = vmatprep.subr.bf16.mxu0 %v10272_v45  ;;  %v324_v45 = vld [vmem:[%s10886_s26 + $0x38] sm:$0xff] }
 0x231   : > { %9307 = vmatpush3.bf16.msra.mxu1 %v10271_v41  ;;  %v10317_v41 = vld [vmem:[%s10893_s18 + $0xe48] sm:$0xff]   ;;  %v1960_v48 = vcombine.high %v324_v45, %v324_v45 }
 0x232   : > { %9308 = vmatprep.subr.bf16.mxu1 %v10273_v47  ;;  %v1967_v47 = vrot.slane %v324_v45, %v10948_v42  ;;  %v10359_v45 = vld [vmem:[%s10893_s18 + $0x10f8] sm:$0xff]  }
 0x233   : > { %9287 = vmatpush3.bf16.msra.mxu0 %v10274_v49  ;;  %v10321_v49 = vld [vmem:[%s10893_s18 + $0xe40] sm:$0xff]  }
 0x234   : > { %9288 = vmatprep.subr.bf16.mxu0 %v10276_v51  ;;  %v1975_v51 = vcombine.high %v1967_v47, %v1967_v47 }
 0x235   : > { %9309 = vmatpush3.bf16.msra.mxu1 %v10275_v50  ;;  %v10322_v50 = vld [vmem:[%s10893_s18 + $0xec0] sm:$0xff]  }
 0x236   : > { %9310 = vmatprep.subr.bf16.mxu1 %v10277_v52  ;;  %v11503_v52 = vrot.slane %v1960_v48, %v10948_v42 }
 0x237   : > { %9289 = vmatpush3.bf16.msra.mxu0 %v10278_v53  ;;  %v10323_v53 = vld [vmem:[%s10893_s18 + $0xe00] sm:$0xff]  }
 0x238   : > { %9290 = vmatprep.subr.bf16.mxu0 %v10280_v55  ;;  %v1997_v55 = vrot.slane %v1975_v51, %v10948_v42 }
 0x239   : > { %9311 = vmatpush3.bf16.msra.mxu1 %v10279_v54  ;;  %v10324_v54 = vld [vmem:[%s10893_s18 + $0xe80] sm:$0xff]  }
 0x23a   : > { %9312 = vmatprep.subr.bf16.mxu1 %v10281_v56  ;;  %v1976_v56 = vcombine.high %v11503_v52, %v11503_v52 }
 0x23b   : > { %9291 = vmatpush3.bf16.msra.mxu0 %v10282_v57  ;;  %v1983_v57 = vrot.slane %v1967_v47, %v10948_v42  ;;  %v10361_v47 = vld [vmem:[%s10893_s18 + $0x10b8] sm:$0xff]  }
 0x23c   : > { %9292 = vmatprep.subr.bf16.mxu0 %v10284_v59  ;;  %v2007_v59 = vcombine.high %v1997_v55, %v1997_v55 }
 0x23d   : > { %9313 = vmatpush3.bf16.msra.mxu1 %v10283_v58  ;;  %v10325_v58 = vld [vmem:[%s10893_s18 + $0xf78] sm:$0xff]  }
 0x23e   : > { %9314 = vmatprep.subr.bf16.mxu1 %v10285_v61  ;;  %v10326_v61 = vld [vmem:[%s10893_s18 + $0xff8] sm:$0xff]  }
 0x23f   : > { %9293 = vmatpush3.bf16.msra.mxu0 %v10286_v60  ;;  %v2004_v60 = vrot.slane %v1976_v56, %v10948_v42  ;;  %v10366_v56 = vld [vmem:[%s10893_s18 + $0x1068] sm:$0xff]  }
 0x240   : > { %9294 = vmatprep.subr.bf16.mxu0 %v10288_v63  ;;  %v10328_v63 = vld [vmem:[%s10893_s18 + $0xfb8] sm:$0xff]  }
 0x241   : > { %9315 = vmatpush3.bf16.msra.mxu1 %v10287_v62  ;;  %v10327_v62 = vld [vmem:[%s10893_s18 + $0xf38] sm:$0xff]  }
 0x242   : > { %9316 = vmatprep.subr.bf16.mxu1 %v10289_v0  ;;  %v2005_v0 = vcombine.high %v1983_v57, %v1983_v57 }
 0x243   : > { %9295 = vmatpush3.bf16.msra.mxu0 %v10290_v1  ;;  %v10329_v1 = vld [vmem:[%s10893_s18 + $0xf70] sm:$0xff]  }
 0x244   : > { %9324 = vmatprep.subr.bf16.mxu0 %v10293_v4 }
 0x245   : > { %9317 = vmatpush3.bf16.msra.mxu1 %v10291_v2  ;;  %v10330_v2 = vld [vmem:[%s10893_s18 + $0xff0] sm:$0xff]  }
 0x246   : > { %v9032_v11 = vpop.f32.mrf.mxu0  ;;  %7100 = vmatmul.mubr.bf16.vlgmr.msra.gmra.mxu0 %v1941_v3  ;;  %9346 = vmatprep.subr.bf16.mxu1 %v10294_v5  ;;  %v2008_v3 = vcombine.high %v2004_v60, %v2004_v60  ;;  %v10331_v5 = vld [vmem:[%s10893_s18 + $0xf30] sm:$0xff]  }
 0x247   : > { %9325 = vmatpush3.bf16.msra.mxu0 %v10295_v6  ;;  %7179 = vmatprep.mubr.bf16.mxu0 %v1997_v55  ;;  %v10332_v6 = vld [vmem:[%s10893_s18 + $0xfb0] sm:$0xff]  }
 0x248   : > { %v9054_v14 = vpop.f32.mrf.mxu1  ;;  %7140 = vmatmul.mubr.bf16.vlgmr.msra.gmra.mxu1 %v1957_v8  ;;  %v9033_v15 = vpop.f32.mrf.mxu0  ;;  %9326 = vmatprep.subr.bf16.mxu0 %v10297_v9  ;;  %v10333_v9 = vld [vmem:[%s10893_s18 + $0xf68] sm:$0xff]  }
 0x249   : > { %9347 = vmatpush3.bf16.msra.mxu1 %v10296_v7  ;;  %v9034_v17 = vadd.f32 %v9033_v15, %v9032_v11  ;;  %7219 = vmatprep.mubr.bf16.mxu1 %v2007_v59  ;;  %v10334_v11 = vld [vmem:[%s10893_s18 + $0xfe8] sm:$0xff]  }
 0x24a   : > { %v9055_v19 = vpop.f32.mrf.mxu1  ;;  %v9035_v20 = vpop.f32.mrf.mxu0  ;;  %9348 = vmatprep.subr.bf16.mxu1 %v10298_v10 }
 0x24b   : > { %v6622_v22 = vadd.f32 %v9034_v17, %v11444_v46  ;;  %v9056_v23 = vadd.f32 %v9055_v19, %v9054_v14  ;;  %9327 = vmatpush3.bf16.msra.mxu0 %v10299_v12  ;;  %v10320_v46 = vld [vmem:[%s10893_s18 + $0xe88] sm:$0xff]   ;;  %v10337_v20 = vld [vmem:[%s10893_s18 + $0xf60] sm:$0xff]  }
 0x24c   : > { %v9057_v25 = vpop.f32.mrf.mxu1  ;;  %v9036_v26 = vpop.f32.mrf.mxu0  ;;  %9328 = vmatprep.subr.bf16.mxu0 %v10301_v16  ;;  %v10335_v14 = vld [vmem:[%s10893_s18 + $0xf28] sm:$0xff]  }
 0x24d   : > { %v11481_v28 = vadd.f32 %v9056_v23, %v6622_v22  ;;  %9349 = vmatpush3.bf16.msra.mxu1 %v10300_v13  ;;  %v10336_v17 = vld [vmem:[%s10893_s18 + $0xfa8] sm:$0xff]   ;;  %v10338_v22 = vld [vmem:[%s10893_s18 + $0xfe0] sm:$0xff]   ;;  %v10341_v26 = vld [vmem:[%s10893_s18 + $0xf58] sm:$0xff]  }
 0x24e   : > { %v9058_v30 = vpop.f32.mrf.mxu1  ;;  %9350 = vmatprep.subr.bf16.mxu1 %v10302_v18  ;;  %v10340_v25 = vld [vmem:[%s10893_s18 + $0xfa0] sm:$0xff]  }
 0x24f   : > { %9329 = vmatpush3.bf16.msra.mxu0 %v10303_v21  ;;  %v10345_v30 = vld [vmem:[%s10893_s18 + $0xf50] sm:$0xff]  }
 0x250   : > { %9330 = vmatprep.subr.bf16.mxu0 %v10305_v27  ;;  %v10342_v27 = vld [vmem:[%s10893_s18 + $0xfd8] sm:$0xff]  }
 0x251   : > { %9351 = vmatpush3.bf16.msra.mxu1 %v10304_v24  ;;  %v10339_v24 = vld [vmem:[%s10893_s18 + $0xf20] sm:$0xff]  }
 0x252   : > { %9352 = vmatprep.subr.bf16.mxu1 %v10306_v29  ;;  %v10344_v29 = vld [vmem:[%s10893_s18 + $0xf98] sm:$0xff]  }
 0x253   : > { %9331 = vmatpush3.bf16.msra.mxu0 %v10307_v31  ;;  %v10346_v31 = vld [vmem:[%s10893_s18 + $0xfd0] sm:$0xff]  }
 0x254   : > { %9332 = vmatprep.subr.bf16.mxu0 %v10309_v33  ;;  %v10348_v33 = vld [vmem:[%s10893_s18 + $0xf90] sm:$0xff]  }
 0x255   : > { %9353 = vmatpush3.bf16.msra.mxu1 %v10308_v32  ;;  %v10347_v32 = vld [vmem:[%s10893_s18 + $0xf10] sm:$0xff]  }
 0x256   : > { %9354 = vmatprep.subr.bf16.mxu1 %v10310_v34  ;;  %v10349_v34 = vld [vmem:[%s10893_s18 + $0xf48] sm:$0xff]  }
 0x257   : > { %9333 = vmatpush3.bf16.msra.mxu0 %v10311_v36  ;;  %v10350_v36 = vld [vmem:[%s10893_s18 + $0xfc8] sm:$0xff]  }
 0x258   : > { %9334 = vmatprep.subr.bf16.mxu0 %v10313_v37  ;;  %v10352_v37 = vld [vmem:[%s10893_s18 + $0xf88] sm:$0xff]  }
 0x259   : > { %9355 = vmatpush3.bf16.msra.mxu1 %v10312_v35  ;;  %v10351_v35 = vld [vmem:[%s10893_s18 + $0xf08] sm:$0xff]  }
 0x25a   : > { %9356 = vmatprep.subr.bf16.mxu1 %v10314_v38  ;;  %v10353_v38 = vld [vmem:[%s10893_s18 + $0xf40] sm:$0xff]  }
 0x25b   : > { %9335 = vmatpush3.bf16.msra.mxu0 %v10315_v39  ;;  %v10354_v39 = vld [vmem:[%s10893_s18 + $0xfc0] sm:$0xff]  }
 0x25c   : > { %9336 = vmatprep.subr.bf16.mxu0 %v10317_v41  ;;  %v10356_v41 = vld [vmem:[%s10893_s18 + $0xf80] sm:$0xff]  }
 0x25d   : > { %9357 = vmatpush3.bf16.msra.mxu1 %v10316_v40  ;;  %v10355_v40 = vld [vmem:[%s10893_s18 + $0xf00] sm:$0xff]  }
 0x25e   : > { %9358 = vmatprep.subr.bf16.mxu1 %v10318_v43  ;;  %v1990_v43 = vrot.slane %v11503_v52, %v10948_v42  ;;  %v10364_v52 = vld [vmem:[%s10893_s18 + $0x1030] sm:$0xff]  }
 0x25f   : > { %9337 = vmatpush3.bf16.msra.mxu0 %v10319_v44  ;;  %v10358_v44 = vld [vmem:[%s10893_s18 + $0x1078] sm:$0xff]  }
 0x260   : > { %9338 = vmatprep.subr.bf16.mxu0 %v10321_v49  ;;  %v2006_v48 = vcombine.high %v1990_v43, %v1990_v43  ;;  %v10362_v49 = vld [vmem:[%s10893_s18 + $0x1070] sm:$0xff]  }
 0x261   : > { %9359 = vmatpush3.bf16.msra.mxu1 %v10320_v46  ;;  %v10360_v46 = vld [vmem:[%s10893_s18 + $0x1038] sm:$0xff]  }
 0x262   : > { %9360 = vmatprep.subr.bf16.mxu1 %v10322_v50  ;;  %v10363_v50 = vld [vmem:[%s10893_s18 + $0x10f0] sm:$0xff]  }
 0x263   : > { %9339 = vmatpush3.bf16.msra.mxu0 %v10323_v53  ;;  %v10365_v53 = vld [vmem:[%s10893_s18 + $0x10b0] sm:$0xff]  }
 0x264   : > { %9368 = vmatprep.subr.bf16.mxu0 %v10325_v58  ;;  %v10367_v58 = vld [vmem:[%s10893_s18 + $0x10e8] sm:$0xff]  }
 0x265   : > { %9361 = vmatpush3.bf16.msra.mxu1 %v10324_v54 }
 0x266   : > { %v9076_v4 = vpop.f32.mrf.mxu0  ;;  %7180 = vmatmul.mubr.bf16.vlgmr.msra.gmra.mxu0 %v1983_v57  ;;  %9390 = vmatprep.subr.bf16.mxu1 %v10326_v61 }
 0x267   : > { %9369 = vmatpush3.bf16.msra.mxu0 %v10327_v62  ;;  %7259 = vmatprep.mubr.bf16.mxu0 %v2004_v60  ;;  %v10368_v60 = vld [vmem:[%s10893_s18 + $0x1028] sm:$0xff]  }
 0x268   : > { %v9098_v7 = vpop.f32.mrf.mxu1  ;;  %7220 = vmatmul.mubr.bf16.vlgmr.msra.gmra.mxu1 %v2005_v0  ;;  %v9077_v8 = vpop.f32.mrf.mxu0  ;;  %9370 = vmatprep.subr.bf16.mxu0 %v10329_v1  ;;  %v10369_v0 = vld [vmem:[%s10893_s18 + $0x10a8] sm:$0xff]  }
 0x269   : > { %9391 = vmatpush3.bf16.msra.mxu1 %v10328_v63  ;;  %v9078_v10 = vadd.f32 %v9077_v8, %v9076_v4  ;;  %7299 = vmatprep.mubr.bf16.mxu1 %v2008_v3  ;;  %v10370_v3 = vld [vmem:[%s10893_s18 + $0x1060] sm:$0xff]  }
 0x26a   : > { %v9099_v12 = vpop.f32.mrf.mxu1  ;;  %v9079_v13 = vpop.f32.mrf.mxu0  ;;  %9392 = vmatprep.subr.bf16.mxu1 %v10330_v2  ;;  %v10373_v8 = vld [vmem:[%s10893_s18 + $0x10a0] sm:$0xff]  }
 0x26b   : > { %v6702_v15 = vadd.f32 %v9078_v10, %v11481_v28  ;;  %v9100_v16 = vadd.f32 %v9099_v12, %v9098_v7  ;;  %9371 = vmatpush3.bf16.msra.mxu0 %v10331_v5  ;;  %v10343_v28 = vld [vmem:[%s10893_s18 + $0xf18] sm:$0xff]   ;;  %v10371_v5 = vld [vmem:[%s10893_s18 + $0x10e0] sm:$0xff]   ;;  %v10378_v13 = vld [vmem:[%s10893_s18 + $0x1050] sm:$0xff]  }
 0x26c   : > { %v9101_v18 = vpop.f32.mrf.mxu1  ;;  %v9080_v19 = vpop.f32.mrf.mxu0  ;;  %9372 = vmatprep.subr.bf16.mxu0 %v10333_v9  ;;  %v10372_v7 = vld [vmem:[%s10893_s18 + $0x1020] sm:$0xff]   ;;  %v10374_v9 = vld [vmem:[%s10893_s18 + $0x1058] sm:$0xff]  }
 0x26d   : > { %v11526_v21 = vadd.f32 %v9100_v16, %v6702_v15  ;;  %9393 = vmatpush3.bf16.msra.mxu1 %v10332_v6  ;;  %v10375_v10 = vld [vmem:[%s10893_s18 + $0x10d8] sm:$0xff]   ;;  %v10380_v15 = vld [vmem:[%s10893_s18 + $0x1010] sm:$0xff]   ;;  %v10383_v18 = vld [vmem:[%s10893_s18 + $0x10c8] sm:$0xff]  }
 0x26e   : > { %v9102_v23 = vpop.f32.mrf.mxu1  ;;  %9394 = vmatprep.subr.bf16.mxu1 %v10334_v11  ;;  %v10376_v11 = vld [vmem:[%s10893_s18 + $0x1018] sm:$0xff]   ;;  %v10381_v16 = vld [vmem:[%s10893_s18 + $0x1090] sm:$0xff]   ;;  %v10384_v19 = vld [vmem:[%s10893_s18 + $0x1008] sm:$0xff]  }
 0x26f   : > { %9373 = vmatpush3.bf16.msra.mxu0 %v10335_v14  ;;  %v10377_v12 = vld [vmem:[%s10893_s18 + $0x1098] sm:$0xff]   ;;  %v10379_v14 = vld [vmem:[%s10893_s18 + $0x10d0] sm:$0xff]  }
 0x270   : > { %9374 = vmatprep.subr.bf16.mxu0 %v10337_v20  ;;  %v325_v20 = vld [vmem:[%s10886_s26 + $0x40] sm:$0xff] }
 0x271   : > { %9395 = vmatpush3.bf16.msra.mxu1 %v10336_v17  ;;  %v10382_v17 = vld [vmem:[%s10893_s18 + $0x1048] sm:$0xff]   ;;  %v2009_v23 = vcombine.high %v325_v20, %v325_v20 }
 0x272   : > { %9396 = vmatprep.subr.bf16.mxu1 %v10338_v22  ;;  %v2016_v22 = vrot.slane %v325_v20, %v10948_v42  ;;  %v10424_v20 = vld [vmem:[%s10893_s18 + $0x12f8] sm:$0xff]  }
 0x273   : > { %9375 = vmatpush3.bf16.msra.mxu0 %v10339_v24  ;;  %v10386_v24 = vld [vmem:[%s10893_s18 + $0x1040] sm:$0xff]  }
 0x274   : > { %9376 = vmatprep.subr.bf16.mxu0 %v10341_v26  ;;  %v2024_v26 = vcombine.high %v2016_v22, %v2016_v22 }
 0x275   : > { %9397 = vmatpush3.bf16.msra.mxu1 %v10340_v25  ;;  %v10387_v25 = vld [vmem:[%s10893_s18 + $0x10c0] sm:$0xff]  }
 0x276   : > { %9398 = vmatprep.subr.bf16.mxu1 %v10342_v27  ;;  %v11585_v27 = vrot.slane %v2009_v23, %v10948_v42 }
 0x277   : > { %9377 = vmatpush3.bf16.msra.mxu0 %v10343_v28  ;;  %v10388_v28 = vld [vmem:[%s10893_s18 + $0x1000] sm:$0xff]  }
 0x278   : > { %9378 = vmatprep.subr.bf16.mxu0 %v10345_v30  ;;  %v2046_v30 = vrot.slane %v2024_v26, %v10948_v42 }
 0x279   : > { %9399 = vmatpush3.bf16.msra.mxu1 %v10344_v29  ;;  %v10389_v29 = vld [vmem:[%s10893_s18 + $0x1080] sm:$0xff]  }
 0x27a   : > { %9400 = vmatprep.subr.bf16.mxu1 %v10346_v31  ;;  %v2025_v31 = vcombine.high %v11585_v27, %v11585_v27 }
 0x27b   : > { %9379 = vmatpush3.bf16.msra.mxu0 %v10347_v32  ;;  %v2032_v32 = vrot.slane %v2016_v22, %v10948_v42  ;;  %v10426_v22 = vld [vmem:[%s10893_s18 + $0x12b8] sm:$0xff]  }
 0x27c   : > { %9380 = vmatprep.subr.bf16.mxu0 %v10349_v34  ;;  %v2056_v34 = vcombine.high %v2046_v30, %v2046_v30 }
 0x27d   : > { %9401 = vmatpush3.bf16.msra.mxu1 %v10348_v33  ;;  %v10390_v33 = vld [vmem:[%s10893_s18 + $0x1178] sm:$0xff]  }
 0x27e   : > { %9402 = vmatprep.subr.bf16.mxu1 %v10350_v36  ;;  %v10391_v36 = vld [vmem:[%s10893_s18 + $0x11f8] sm:$0xff]  }
 0x27f   : > { %9381 = vmatpush3.bf16.msra.mxu0 %v10351_v35  ;;  %v2053_v35 = vrot.slane %v2025_v31, %v10948_v42  ;;  %v10431_v31 = vld [vmem:[%s10893_s18 + $0x1268] sm:$0xff]  }
 0x280   : > { %9382 = vmatprep.subr.bf16.mxu0 %v10353_v38  ;;  %v10393_v38 = vld [vmem:[%s10893_s18 + $0x11b8] sm:$0xff]  }
 0x281   : > { %9403 = vmatpush3.bf16.msra.mxu1 %v10352_v37  ;;  %v10392_v37 = vld [vmem:[%s10893_s18 + $0x1138] sm:$0xff]  }
 0x282   : > { %9404 = vmatprep.subr.bf16.mxu1 %v10354_v39  ;;  %v2054_v39 = vcombine.high %v2032_v32, %v2032_v32 }
 0x283   : > { %9383 = vmatpush3.bf16.msra.mxu0 %v10355_v40  ;;  %v10394_v40 = vld [vmem:[%s10893_s18 + $0x1170] sm:$0xff]  }
 0x284   : > { %9412 = vmatprep.subr.bf16.mxu0 %v10358_v44 }
 0x285   : > { %9405 = vmatpush3.bf16.msra.mxu1 %v10356_v41  ;;  %v10395_v41 = vld [vmem:[%s10893_s18 + $0x11f0] sm:$0xff]  }
 0x286   : > { %v9120_v51 = vpop.f32.mrf.mxu0  ;;  %7260 = vmatmul.mubr.bf16.vlgmr.msra.gmra.mxu0 %v1990_v43  ;;  %9434 = vmatprep.subr.bf16.mxu1 %v10359_v45  ;;  %v2057_v43 = vcombine.high %v2053_v35, %v2053_v35  ;;  %v10396_v45 = vld [vmem:[%s10893_s18 + $0x1130] sm:$0xff]  }
 0x287   : > { %9413 = vmatpush3.bf16.msra.mxu0 %v10360_v46  ;;  %7339 = vmatprep.mubr.bf16.mxu0 %v2046_v30  ;;  %v10397_v46 = vld [vmem:[%s10893_s18 + $0x11b0] sm:$0xff]  }
 0x288   : > { %v9142_v54 = vpop.f32.mrf.mxu1  ;;  %7300 = vmatmul.mubr.bf16.vlgmr.msra.gmra.mxu1 %v2006_v48  ;;  %v9121_v55 = vpop.f32.mrf.mxu0  ;;  %9414 = vmatprep.subr.bf16.mxu0 %v10362_v49  ;;  %v10398_v49 = vld [vmem:[%s10893_s18 + $0x1168] sm:$0xff]  }
 0x289   : > { %9435 = vmatpush3.bf16.msra.mxu1 %v10361_v47  ;;  %v9122_v57 = vadd.f32 %v9121_v55, %v9120_v51  ;;  %7379 = vmatprep.mubr.bf16.mxu1 %v2056_v34  ;;  %v10399_v51 = vld [vmem:[%s10893_s18 + $0x11e8] sm:$0xff]  }
 0x28a   : > { %v9143_v59 = vpop.f32.mrf.mxu1  ;;  %v9123_v61 = vpop.f32.mrf.mxu0  ;;  %9436 = vmatprep.subr.bf16.mxu1 %v10363_v50 }
 0x28b   : > { %v6782_v62 = vadd.f32 %v9122_v57, %v11526_v21  ;;  %v9144_v63 = vadd.f32 %v9143_v59, %v9142_v54  ;;  %9415 = vmatpush3.bf16.msra.mxu0 %v10364_v52  ;;  %v10385_v21 = vld [vmem:[%s10893_s18 + $0x1088] sm:$0xff]   ;;  %v10402_v61 = vld [vmem:[%s10893_s18 + $0x1160] sm:$0xff]  }
 0x28c   : > { %v9145_v1 = vpop.f32.mrf.mxu1  ;;  %v9124_v2 = vpop.f32.mrf.mxu0  ;;  %9416 = vmatprep.subr.bf16.mxu0 %v10366_v56  ;;  %v10400_v54 = vld [vmem:[%s10893_s18 + $0x1128] sm:$0xff]  }
 0x28d   : > { %v11563_v4 = vadd.f32 %v9144_v63, %v6782_v62  ;;  %9437 = vmatpush3.bf16.msra.mxu1 %v10365_v53  ;;  %v10401_v57 = vld [vmem:[%s10893_s18 + $0x11a8] sm:$0xff]   ;;  %v10403_v62 = vld [vmem:[%s10893_s18 + $0x11e0] sm:$0xff]   ;;  %v10406_v2 = vld [vmem:[%s10893_s18 + $0x1158] sm:$0xff]  }
 0x28e   : > { %v9146_v6 = vpop.f32.mrf.mxu1  ;;  %9438 = vmatprep.subr.bf16.mxu1 %v10367_v58  ;;  %v10405_v1 = vld [vmem:[%s10893_s18 + $0x11a0] sm:$0xff]  }
 0x28f   : > { %9417 = vmatpush3.bf16.msra.mxu0 %v10368_v60  ;;  %v10410_v6 = vld [vmem:[%s10893_s18 + $0x1150] sm:$0xff]  }
 0x290   : > { %9418 = vmatprep.subr.bf16.mxu0 %v10370_v3  ;;  %v10407_v3 = vld [vmem:[%s10893_s18 + $0x11d8] sm:$0xff]  }
 0x291   : > { %9439 = vmatpush3.bf16.msra.mxu1 %v10369_v0  ;;  %v10404_v0 = vld [vmem:[%s10893_s18 + $0x1120] sm:$0xff]  }
 0x292   : > { %9440 = vmatprep.subr.bf16.mxu1 %v10371_v5  ;;  %v10409_v5 = vld [vmem:[%s10893_s18 + $0x1198] sm:$0xff]  }
 0x293   : > { %9419 = vmatpush3.bf16.msra.mxu0 %v10372_v7  ;;  %v10411_v7 = vld [vmem:[%s10893_s18 + $0x11d0] sm:$0xff]  }
 0x294   : > { %9420 = vmatprep.subr.bf16.mxu0 %v10374_v9  ;;  %v10413_v9 = vld [vmem:[%s10893_s18 + $0x1190] sm:$0xff]  }
 0x295   : > { %9441 = vmatpush3.bf16.msra.mxu1 %v10373_v8  ;;  %v10412_v8 = vld [vmem:[%s10893_s18 + $0x1110] sm:$0xff]  }
 0x296   : > { %9442 = vmatprep.subr.bf16.mxu1 %v10375_v10  ;;  %v10414_v10 = vld [vmem:[%s10893_s18 + $0x1148] sm:$0xff]  }
 0x297   : > { %9421 = vmatpush3.bf16.msra.mxu0 %v10376_v11  ;;  %v10415_v11 = vld [vmem:[%s10893_s18 + $0x11c8] sm:$0xff]  }
 0x298   : > { %9422 = vmatprep.subr.bf16.mxu0 %v10378_v13  ;;  %v10417_v13 = vld [vmem:[%s10893_s18 + $0x1188] sm:$0xff]  }
 0x299   : > { %9443 = vmatpush3.bf16.msra.mxu1 %v10377_v12  ;;  %v10416_v12 = vld [vmem:[%s10893_s18 + $0x1108] sm:$0xff]  }
 0x29a   : > { %9444 = vmatprep.subr.bf16.mxu1 %v10379_v14  ;;  %v10418_v14 = vld [vmem:[%s10893_s18 + $0x1140] sm:$0xff]  }
 0x29b   : > { %9423 = vmatpush3.bf16.msra.mxu0 %v10380_v15  ;;  %v10419_v15 = vld [vmem:[%s10893_s18 + $0x11c0] sm:$0xff]  }
 0x29c   : > { %9424 = vmatprep.subr.bf16.mxu0 %v10382_v17  ;;  %v10421_v17 = vld [vmem:[%s10893_s18 + $0x1180] sm:$0xff]  }
 0x29d   : > { %9445 = vmatpush3.bf16.msra.mxu1 %v10381_v16  ;;  %v10420_v16 = vld [vmem:[%s10893_s18 + $0x1100] sm:$0xff]  }
 0x29e   : > { %9446 = vmatprep.subr.bf16.mxu1 %v10383_v18  ;;  %v2039_v18 = vrot.slane %v11585_v27, %v10948_v42  ;;  %v10429_v27 = vld [vmem:[%s10893_s18 + $0x1230] sm:$0xff]  }
 0x29f   : > { %9425 = vmatpush3.bf16.msra.mxu0 %v10384_v19  ;;  %v10423_v19 = vld [vmem:[%s10893_s18 + $0x1278] sm:$0xff]  }
 0x2a0   : > { %9426 = vmatprep.subr.bf16.mxu0 %v10386_v24  ;;  %v2055_v23 = vcombine.high %v2039_v18, %v2039_v18  ;;  %v10427_v24 = vld [vmem:[%s10893_s18 + $0x1270] sm:$0xff]  }
 0x2a1   : > { %9447 = vmatpush3.bf16.msra.mxu1 %v10385_v21  ;;  %v10425_v21 = vld [vmem:[%s10893_s18 + $0x1238] sm:$0xff]  }
 0x2a2   : > { %9448 = vmatprep.subr.bf16.mxu1 %v10387_v25  ;;  %v10428_v25 = vld [vmem:[%s10893_s18 + $0x12f0] sm:$0xff]  }
 0x2a3   : > { %9427 = vmatpush3.bf16.msra.mxu0 %v10388_v28  ;;  %v10430_v28 = vld [vmem:[%s10893_s18 + $0x12b0] sm:$0xff]  }
 0x2a4   : > { %9456 = vmatprep.subr.bf16.mxu0 %v10390_v33  ;;  %v10432_v33 = vld [vmem:[%s10893_s18 + $0x12e8] sm:$0xff]  }
 0x2a5   : > { %9449 = vmatpush3.bf16.msra.mxu1 %v10389_v29 }
 0x2a6   : > { %v9164_v44 = vpop.f32.mrf.mxu0  ;;  %7340 = vmatmul.mubr.bf16.vlgmr.msra.gmra.mxu0 %v2032_v32  ;;  %9478 = vmatprep.subr.bf16.mxu1 %v10391_v36 }
 0x2a7   : > { %9457 = vmatpush3.bf16.msra.mxu0 %v10392_v37  ;;  %7419 = vmatprep.mubr.bf16.mxu0 %v2053_v35  ;;  %v10433_v35 = vld [vmem:[%s10893_s18 + $0x1228] sm:$0xff]  }
 0x2a8   : > { %v9186_v47 = vpop.f32.mrf.mxu1  ;;  %7380 = vmatmul.mubr.bf16.vlgmr.msra.gmra.mxu1 %v2054_v39  ;;  %v9165_v48 = vpop.f32.mrf.mxu0  ;;  %9458 = vmatprep.subr.bf16.mxu0 %v10394_v40  ;;  %v10434_v39 = vld [vmem:[%s10893_s18 + $0x12a8] sm:$0xff]  }
 0x2a9   : > { %9479 = vmatpush3.bf16.msra.mxu1 %v10393_v38  ;;  %v9166_v50 = vadd.f32 %v9165_v48, %v9164_v44  ;;  %7459 = vmatprep.mubr.bf16.mxu1 %v2057_v43  ;;  %v10435_v43 = vld [vmem:[%s10893_s18 + $0x1260] sm:$0xff]  }
 0x2aa   : > { %v9187_v52 = vpop.f32.mrf.mxu1  ;;  %v9167_v53 = vpop.f32.mrf.mxu0  ;;  %9480 = vmatprep.subr.bf16.mxu1 %v10395_v41  ;;  %v10438_v48 = vld [vmem:[%s10893_s18 + $0x12a0] sm:$0xff]  }
 0x2ab   : > { %v6862_v55 = vadd.f32 %v9166_v50, %v11563_v4  ;;  %v9188_v56 = vadd.f32 %v9187_v52, %v9186_v47  ;;  %9459 = vmatpush3.bf16.msra.mxu0 %v10396_v45  ;;  %v10408_v4 = vld [vmem:[%s10893_s18 + $0x1118] sm:$0xff]   ;;  %v10436_v45 = vld [vmem:[%s10893_s18 + $0x12e0] sm:$0xff]   ;;  %v10443_v53 = vld [vmem:[%s10893_s18 + $0x1250] sm:$0xff]  }
 0x2ac   : > { %v9189_v58 = vpop.f32.mrf.mxu1  ;;  %v9168_v59 = vpop.f32.mrf.mxu0  ;;  %9460 = vmatprep.subr.bf16.mxu0 %v10398_v49  ;;  %v10437_v47 = vld [vmem:[%s10893_s18 + $0x1220] sm:$0xff]   ;;  %v10439_v49 = vld [vmem:[%s10893_s18 + $0x1258] sm:$0xff]  }
 0x2ad   : > { %v11608_v60 = vadd.f32 %v9188_v56, %v6862_v55  ;;  %9481 = vmatpush3.bf16.msra.mxu1 %v10397_v46  ;;  %v10440_v50 = vld [vmem:[%s10893_s18 + $0x12d8] sm:$0xff]   ;;  %v10445_v55 = vld [vmem:[%s10893_s18 + $0x1210] sm:$0xff]   ;;  %v10448_v58 = vld [vmem:[%s10893_s18 + $0x12c8] sm:$0xff]  }
 0x2ae   : > { %v9190_v63 = vpop.f32.mrf.mxu1  ;;  %9482 = vmatprep.subr.bf16.mxu1 %v10399_v51  ;;  %v10441_v51 = vld [vmem:[%s10893_s18 + $0x1218] sm:$0xff]   ;;  %v10446_v56 = vld [vmem:[%s10893_s18 + $0x1290] sm:$0xff]   ;;  %v10449_v59 = vld [vmem:[%s10893_s18 + $0x1208] sm:$0xff]  }
 0x2af   : > { %9461 = vmatpush3.bf16.msra.mxu0 %v10400_v54  ;;  %v10442_v52 = vld [vmem:[%s10893_s18 + $0x1298] sm:$0xff]   ;;  %v10444_v54 = vld [vmem:[%s10893_s18 + $0x12d0] sm:$0xff]  }
 0x2b0   : > { %9462 = vmatprep.subr.bf16.mxu0 %v10402_v61  ;;  %v326_v61 = vld [vmem:[%s10886_s26 + $0x48] sm:$0xff] }
 0x2b1   : > { %9483 = vmatpush3.bf16.msra.mxu1 %v10401_v57  ;;  %v10447_v57 = vld [vmem:[%s10893_s18 + $0x1248] sm:$0xff]   ;;  %v2058_v63 = vcombine.high %v326_v61, %v326_v61 }
 0x2b2   : > { %9484 = vmatprep.subr.bf16.mxu1 %v10403_v62  ;;  %v2065_v62 = vrot.slane %v326_v61, %v10948_v42 }
 0x2b3   : > { %9463 = vmatpush3.bf16.msra.mxu0 %v10404_v0  ;;  %v10450_v0 = vld [vmem:[%s10893_s18 + $0x1288] sm:$0xff]  }
 0x2b4   : > { %9464 = vmatprep.subr.bf16.mxu0 %v10406_v2  ;;  %v2073_v2 = vcombine.high %v2065_v62, %v2065_v62 }
 0x2b5   : > { %9485 = vmatpush3.bf16.msra.mxu1 %v10405_v1  ;;  %v10452_v1 = vld [vmem:[%s10893_s18 + $0x12c0] sm:$0xff]  }
 0x2b6   : > { %9486 = vmatprep.subr.bf16.mxu1 %v10407_v3  ;;  %v11667_v3 = vrot.slane %v2058_v63, %v10948_v42 }
 0x2b7   : > { %9465 = vmatpush3.bf16.msra.mxu0 %v10408_v4  ;;  %v10453_v4 = vld [vmem:[%s10893_s18 + $0x1200] sm:$0xff]  }
 0x2b8   : > { %9466 = vmatprep.subr.bf16.mxu0 %v10410_v6  ;;  %v2081_v6 = vrot.slane %v2065_v62, %v10948_v42 }
 0x2b9   : > { %9487 = vmatpush3.bf16.msra.mxu1 %v10409_v5  ;;  %v2095_v5 = vrot.slane %v2073_v2, %v10948_v42 }
 0x2ba   : > { %9488 = vmatprep.subr.bf16.mxu1 %v10411_v7  ;;  %v10455_v7 = vld [vmem:[%s10893_s18 + $0x1378] sm:$0xff]  }
 0x2bb   : > { %9467 = vmatpush3.bf16.msra.mxu0 %v10412_v8  ;;  %v2074_v8 = vcombine.high %v11667_v3, %v11667_v3 }
 0x2bc   : > { %9468 = vmatprep.subr.bf16.mxu0 %v10414_v10  ;;  %v2105_v10 = vcombine.high %v2095_v5, %v2095_v5 }
 0x2bd   : > { %9489 = vmatpush3.bf16.msra.mxu1 %v10413_v9  ;;  %v10454_v9 = vld [vmem:[%s10893_s18 + $0x1280] sm:$0xff]  }
 0x2be   : > { %9490 = vmatprep.subr.bf16.mxu1 %v10415_v11  ;;  %v10456_v11 = vld [vmem:[%s10893_s18 + $0x13f8] sm:$0xff]  }
 0x2bf   : > { %9469 = vmatpush3.bf16.msra.mxu0 %v10416_v12  ;;  %v2102_v12 = vrot.slane %v2074_v8, %v10948_v42 }
 0x2c0   : > { %9470 = vmatprep.subr.bf16.mxu0 %v10418_v14  ;;  %v2103_v14 = vcombine.high %v2081_v6, %v2081_v6 }
 0x2c1   : > { %9491 = vmatpush3.bf16.msra.mxu1 %v10417_v13  ;;  %v10457_v13 = vld [vmem:[%s10893_s18 + $0x1338] sm:$0xff]  }
 0x2c2   : > { %9492 = vmatprep.subr.bf16.mxu1 %v10419_v15  ;;  %v10459_v15 = vld [vmem:[%s10893_s18 + $0x1370] sm:$0xff]  }
 0x2c3   : > { %9471 = vmatpush3.bf16.msra.mxu0 %v10420_v16  ;;  %v10458_v16 = vld [vmem:[%s10893_s18 + $0x13b8] sm:$0xff]  }
 0x2c4   : > { %9500 = vmatprep.subr.bf16.mxu0 %v10423_v19  ;;  %v10460_v19 = vld [vmem:[%s10893_s18 + $0x13f0] sm:$0xff]  }
 0x2c5   : > { %9493 = vmatpush3.bf16.msra.mxu1 %v10421_v17  ;;  %v2106_v17 = vcombine.high %v2102_v12, %v2102_v12 }
 0x2c6   : > { %v9208_v26 = vpop.f32.mrf.mxu0  ;;  %7420 = vmatmul.mubr.bf16.vlgmr.msra.gmra.mxu0 %v2039_v18  ;;  %9522 = vmatprep.subr.bf16.mxu1 %v10424_v20  ;;  %v10461_v20 = vld [vmem:[%s10893_s18 + $0x1330] sm:$0xff]  }
 0x2c7   : > { %9501 = vmatpush3.bf16.msra.mxu0 %v10425_v21  ;;  %7499 = vmatprep.mubr.bf16.mxu0 %v2095_v5 }
 0x2c8   : > { %v9230_v29 = vpop.f32.mrf.mxu1  ;;  %7460 = vmatmul.mubr.bf16.vlgmr.msra.gmra.mxu1 %v2055_v23  ;;  %v9209_v30 = vpop.f32.mrf.mxu0  ;;  %9502 = vmatprep.subr.bf16.mxu0 %v10427_v24  ;;  %v10463_v23 = vld [vmem:[%s10893_s18 + $0x1368] sm:$0xff]  }
 0x2c9   : > { %9523 = vmatpush3.bf16.msra.mxu1 %v10426_v22  ;;  %v9210_v32 = vadd.f32 %v9209_v30, %v9208_v26  ;;  %7539 = vmatprep.mubr.bf16.mxu1 %v2105_v10 }
 0x2ca   : > { %v9231_v34 = vpop.f32.mrf.mxu1  ;;  %v9211_v36 = vpop.f32.mrf.mxu0  ;;  %9524 = vmatprep.subr.bf16.mxu1 %v10428_v25  ;;  %v10462_v25 = vld [vmem:[%s10893_s18 + $0x13b0] sm:$0xff]  }
 0x2cb   : > { %v6942_v37 = vadd.f32 %v9210_v32, %v11608_v60  ;;  %v9232_v38 = vadd.f32 %v9231_v34, %v9230_v29  ;;  %9503 = vmatpush3.bf16.msra.mxu0 %v10429_v27  ;;  %v10451_v60 = vld [vmem:[%s10893_s18 + $0x1240] sm:$0xff]  }
 0x2cc   : > { %v9233_v40 = vpop.f32.mrf.mxu1  ;;  %v9212_v41 = vpop.f32.mrf.mxu0  ;;  %9504 = vmatprep.subr.bf16.mxu0 %v10431_v31  ;;  %v10465_v31 = vld [vmem:[%s10893_s18 + $0x1328] sm:$0xff]   ;;  %v10467_v34 = vld [vmem:[%s10893_s18 + $0x1360] sm:$0xff]  }
 0x2cd   : > { %v11645_v44 = vadd.f32 %v9232_v38, %v6942_v37  ;;  %9525 = vmatpush3.bf16.msra.mxu1 %v10430_v28  ;;  %v10464_v28 = vld [vmem:[%s10893_s18 + $0x13e8] sm:$0xff]   ;;  %v10468_v38 = vld [vmem:[%s10893_s18 + $0x13e0] sm:$0xff]   ;;  %v10471_v40 = vld [vmem:[%s10893_s18 + $0x1358] sm:$0xff]  }
 0x2ce   : > { %v9234_v46 = vpop.f32.mrf.mxu1  ;;  %9526 = vmatprep.subr.bf16.mxu1 %v10432_v33  ;;  %v10470_v41 = vld [vmem:[%s10893_s18 + $0x13a0] sm:$0xff]  }
 0x2cf   : > { %9505 = vmatpush3.bf16.msra.mxu0 %v10433_v35  ;;  %v10466_v35 = vld [vmem:[%s10893_s18 + $0x13a8] sm:$0xff]   ;;  %v10474_v46 = vld [vmem:[%s10893_s18 + $0x1398] sm:$0xff]  }
 0x2d0   : > { %9506 = vmatprep.subr.bf16.mxu0 %v10435_v43  ;;  %v10472_v43 = vld [vmem:[%s10893_s18 + $0x13d8] sm:$0xff]  }
 0x2d1   : > { %9527 = vmatpush3.bf16.msra.mxu1 %v10434_v39  ;;  %v10469_v39 = vld [vmem:[%s10893_s18 + $0x1320] sm:$0xff]  }
 0x2d2   : > { %9528 = vmatprep.subr.bf16.mxu1 %v10436_v45  ;;  %v10475_v45 = vld [vmem:[%s10893_s18 + $0x1350] sm:$0xff]  }
 0x2d3   : > { %9507 = vmatpush3.bf16.msra.mxu0 %v10437_v47  ;;  %v10476_v47 = vld [vmem:[%s10893_s18 + $0x13d0] sm:$0xff]  }
 0x2d4   : > { %9508 = vmatprep.subr.bf16.mxu0 %v10439_v49  ;;  %v10479_v49 = vld [vmem:[%s10893_s18 + $0x1348] sm:$0xff]  }
 0x2d5   : > { %9529 = vmatpush3.bf16.msra.mxu1 %v10438_v48  ;;  %v10477_v48 = vld [vmem:[%s10893_s18 + $0x1310] sm:$0xff]  }
 0x2d6   : > { %9530 = vmatprep.subr.bf16.mxu1 %v10440_v50  ;;  %v10478_v50 = vld [vmem:[%s10893_s18 + $0x1390] sm:$0xff]  }
 0x2d7   : > { %9509 = vmatpush3.bf16.msra.mxu0 %v10441_v51  ;;  %v10480_v51 = vld [vmem:[%s10893_s18 + $0x13c8] sm:$0xff]  }
 0x2d8   : > { %9510 = vmatprep.subr.bf16.mxu0 %v10443_v53  ;;  %v10483_v53 = vld [vmem:[%s10893_s18 + $0x1340] sm:$0xff]  }
 0x2d9   : > { %9531 = vmatpush3.bf16.msra.mxu1 %v10442_v52  ;;  %v10481_v52 = vld [vmem:[%s10893_s18 + $0x1308] sm:$0xff]  }
 0x2da   : > { %9532 = vmatprep.subr.bf16.mxu1 %v10444_v54  ;;  %v10482_v54 = vld [vmem:[%s10893_s18 + $0x1388] sm:$0xff]  }
 0x2db   : > { %9511 = vmatpush3.bf16.msra.mxu0 %v10445_v55  ;;  %v10484_v55 = vld [vmem:[%s10893_s18 + $0x13c0] sm:$0xff]  }
 0x2dc   : > { %9512 = vmatprep.subr.bf16.mxu0 %v10447_v57  ;;  %v2088_v57 = vrot.slane %v11667_v3, %v10948_v42 }
 0x2dd   : > { %9533 = vmatpush3.bf16.msra.mxu1 %v10446_v56  ;;  %v10485_v56 = vld [vmem:[%s10893_s18 + $0x1300] sm:$0xff]  }
 0x2de   : > { %9534 = vmatprep.subr.bf16.mxu1 %v10448_v58  ;;  %v10486_v58 = vld [vmem:[%s10893_s18 + $0x1380] sm:$0xff]  }
 0x2df   : > { %9513 = vmatpush3.bf16.msra.mxu0 %v10449_v59  ;;  %v2104_v59 = vcombine.high %v2088_v57, %v2088_v57 }
 0x2e0   : > { %9514 = vmatprep.subr.bf16.mxu0 %v10451_v60 }
 0x2e1   : > { %9535 = vmatpush3.bf16.msra.mxu1 %v10450_v0 }
 0x2e2   : > { %9536 = vmatprep.subr.bf16.mxu1 %v10452_v1 }
 0x2e3   : > { %9515 = vmatpush3.bf16.msra.mxu0 %v10453_v4 }
 0x2e4   : > { %9544 = vmatprep.subr.bf16.mxu0 %v10455_v7 }
 0x2e5   : > { %9537 = vmatpush3.bf16.msra.mxu1 %v10454_v9 }
 0x2e6   : > { %v9252_v18 = vpop.f32.mrf.mxu0  ;;  %7500 = vmatmul.mubr.bf16.vlgmr.msra.gmra.mxu0 %v2081_v6  ;;  %9566 = vmatprep.subr.bf16.mxu1 %v10456_v11 }
 0x2e7   : > { %9545 = vmatpush3.bf16.msra.mxu0 %v10457_v13  ;;  %7579 = vmatprep.mubr.bf16.mxu0 %v2102_v12 }
 0x2e8   : > { %v9274_v21 = vpop.f32.mrf.mxu1  ;;  %7540 = vmatmul.mubr.bf16.vlgmr.msra.gmra.mxu1 %v2103_v14  ;;  %v9253_v22 = vpop.f32.mrf.mxu0  ;;  %9546 = vmatprep.subr.bf16.mxu0 %v10459_v15 }
 0x2e9   : > { %9567 = vmatpush3.bf16.msra.mxu1 %v10458_v16  ;;  %v9254_v24 = vadd.f32 %v9253_v22, %v9252_v18  ;;  %7619 = vmatprep.mubr.bf16.mxu1 %v2106_v17 }
 0x2ea   : > { %v9275_v26 = vpop.f32.mrf.mxu1  ;;  %v9255_v27 = vpop.f32.mrf.mxu0  ;;  %9568 = vmatprep.subr.bf16.mxu1 %v10460_v19 }
 0x2eb   : > { %v7022_v29 = vadd.f32 %v9254_v24, %v11645_v44  ;;  %v9276_v30 = vadd.f32 %v9275_v26, %v9274_v21  ;;  %9547 = vmatpush3.bf16.msra.mxu0 %v10461_v20  ;;  %v10473_v44 = vld [vmem:[%s10893_s18 + $0x1318] sm:$0xff]  }
 0x2ec   : > { %v9277_v32 = vpop.f32.mrf.mxu1  ;;  %v9256_v33 = vpop.f32.mrf.mxu0  ;;  %9548 = vmatprep.subr.bf16.mxu0 %v10463_v23 }
 0x2ed   : > { %v7062_v36 = vadd.f32 %v9276_v30, %v7022_v29  ;;  %9569 = vmatpush3.bf16.msra.mxu1 %v10462_v25 }
 0x2ee   : > { %v9278_v37 = vpop.f32.mrf.mxu1  ;;  %9570 = vmatprep.subr.bf16.mxu1 %v10464_v28 }
 0x2ef   : > { %9549 = vmatpush3.bf16.msra.mxu0 %v10465_v31 }
 0x2f0   : > { %9550 = vmatprep.subr.bf16.mxu0 %v10467_v34 }
 0x2f1   : > { %9571 = vmatpush3.bf16.msra.mxu1 %v10466_v35 }
 0x2f2   : > { %9572 = vmatprep.subr.bf16.mxu1 %v10468_v38 }
 0x2f3   : > { %9551 = vmatpush3.bf16.msra.mxu0 %v10469_v39 }
 0x2f4   : > { %9552 = vmatprep.subr.bf16.mxu0 %v10471_v40 }
 0x2f5   : > { %9573 = vmatpush3.bf16.msra.mxu1 %v10470_v41 }
 0x2f6   : > { %9574 = vmatprep.subr.bf16.mxu1 %v10472_v43 }
 0x2f7   : > { %9553 = vmatpush3.bf16.msra.mxu0 %v10473_v44 }
 0x2f8   : > { %9554 = vmatprep.subr.bf16.mxu0 %v10475_v45 }
 0x2f9   : > { %9575 = vmatpush3.bf16.msra.mxu1 %v10474_v46 }
 0x2fa   : > { %9576 = vmatprep.subr.bf16.mxu1 %v10476_v47 }
 0x2fb   : > { %9555 = vmatpush3.bf16.msra.mxu0 %v10477_v48 }
 0x2fc   : > { %9556 = vmatprep.subr.bf16.mxu0 %v10479_v49 }
 0x2fd   : > { %9577 = vmatpush3.bf16.msra.mxu1 %v10478_v50 }
 0x2fe   : > { %9578 = vmatprep.subr.bf16.mxu1 %v10480_v51 }
 0x2ff   : > { %9557 = vmatpush3.bf16.msra.mxu0 %v10481_v52 }
 0x300   : > { %9558 = vmatprep.subr.bf16.mxu0 %v10483_v53 }
 0x301   : > { %9579 = vmatpush3.bf16.msra.mxu1 %v10482_v54 }
 0x302   : > { %9580 = vmatprep.subr.bf16.mxu1 %v10484_v55 }
 0x303   : > { %9559 = vmatpush3.bf16.msra.mxu0 %v10485_v56 }
 0x305   : > { %9581 = vmatpush3.bf16.msra.mxu1 %v10486_v58 }
 0x306   : > { %v9296_v61 = vpop.f32.mrf.mxu0  ;;  %7580 = vmatmul.mubr.bf16.vlgmr.msra.gmra.mxu0 %v2088_v57 }
 0x308   : > { %v9318_v60 = vpop.f32.mrf.mxu1  ;;  %7620 = vmatmul.mubr.bf16.vlgmr.msra.gmra.mxu1 %v2104_v59  ;;  %v9297_v62 = vpop.f32.mrf.mxu0 }
 0x309   : > { %v9298_v63 = vadd.f32 %v9297_v62, %v9296_v61 }
 0x30a   : > { %v9319_v0 = vpop.f32.mrf.mxu1  ;;  %v9299_v1 = vpop.f32.mrf.mxu0 }
 0x30b   : > { %v7102_v2 = vadd.f32 %v9298_v63, %v7062_v36  ;;  %v9320_v4 = vadd.f32 %v9319_v0, %v9318_v60 }
 0x30c   : > { %v9321_v5 = vpop.f32.mrf.mxu1  ;;  %v9300_v6 = vpop.f32.mrf.mxu0 }
 0x30d   : > { %v7142_v7 = vadd.f32 %v9320_v4, %v7102_v2 }
 0x30e   : > { %v9322_v42 = vpop.f32.mrf.mxu1 }
 0x326   : > { %v9340_v3 = vpop.f32.mrf.mxu0 }
 0x328   : > { %v9362_v8 = vpop.f32.mrf.mxu1  ;;  %v9341_v9 = vpop.f32.mrf.mxu0 }
 0x329   : > { %v9342_v10 = vadd.f32 %v9341_v9, %v9340_v3 }
 0x32a   : > { %v9363_v11 = vpop.f32.mrf.mxu1  ;;  %v9343_v12 = vpop.f32.mrf.mxu0 }
 0x32b   : > { %v7182_v13 = vadd.f32 %v9342_v10, %v7142_v7  ;;  %v9364_v14 = vadd.f32 %v9363_v11, %v9362_v8  ;;  %v316_v11 = vld [vmem:[#allocation2] sm:$0x3] }
 0x32c   : > { %v9365_v15 = vpop.f32.mrf.mxu1  ;;  %v9344_v16 = vpop.f32.mrf.mxu0 }
 0x32d   : > { %v7222_v17 = vadd.f32 %v9364_v14, %v7182_v13 }
 0x32e   : > { %v9366_v18 = vpop.f32.mrf.mxu1 }
 0x346   : > { %v9384_v19 = vpop.f32.mrf.mxu0 }
 0x348   : > { %v9406_v20 = vpop.f32.mrf.mxu1  ;;  %v9385_v21 = vpop.f32.mrf.mxu0 }
 0x349   : > { %v9386_v22 = vadd.f32 %v9385_v21, %v9384_v19 }
 0x34a   : > { %v9407_v23 = vpop.f32.mrf.mxu1  ;;  %v9387_v24 = vpop.f32.mrf.mxu0 }
 0x34b   : > { %v7262_v25 = vadd.f32 %v9386_v22, %v7222_v17  ;;  %v9408_v26 = vadd.f32 %v9407_v23, %v9406_v20 }
 0x34c   : > { %v9409_v27 = vpop.f32.mrf.mxu1  ;;  %v9388_v28 = vpop.f32.mrf.mxu0 }
 0x34d   : > { %v7302_v29 = vadd.f32 %v9408_v26, %v7262_v25 }
 0x34e   : > { %v9410_v30 = vpop.f32.mrf.mxu1 }
 0x366   : > { %v9428_v31 = vpop.f32.mrf.mxu0 }
 0x368   : > { %v9450_v32 = vpop.f32.mrf.mxu1  ;;  %v9429_v33 = vpop.f32.mrf.mxu0 }
 0x369   : > { %v9430_v34 = vadd.f32 %v9429_v33, %v9428_v31 }
 0x36a   : > { %v9451_v36 = vpop.f32.mrf.mxu1  ;;  %v9431_v35 = vpop.f32.mrf.mxu0 }
 0x36b   : > { %v7342_v37 = vadd.f32 %v9430_v34, %v7302_v29  ;;  %v9452_v38 = vadd.f32 %v9451_v36, %v9450_v32 }
 0x36c   : > { %v9453_v39 = vpop.f32.mrf.mxu1  ;;  %v9432_v40 = vpop.f32.mrf.mxu0 }
 0x36d   : > { %v7382_v41 = vadd.f32 %v9452_v38, %v7342_v37 }
 0x36e   : > { %v9454_v43 = vpop.f32.mrf.mxu1 }
 0x386   : > { %v9472_v44 = vpop.f32.mrf.mxu0 }
 0x388   : > { %v9494_v45 = vpop.f32.mrf.mxu1  ;;  %v9473_v46 = vpop.f32.mrf.mxu0 }
 0x389   : > { %v9474_v61 = vadd.f32 %v9473_v46, %v9472_v44 }
 0x38a   : > { %v9495_v47 = vpop.f32.mrf.mxu1  ;;  %v9475_v48 = vpop.f32.mrf.mxu0 }
 0x38b   : > { %v7422_v60 = vadd.f32 %v9474_v61, %v7382_v41  ;;  %v9496_v62 = vadd.f32 %v9495_v47, %v9494_v45 }
 0x38c   : > { %v9497_v49 = vpop.f32.mrf.mxu1  ;;  %v9476_v50 = vpop.f32.mrf.mxu0 }
 0x38d   : > { %v7462_v0 = vadd.f32 %v9496_v62, %v7422_v60 }
 0x38e   : > { %v9498_v51 = vpop.f32.mrf.mxu1 }
 0x3a6   : > { %v9516_v52 = vpop.f32.mrf.mxu0 }
 0x3a8   : > { %v9538_v53 = vpop.f32.mrf.mxu1  ;;  %v9517_v54 = vpop.f32.mrf.mxu0 }
 0x3a9   : > { %v9518_v63 = vadd.f32 %v9517_v54, %v9516_v52 }
 0x3aa   : > { %v9539_v55 = vpop.f32.mrf.mxu1  ;;  %v9519_v56 = vpop.f32.mrf.mxu0 }
 0x3ab   : > { %v7502_v1 = vadd.f32 %v9518_v63, %v7462_v0  ;;  %v9540_v2 = vadd.f32 %v9539_v55, %v9538_v53 }
 0x3ac   : > { %v9541_v57 = vpop.f32.mrf.mxu1  ;;  %v9520_v58 = vpop.f32.mrf.mxu0 }
 0x3ad   : > { %v7542_v7 = vadd.f32 %v9540_v2, %v7502_v1 }
 0x3ae   : > { %v9542_v59 = vpop.f32.mrf.mxu1 }
 0x3c6   : > { %v9560_v4 = vpop.f32.mrf.mxu0 }
 0x3c8   : > { %v9582_v5 = vpop.f32.mrf.mxu1  ;;  %v9561_v6 = vpop.f32.mrf.mxu0 }
 0x3c9   : > { %v9562_v42 = vadd.f32 %v9561_v6, %v9560_v4 }
 0x3ca   : > { %v9583_v3 = vpop.f32.mrf.mxu1  ;;  %v9563_v8 = vpop.f32.mrf.mxu0 }
 0x3cb   : > { %v7582_v9 = vadd.f32 %v9562_v42, %v7542_v7  ;;  %v9584_v10 = vadd.f32 %v9583_v3, %v9582_v5 }
 0x3cc   : > { %v9585_v12 = vpop.f32.mrf.mxu1  ;;  %v9564_v13 = vpop.f32.mrf.mxu0 }
 0x3cd   : > { %v7622_v14 = vadd.f32 %v9584_v10, %v7582_v9  ;;  %7632 = sbr.rel (%p8695_p2) target bundleno = 1603 (0x643), region = 68 }
 0x3ce   : > { %v9586_v15 = vpop.f32.mrf.mxu1 }
 0x3cf   : > { %v7627_v16 = vadd.f32 %v7622_v14, %v316_v11 }
 0x3d1   : > { %7628 = vst [vmem:[#allocation2] sm:$0x3] %v7627_v16 }
 0x3d2   : > { %v7663_v17 = vld [vmem:[#allocation9 + $0x78] sm:$0xff]  ;;  %v10698_v18 = vmov 0.0   ;;  %v7662_v19 = vld [vmem:[#allocation9 + $0x70] sm:$0xff]  ;;  %vm10699_vm0 = vmmov 0   ;;  %v7661_v20 = vld [vmem:[#allocation9 + $0x68] sm:$0xff]  ;;  %v7645_v45 = vstv %s11729_s23  ;;  %v7740_v3 = vstv %s8698_s24 }
 0x3d3   : > { %9639 = vmatprep.subr.mxu0 %v10698_v18  ;;  %9671 = vmatprep.mubr.msk.f32.mxu0 %vm10699_vm0, %v10698_v18  ;;  %v7660_v21 = vld [vmem:[#allocation9 + $0x60] sm:$0xff]  ;;  %v7759_v22 = vld [vmem:[#allocation9 + $0xf8] sm:$0xff]  ;;  %v7758_v23 = vld [vmem:[#allocation9 + $0xf0] sm:$0xff] }
 0x3d4   : > { %9640 = vmatpush3.msra.mxu0 %v7663_v17  ;;  %9674 = vmatprep.subr.mxu1 %v10698_v18  ;;  %v7659_v24 = vld [vmem:[#allocation9 + $0x58] sm:$0xff]  ;;  %v7757_v25 = vld [vmem:[#allocation9 + $0xe8] sm:$0xff]  ;;  %v7658_v26 = vld [vmem:[#allocation9 + $0x50] sm:$0xff]  ;;  %v7836_v17 = vstv %s8700_s27 }
 0x3d5   : > { %9641 = vmatprep.subr.mxu0 %v10698_v18  ;;  %9706 = vmatprep.mubr.msk.f32.mxu1 %vm10699_vm0, %v10698_v18  ;;  %v7756_v27 = vld [vmem:[#allocation9 + $0xe0] sm:$0xff]  ;;  %v7657_v28 = vld [vmem:[#allocation9 + $0x48] sm:$0xff]  ;;  %v7755_v29 = vld [vmem:[#allocation9 + $0xd8] sm:$0xff] }
 0x3d6   : > { %9642 = vmatpush3.msra.mxu0 %v7662_v19  ;;  %9675 = vmatpush3.msra.mxu1 %v7759_v22  ;;  %v7656_v30 = vld [vmem:[#allocation9 + $0x40] sm:$0xff]  ;;  %v7754_v31 = vld [vmem:[#allocation9 + $0xd0] sm:$0xff]  ;;  %v7655_v32 = vld [vmem:[#allocation9 + $0x38] sm:$0xff] }
 0x3d7   : > { %9643 = vmatprep.subr.mxu0 %v10698_v18  ;;  %9676 = vmatprep.subr.mxu1 %v10698_v18  ;;  %v7753_v33 = vld [vmem:[#allocation9 + $0xc8] sm:$0xff]  ;;  %v7654_v34 = vld [vmem:[#allocation9 + $0x30] sm:$0xff]  ;;  %v7752_v36 = vld [vmem:[#allocation9 + $0xc0] sm:$0xff] }
 0x3d8   : > { %9644 = vmatpush3.msra.mxu0 %v7661_v20  ;;  %9677 = vmatpush3.msra.mxu1 %v7758_v23  ;;  %v7653_v35 = vld [vmem:[#allocation9 + $0x28] sm:$0xff]  ;;  %v8696_v37 = vld [vmem:[#allocation10] ss:$0 sm:$0xff]  ;;  %v7637_v38 = vld [vmem:[#allocation2] sm:$0x3] }
 0x3d9   : > { %9645 = vmatprep.subr.mxu0 %v10698_v18  ;;  %9678 = vmatprep.subr.mxu1 %v10698_v18  ;;  %v7751_v39 = vld [vmem:[#allocation9 + $0xb8] sm:$0xff]  ;;  %v7652_v40 = vld [vmem:[#allocation9 + $0x20] sm:$0xff]  ;;  %v7642_v41 = vadd.f32 %v8696_v37, %v7637_v38  ;;  %v7750_v43 = vld [vmem:[#allocation9 + $0xb0] sm:$0xff] }
 0x3da   : > { %9646 = vmatpush3.msra.mxu0 %v7660_v21  ;;  %9679 = vmatpush3.msra.mxu1 %v7757_v25  ;;  %v7651_v44 = vld [vmem:[#allocation9 + $0x18] sm:$0xff]  ;;  %v7749_v46 = vld [vmem:[#allocation9 + $0xa8] sm:$0xff]  ;;  %v7650_v47 = vld [vmem:[#allocation9 + $0x10] sm:$0xff] }
 0x3db   : > { %9647 = vmatprep.subr.mxu0 %v10698_v18  ;;  %9680 = vmatprep.subr.mxu1 %v10698_v18  ;;  %v7646_v48 = vmul.f32 %v7645_v45, %v7642_v41  ;;  %v7748_v49 = vld [vmem:[#allocation9 + $0xa0] sm:$0xff]  ;;  %v7649_v50 = vld [vmem:[#allocation9 + $0x8] sm:$0xff]  ;;  %vm7644_vm1 = vcmp.gt.f32.partialorder %v7642_v41, 0.0  ;;  %v7747_v51 = vld [vmem:[#allocation9 + $0x98] sm:$0xff] }
 0x3dc   : > { %9648 = vmatpush3.msra.mxu0 %v7659_v24  ;;  %9681 = vmatpush3.msra.mxu1 %v7756_v27  ;;  %v7648_v52 = vld [vmem:[#allocation9] sm:$0xff]  ;;  %v7746_v54 = vld [vmem:[#allocation9 + $0x90] sm:$0xff]  ;;  %v7745_v55 = vld [vmem:[#allocation9 + $0x88] sm:$0xff] }
 0x3dd   : > { %9649 = vmatprep.subr.mxu0 %v10698_v18  ;;  %9682 = vmatprep.subr.mxu1 %v10698_v18  ;;  %v7647_v53 = vsel %vm7644_vm1, %v7642_v41, %v7646_v48  ;;  %v7744_v56 = vld [vmem:[#allocation9 + $0x80] sm:$0xff]  ;;  %v7855_v57 = vld [vmem:[#allocation9 + $0x178] sm:$0xff]  ;;  %v7854_v58 = vld [vmem:[#allocation9 + $0x170] sm:$0xff] }
 0x3de   : > { %9650 = vmatpush3.msra.mxu0 %v7658_v26  ;;  %9683 = vmatpush3.msra.mxu1 %v7755_v29  ;;  %v7853_v59 = vld [vmem:[#allocation9 + $0x168] sm:$0xff]  ;;  %v7852_v61 = vld [vmem:[#allocation9 + $0x160] sm:$0xff]  ;;  %v7851_v60 = vld [vmem:[#allocation9 + $0x158] sm:$0xff] }
 0x3df   : > { %9651 = vmatprep.subr.mxu0 %v10698_v18  ;;  %9684 = vmatprep.subr.mxu1 %v10698_v18  ;;  %v7850_v62 = vld [vmem:[#allocation9 + $0x150] sm:$0xff]  ;;  %v7849_v63 = vld [vmem:[#allocation9 + $0x148] sm:$0xff]  ;;  %v7848_v0 = vld [vmem:[#allocation9 + $0x140] sm:$0xff] }
 0x3e0   : > { %9652 = vmatpush3.msra.mxu0 %v7657_v28  ;;  %9685 = vmatpush3.msra.mxu1 %v7754_v31  ;;  %v7847_v1 = vld [vmem:[#allocation9 + $0x138] sm:$0xff]  ;;  %v7846_v2 = vld [vmem:[#allocation9 + $0x130] sm:$0xff]  ;;  %v7845_v4 = vld [vmem:[#allocation9 + $0x128] sm:$0xff] }
 0x3e1   : > { %9653 = vmatprep.subr.mxu0 %v10698_v18  ;;  %9686 = vmatprep.subr.mxu1 %v10698_v18  ;;  %v7844_v5 = vld [vmem:[#allocation9 + $0x120] sm:$0xff]  ;;  %v7843_v6 = vld [vmem:[#allocation9 + $0x118] sm:$0xff]  ;;  %v7842_v12 = vld [vmem:[#allocation9 + $0x110] sm:$0xff] }
 0x3e2   : > { %9654 = vmatpush3.msra.mxu0 %v7656_v30  ;;  %9687 = vmatpush3.msra.mxu1 %v7753_v33  ;;  %v8697_v7 = vld [vmem:[#allocation10 + $0x1] ss:$0 sm:$0xff]  ;;  %v7841_v13 = vld [vmem:[#allocation9 + $0x108] sm:$0xff]  ;;  %v8699_v15 = vld [vmem:[#allocation10 + $0x2] ss:$0 sm:$0xff] }
 0x3e3   : > { %9655 = vmatprep.subr.mxu0 %v10698_v18  ;;  %9688 = vmatprep.subr.mxu1 %v10698_v18  ;;  %v7840_v14 = vld [vmem:[#allocation9 + $0x100] sm:$0xff] }
 0x3e4   : > { %9656 = vmatpush3.msra.mxu0 %v7655_v32  ;;  %9689 = vmatpush3.msra.mxu1 %v7752_v36  ;;  %v8701_v23 = vld [vmem:[#allocation10 + $0x3] ss:$0 sm:$0xff] }
 0x3e5   : > { %9657 = vmatprep.subr.mxu0 %v10698_v18  ;;  %9690 = vmatprep.subr.mxu1 %v10698_v18 }
 0x3e6   : > { %9658 = vmatpush3.msra.mxu0 %v7654_v34  ;;  %9691 = vmatpush3.msra.mxu1 %v7751_v39 }
 0x3e7   : > { %9659 = vmatprep.subr.mxu0 %v10698_v18  ;;  %9692 = vmatprep.subr.mxu1 %v10698_v18 }
 0x3e8   : > { %9660 = vmatpush3.msra.mxu0 %v7653_v35  ;;  %9693 = vmatpush3.msra.mxu1 %v7750_v43 }
 0x3e9   : > { %9661 = vmatprep.subr.mxu0 %v10698_v18  ;;  %9694 = vmatprep.subr.mxu1 %v10698_v18 }
 0x3ea   : > { %9662 = vmatpush3.msra.mxu0 %v7652_v40  ;;  %9695 = vmatpush3.msra.mxu1 %v7749_v46 }
 0x3eb   : > { %9663 = vmatprep.subr.mxu0 %v10698_v18  ;;  %9696 = vmatprep.subr.mxu1 %v10698_v18 }
 0x3ec   : > { %9664 = vmatpush3.msra.mxu0 %v7651_v44  ;;  %9697 = vmatpush3.msra.mxu1 %v7748_v49 }
 0x3ed   : > { %9665 = vmatprep.subr.mxu0 %v10698_v18  ;;  %9698 = vmatprep.subr.mxu1 %v10698_v18 }
 0x3ee   : > { %9666 = vmatpush3.msra.mxu0 %v7650_v47  ;;  %9699 = vmatpush3.msra.mxu1 %v7747_v51 }
 0x3ef   : > { %9667 = vmatprep.subr.mxu0 %v10698_v18  ;;  %9700 = vmatprep.subr.mxu1 %v10698_v18 }
 0x3f0   : > { %9668 = vmatpush3.msra.mxu0 %v7649_v50  ;;  %9701 = vmatpush3.msra.mxu1 %v7746_v54 }
 0x3f1   : > { %9669 = vmatprep.subr.mxu0 %v10698_v18  ;;  %9702 = vmatprep.subr.mxu1 %v10698_v18 }
 0x3f2   : > { %9670 = vmatpush3.msra.mxu0 %v7648_v52  ;;  %9703 = vmatpush3.msra.mxu1 %v7745_v55 }
 0x3f3   : > { %9672 = vmatmul.mubr.f32.vlgmr.msra.gmra.mxu0 %v7647_v53  ;;  %9709 = vmatprep.subr.mxu0 %v10698_v18 }
 0x3f4   : > { %9741 = vmatprep.mubr.msk.f32.mxu0 %vm10699_vm0, %v10698_v18  ;;  %9704 = vmatprep.subr.mxu1 %v10698_v18 }
 0x3f5   : > { %9705 = vmatpush3.msra.mxu1 %v7744_v56  ;;  %9710 = vmatpush3.msra.mxu0 %v7855_v57 }
 0x3f6   : > { %9711 = vmatprep.subr.mxu0 %v10698_v18 }
 0x3f7   : > { %9712 = vmatpush3.msra.mxu0 %v7854_v58 }
 0x3f8   : > { %9713 = vmatprep.subr.mxu0 %v10698_v18 }
 0x3f9   : > { %9714 = vmatpush3.msra.mxu0 %v7853_v59 }
 0x3fa   : > { %9715 = vmatprep.subr.mxu0 %v10698_v18 }
 0x3fb   : > { %9716 = vmatpush3.msra.mxu0 %v7852_v61 }
 0x3fc   : > { %9717 = vmatprep.subr.mxu0 %v10698_v18 }
 0x3fd   : > { %9718 = vmatpush3.msra.mxu0 %v7851_v60 }
 0x3fe   : > { %9719 = vmatprep.subr.mxu0 %v10698_v18 }
 0x3ff   : > { %9720 = vmatpush3.msra.mxu0 %v7850_v62 }
 0x400   : > { %9721 = vmatprep.subr.mxu0 %v10698_v18 }
 0x401   : > { %9722 = vmatpush3.msra.mxu0 %v7849_v63 }
 0x402   : > { %9723 = vmatprep.subr.mxu0 %v10698_v18 }
 0x403   : > { %9724 = vmatpush3.msra.mxu0 %v7848_v0 }
 0x404   : > { %9725 = vmatprep.subr.mxu0 %v10698_v18 }
 0x405   : > { %9726 = vmatpush3.msra.mxu0 %v7847_v1 }
 0x406   : > { %9727 = vmatprep.subr.mxu0 %v10698_v18 }
 0x407   : > { %9728 = vmatpush3.msra.mxu0 %v7846_v2 }
 0x408   : > { %9729 = vmatprep.subr.mxu0 %v10698_v18 }
 0x409   : > { %9730 = vmatpush3.msra.mxu0 %v7845_v4 }
 0x40a   : > { %9731 = vmatprep.subr.mxu0 %v10698_v18 }
 0x40b   : > { %9732 = vmatpush3.msra.mxu0 %v7844_v5 }
 0x40c   : > { %9733 = vmatprep.subr.mxu0 %v10698_v18 }
 0x40d   : > { %9734 = vmatpush3.msra.mxu0 %v7843_v6 }
 0x40e   : > { %9735 = vmatprep.subr.mxu0 %v10698_v18 }
 0x40f   : > { %9736 = vmatpush3.msra.mxu0 %v7842_v12 }
 0x410   : > { %9737 = vmatprep.subr.mxu0 %v10698_v18 }
 0x411   : > { %9738 = vmatpush3.msra.mxu0 %v7841_v13 }
 0x412   : > { %9739 = vmatprep.subr.mxu0 %v10698_v18 }
 0x413   : > { %9740 = vmatpush3.msra.mxu0 %v7840_v14 }
 0x4b3   : > { %v7734_v42 = vpop.f32.mrf.mxu0 }
 0x4b4   : > { %v7735_v8 = vadd.f32 %v8697_v7, %v7734_v42 }
 0x4b5   : > { %v9673_v9 = vpop.f32.mrf.mxu0 }
 0x4b6   : > { %v7741_v10 = vmul.f32 %v7740_v3, %v7735_v8  ;;  %vm7739_vm2 = vcmp.gt.f32.partialorder %v7735_v8, 0.0 }
 0x4b8   : > { %v7742_v11 = vsel %vm7739_vm2, %v7735_v8, %v7741_v10 }
 0x4b9   : > { %9707 = vmatmul.mubr.f32.vlgmr.msra.gmra.mxu1 %v7742_v11 }
 0x579   : > { %v7830_v16 = vpop.f32.mrf.mxu1 }
 0x57a   : > { %v7831_v19 = vadd.f32 %v8699_v15, %v7830_v16 }
 0x57b   : > { %v9708_v20 = vpop.f32.mrf.mxu1 }
 0x57c   : > { %vm7835_vm3 = vcmp.gt.f32.partialorder %v7831_v19, 0.0  ;;  %v7837_v21 = vmul.f32 %v7836_v17, %v7831_v19 }
 0x57e   : > { %v7838_v22 = vsel %vm7835_vm3, %v7831_v19, %v7837_v21 }
 0x57f   : > { %9742 = vmatmul.mubr.f32.vlgmr.msra.gmra.mxu0 %v7838_v22 }
 0x63f   : > { %v7926_v24 = vpop.f32.mrf.mxu0 }
 0x640   : > { %v7927_v25 = vadd.f32 %v8701_v23, %v7926_v24 }
 0x641   : > { %v9743_v26 = vpop.f32.mrf.mxu0 }
 0x642   : > { %7930 = vst [vmem:[#allocation13] sm:$0x3] %v7927_v25 }
 0x643 PF: > { %p9792_p3 = scmp.eq.s32.totalorder %s10750_s22, 1  ;;  %s10700_s21 = smov [#allocation13]  }
 0x644   : > { %s7938_s8 = sshll.u32 %s10700_s21, 4  ;;  %s7939_s8 = int_to_ptr.vmem [resolvable:$true] %s7938_s8 }
 0x645   : > { %s10607_s10 = scalar_lea.vmem %s7939_s8, 32  ;;  %p10614_p7 = scmp.lt.s32.totalorder %s7939_s8, %s7939_s8 }
 0x646   : > { %p10608_p10 = scmp.ne.s32.totalorder %s7939_s8, %s10607_s10  ;;  %p10615_p11 = scmp.lt.s32.totalorder %s10607_s10, %s10607_s10 }
 0x648   : > { %p10609_p5 = pnand %p10608_p10, %p9792_p3  ;;  %p10616_p8 = por %p10615_p11, %p10614_p7 }
 0x64a   : > { %p10610_p6 = pneg %p10609_p5 }
 0x64c   : > { %p10617_p13 = pnand %p10616_p8, %p10610_p6 }
 0x64e   : > { %10620 = shalt.err (!%p10617_p13)
}
 0x64f   : > { %9765 = dma.vmem_to_hbm [thread:$0]  (%p9792_p3), %s7939_s8, 32, %s11799_s5, [#allocation5]  }
 0x650   : > { %10668 = dma.done.wait (%p9792_p3), [#allocation5], 32  }
 0x651   : > { %10670 = vsyncadd (%p9792_p3), [#allocation5], 4294967264 }
 0x652 PF: > { %p21_p12 = scmp.ge.s32.totalorder %s10799_s16, 4   ;;  %s11816_s18 = smov %s10677_s19 }
 0x653   : > { %s11817_s19 = smov %s10681_s20  ;;  %s11818_s20 = smov %s10809_s25 }
 0x654   : > { %s11819_s21 = smov %s10799_s16  ;;  %23 = sbr.rel (!%p21_p12) target bundleno = 8 (0x8), region = 113 }
 0x659   :  { %7951 = vsyncpa [#allocation4], 1 }
 0x65a   :  { %7953 = vsyncpa [#allocation4 + $0x1], 1 }
 0x65b   :  { %7954 = vsyncpa [#allocation8], 1 }
 0x65c   :  { %7956 = vsyncpa [#allocation8 + $0x1], 1 }
 0x65d   :  { %7957 = vsyncpa [#allocation11], 1 }
 0x65e   :  { %7958 = vsyncpa [#allocation5], 1 }
 0x65f   :  { %7960 = vsyncpa [#allocation5 + $0x1], 1 }
 0x660   :  { %7961 = vsyncpa [#allocation6], 1 }
 0x661   :  { %7963 = vsyncpa [#allocation6 + $0x1], 1 }

</bundles_post_ra>
